<compile_context>
chip_gen: v5e
topology: v5e:2x2
jax: 0.10.0
libtpu: 0.0.40
codegen_flags: <defaults>
</compile_context>

<pallas_src>
import jax
import jax.numpy as jnp
from jax.experimental import pallas as pl
from jax.experimental.pallas import tpu as pltpu

EPS = 1e-5
NUM_CLASSES = 5
K1_PAD = 8        # conv1's 5 taps padded to 8 im2col columns (rows 5..7 of the
                  # weight are zero), so the slab minor dim is a clean size.
BLOCK_B = 32      # samples per grid step; sized so peak VMEM fits the smallest
                  # default scoped-VMEM limit (v5e: 16 MiB).  Multiple of 8.


# ----------------------------------------------------------------------------
# In-kernel helper: Conv1d('same') + folded BN + ReLU as K accumulating MXU
# matmuls with the batch folded into the M dimension.
#   h      : (B, L, Ci)  activation value (bf16 or f32)
#   w_ref  : (K, Ci, Co) bf16 weight ref
#   s_ref, b_ref : (1, Co) f32 folded BN scale / shift
# ----------------------------------------------------------------------------
def _conv_bn_relu(h, w_ref, s_ref, b_ref, out_dtype=jnp.bfloat16):
    B, L, Ci = h.shape
    K, _, Co = w_ref.shape
    pad = (K - 1) // 2

    hb = h.astype(jnp.bfloat16)
    z = jnp.zeros((B, pad, Ci), jnp.bfloat16)
    hp = jnp.concatenate([z, hb, z], axis=1)                  # (B, L + 2*pad, Ci)

    acc = None
    for k in range(K):                                        # K accumulating MXU matmuls
        lhs = hp[:, k:k + L, :].reshape(B * L, Ci)            # per-sample shift, batch in M
        d = jnp.dot(lhs, w_ref[k], preferred_element_type=jnp.float32)
        acc = d if acc is None else acc + d                   # (B*L, Co) f32

    out = jnp.maximum(acc * s_ref[...] + b_ref[...], 0.0)     # folded BN + ReLU (f32)
    return out.astype(out_dtype).reshape(B, L, Co)


# ----------------------------------------------------------------------------
# Fully fused network kernel — one block of B samples per grid step.
#   x_ref  : (B, L, 8)   bf16 conv1 im2col slab (taps in lanes)
#   w1_ref : (8, 32)     bf16 conv1 taps (rows 5..7 zero)
#   w2_ref : (3, 32, 64) bf16 ; w3_ref : (3, 64, 128) bf16
#   s*/b*  : (1, Co)     f32 folded BN scale / shift
#   wl_ref : (128, 5)    bf16 classifier weight ; bl_ref : (1, 5) f32
#   out_ref: (B, 5)      f32 logits
# ----------------------------------------------------------------------------
def fused_cnn_kernel(x_ref, w1_ref, s1_ref, b1_ref,
                     w2_ref, s2_ref, b2_ref,
                     w3_ref, s3_ref, b3_ref,
                     wl_ref, bl_ref, out_ref):
    B, L, K1 = x_ref.shape

    # ---- conv1 (Ci=1): one MXU matmul on the pre-built tap slab --------------
    xs = x_ref[...].reshape(B * L, K1)                        # (B*L, 8) bf16
    a1 = jnp.dot(xs, w1_ref[...], preferred_element_type=jnp.float32)
    h1 = jnp.maximum(a1 * s1_ref[...] + b1_ref[...], 0.0)     # (B*L, 32) f32
    h1 = h1.astype(jnp.bfloat16).reshape(B, L, 32)

    # ---- conv2 / conv3: per-tap accumulating MXU matmuls ---------------------
    h2 = _conv_bn_relu(h1, w2_ref, s2_ref, b2_ref)                          # (B, L, 64) bf16
    h3 = _conv_bn_relu(h2, w3_ref, s3_ref, b3_ref, out_dtype=jnp.float32)   # (B, L, 128) f32

    # ---- AdaptiveAvgPool1d(1) + Linear fused epilogue -------------------------
    pooled = jnp.sum(h3, axis=1) * (1.0 / L)                  # (B, 128) f32
    logits = jnp.dot(pooled.astype(jnp.bfloat16), wl_ref[...],
                     preferred_element_type=jnp.float32) + bl_ref[...]      # (B, 5) f32
    out_ref[...] = logits.astype(out_ref.dtype)


# ----------------------------------------------------------------------------
# Wrapper: single pallas_call for the whole forward pass.
# The wrapper does layout plumbing only (pad / shifted-window stack / dtype
# casts); all FLOPs that touch weights happen inside the kernel.
# ----------------------------------------------------------------------------
def cnn_baseline_forward(x_ncl, params, block_b=BLOCK_B):
    """x_ncl: (N, 1, L) float32 — PyTorch NCL layout.  Returns (N, num_classes)."""
    N, C, L = x_ncl.shape
    assert C == 1, "CNNBaseline expects a single input channel"
    assert L % 16 == 0, "sequence length must be a multiple of 16 (bf16 sublane tile)"
    assert block_b % 8 == 0
    NC = params["b_lin"].shape[-1]

    B = int(min(block_b, N))
    n_blocks = pl.cdiv(N, B)
    N_pad = n_blocks * B

    # conv1 im2col slab: slab[b, l, j] = xpad[b, l + j] with 'same' left-pad 2.
    # Taps j=5..7 hit zero weight rows, so their values are irrelevant.
    x2 = x_ncl[:, 0, :]                                        # (N, L)
    xpad = jnp.pad(x2, ((0, N_pad - N), (2, K1_PAD - 3)))      # (N_pad, L + 7)
    slab = jnp.stack([xpad[:, j:j + L] for j in range(K1_PAD)], axis=-1)
    slab = slab.astype(jnp.bfloat16)                           # (N_pad, L, 8)

    weight_args = (
        params["w1_slab"], params["s1"], params["b1"],
        params["w2"], params["s2"], params["b2"],
        params["w3"], params["s3"], params["b3"],
        params["w_lin"], params["b_lin"],
    )

    def _resident_spec(a):
        zeros = (0,) * a.ndim
        return pl.BlockSpec(a.shape, lambda i, _z=zeros: _z)

    out = pl.pallas_call(
        fused_cnn_kernel,
        out_shape=jax.ShapeDtypeStruct((N_pad, NC), jnp.float32),
        grid=(n_blocks,),
        in_specs=[pl.BlockSpec((B, L, K1_PAD), lambda i: (i, 0, 0))]
                 + [_resident_spec(a) for a in weight_args],
        out_specs=pl.BlockSpec((B, NC), lambda i: (i, 0)),
        compiler_params=pltpu.CompilerParams(
            dimension_semantics=("parallel",)),
    )(slab, *weight_args)
    return out[:N]


# ----------------------------------------------------------------------------
# Parameter construction (deterministic, in-script).  BN in eval mode folded
# into per-channel scale/shift; MXU weights stored in bf16.
# ----------------------------------------------------------------------------
def make_params(key):
    def conv_layer(k, ci, co, ksize):
        k1, k2 = jax.random.split(k)
        w = jax.random.normal(k1, (ksize, ci, co), jnp.float32) * 0.1
        b = jax.random.normal(k2, (co,), jnp.float32) * 0.1
        gamma = jnp.ones((co,), jnp.float32)
        beta = jnp.zeros((co,), jnp.float32)
        rmean = jnp.zeros((co,), jnp.float32)
        rvar = jnp.ones((co,), jnp.float32)
        scale = gamma / jnp.sqrt(rvar + EPS)                   # (Co,)
        shift = (b - rmean) * scale + beta                     # (Co,)
        return w, scale[None, :], shift[None, :]

    keys = jax.random.split(key, 5)
    w1, s1, b1 = conv_layer(keys[0], 1, 32, 5)
    w2, s2, b2 = conv_layer(keys[1], 32, 64, 3)
    w3, s3, b3 = conv_layer(keys[2], 64, 128, 3)
    w_lin = jax.random.normal(keys[3], (128, NUM_CLASSES), jnp.float32) * 0.1
    b_lin = (jax.random.normal(keys[4], (NUM_CLASSES,), jnp.float32) * 0.1)[None, :]

    w1_taps = w1[:, 0, :]                                      # (5, 32)
    w1_slab = jnp.concatenate(
        [w1_taps, jnp.zeros((K1_PAD - 5, 32), jnp.float32)], axis=0)   # (8, 32)

    return {
        "w1_slab": w1_slab.astype(jnp.bfloat16),
        "w1_full": w1.astype(jnp.bfloat16),        # (5, 1, 32) — reference path
        "s1": s1, "b1": b1,
        "w2": w2.astype(jnp.bfloat16), "s2": s2, "b2": b2,
        "w3": w3.astype(jnp.bfloat16), "s3": s3, "b3": b3,
        "w_lin": w_lin.astype(jnp.bfloat16),
        "b_lin": b_lin,
    }


# ----------------------------------------------------------------------------
# Pure-JAX reference (same math / same bf16 matmul precision, no Pallas).
# ----------------------------------------------------------------------------
def reference_forward(x_ncl, params):
    L = x_ncl.shape[-1]
    h = jnp.transpose(x_ncl, (0, 2, 1))                        # (N, L, 1) f32

    def conv(h, w, scale, shift):
        K = w.shape[0]
        p = (K - 1) // 2
        hp = jnp.pad(h.astype(jnp.bfloat16), ((0, 0), (p, p), (0, 0)))
        acc = jnp.zeros((h.shape[0], L, w.shape[2]), jnp.float32)
        for k in range(K):
            acc = acc + jnp.einsum("nlc,cd->nld", hp[:, k:k + L, :], w[k],
                                   preferred_element_type=jnp.float32)
        return jnp.maximum(acc * scale + shift, 0.0)

    h = conv(h, params["w1_full"], params["s1"], params["b1"])
    h = conv(h, params["w2"], params["s2"], params["b2"])
    h = conv(h, params["w3"], params["s3"], params["b3"])
    pooled = jnp.mean(h, axis=1)                               # (N, 128) f32
    return jnp.dot(pooled.astype(jnp.bfloat16), params["w_lin"],
                   preferred_element_type=jnp.float32) + params["b_lin"]


if __name__ == "__main__":
    key = jax.random.PRNGKey(0)
    k_param, k_x = jax.random.split(key)
    params = make_params(k_param)

    N, L = 4, 128
    x = jax.random.normal(k_x, (N, 1, L), jnp.float32)         # (batch, channels=1, length)

    out = jax.block_until_ready(cnn_baseline_forward(x, params))
    ref = jax.block_until_ready(reference_forward(x, params))

    assert out.shape == (N, NUM_CLASSES), out.shape
    assert jnp.allclose(out, ref, atol=2e-3, rtol=2e-3), (
        "max abs diff", float(jnp.max(jnp.abs(out - ref))))
    print("KERNEL_OK")
</pallas_src>

<mosaic_0001>
module attributes {stable_mosaic.version = 11 : i64} {
  func.func @fused_cnn_kernel(%arg0: i32, %arg1: memref<4x128x8xbf16, #tpu.memory_space<vmem>>, %arg2: memref<8x32xbf16, #tpu.memory_space<vmem>>, %arg3: memref<1x32xf32, #tpu.memory_space<vmem>>, %arg4: memref<1x32xf32, #tpu.memory_space<vmem>>, %arg5: memref<3x32x64xbf16, #tpu.memory_space<vmem>>, %arg6: memref<1x64xf32, #tpu.memory_space<vmem>>, %arg7: memref<1x64xf32, #tpu.memory_space<vmem>>, %arg8: memref<3x64x128xbf16, #tpu.memory_space<vmem>>, %arg9: memref<1x128xf32, #tpu.memory_space<vmem>>, %arg10: memref<1x128xf32, #tpu.memory_space<vmem>>, %arg11: memref<128x5xbf16, #tpu.memory_space<vmem>>, %arg12: memref<1x5xf32, #tpu.memory_space<vmem>>, %arg13: memref<4x5xf32, #tpu.memory_space<vmem>>) attributes {dimension_semantics = [#tpu.dimension_semantics<parallel>], iteration_bounds = array<i64: 1>, scalar_prefetch = 0 : i64, scratch_operands = 0 : i64, tpu.core_type = #tpu.core_type<tc>, window_params = [{transform_indices = @transform_0, window_bounds = array<i64: 4, 128, 8>}, {pipeline_mode = #tpu.pipeline_mode<synchronous>, transform_indices = @transform_1, window_bounds = array<i64: 8, 32>}, {pipeline_mode = #tpu.pipeline_mode<synchronous>, transform_indices = @transform_2, window_bounds = array<i64: 1, 32>}, {pipeline_mode = #tpu.pipeline_mode<synchronous>, transform_indices = @transform_3, window_bounds = array<i64: 1, 32>}, {pipeline_mode = #tpu.pipeline_mode<synchronous>, transform_indices = @transform_4, window_bounds = array<i64: 3, 32, 64>}, {pipeline_mode = #tpu.pipeline_mode<synchronous>, transform_indices = @transform_5, window_bounds = array<i64: 1, 64>}, {pipeline_mode = #tpu.pipeline_mode<synchronous>, transform_indices = @transform_6, window_bounds = array<i64: 1, 64>}, {pipeline_mode = #tpu.pipeline_mode<synchronous>, transform_indices = @transform_7, window_bounds = array<i64: 3, 64, 128>}, {pipeline_mode = #tpu.pipeline_mode<synchronous>, transform_indices = @transform_8, window_bounds = array<i64: 1, 128>}, {pipeline_mode = #tpu.pipeline_mode<synchronous>, transform_indices = @transform_9, window_bounds = array<i64: 1, 128>}, {pipeline_mode = #tpu.pipeline_mode<synchronous>, transform_indices = @transform_10, window_bounds = array<i64: 128, 5>}, {pipeline_mode = #tpu.pipeline_mode<synchronous>, transform_indices = @transform_11, window_bounds = array<i64: 1, 5>}, {transform_indices = @transform_12, window_bounds = array<i64: 4, 5>}]} {
    %c0 = arith.constant 0 : index
    %c0_0 = arith.constant 0 : index
    %c0_1 = arith.constant 0 : index
    %0 = vector.load %arg1[%c0, %c0_0, %c0_1] : memref<4x128x8xbf16, #tpu.memory_space<vmem>>, vector<4x128x8xbf16>
    %1 = vector.shape_cast %0 : vector<4x128x8xbf16> to vector<512x8xbf16>
    %c0_2 = arith.constant 0 : index
    %c0_3 = arith.constant 0 : index
    %2 = vector.load %arg2[%c0_2, %c0_3] : memref<8x32xbf16, #tpu.memory_space<vmem>>, vector<8x32xbf16>
    %cst = arith.constant dense<0.000000e+00> : vector<512x32xf32>
    %3 = tpu.matmul %1, %2, %cst {dimension_numbers = #tpu.dot_dimension_numbers<[1], [0], [0], [1], [0, 0, 1, 1], [], []>} : vector<512x8xbf16>, vector<8x32xbf16>, vector<512x32xf32> -> vector<512x32xf32>
    %c0_4 = arith.constant 0 : index
    %c0_5 = arith.constant 0 : index
    %4 = vector.load %arg3[%c0_4, %c0_5] : memref<1x32xf32, #tpu.memory_space<vmem>>, vector<1x32xf32>
    %5 = vector.broadcast %4 : vector<1x32xf32> to vector<512x32xf32>
    %6 = arith.mulf %3, %5 : vector<512x32xf32>
    %c0_6 = arith.constant 0 : index
    %c0_7 = arith.constant 0 : index
    %7 = vector.load %arg4[%c0_6, %c0_7] : memref<1x32xf32, #tpu.memory_space<vmem>>, vector<1x32xf32>
    %8 = vector.broadcast %7 : vector<1x32xf32> to vector<512x32xf32>
    %9 = arith.addf %6, %8 : vector<512x32xf32>
    %cst_8 = arith.constant 0.000000e+00 : f32
    %10 = vector.broadcast %cst_8 : f32 to vector<512x32xf32>
    %11 = arith.maximumf %9, %10 : vector<512x32xf32>
    %12 = arith.truncf %11 : vector<512x32xf32> to vector<512x32xbf16>
    %13 = vector.shape_cast %12 : vector<512x32xbf16> to vector<4x128x32xbf16>
    %cst_9 = arith.constant 0.000000e+00 : bf16
    %14 = vector.broadcast %cst_9 : bf16 to vector<4x1x32xbf16>
    %15 = tpu.concatenate %14, %13, %14 in 1 : vector<4x1x32xbf16>, vector<4x128x32xbf16>, vector<4x1x32xbf16> -> vector<4x130x32xbf16>
    %16 = vector.extract_strided_slice %15 {offsets = [0, 0, 0], sizes = [4, 128, 32], strides = [1, 1, 1]} : vector<4x130x32xbf16> to vector<4x128x32xbf16>
    %17 = vector.shape_cast %16 : vector<4x128x32xbf16> to vector<512x32xbf16>
    %c0_10 = arith.constant 0 : index
    %c0_11 = arith.constant 0 : index
    %c0_12 = arith.constant 0 : index
    %18 = vector.load %arg5[%c0_10, %c0_11, %c0_12] : memref<3x32x64xbf16, #tpu.memory_space<vmem>>, vector<1x32x64xbf16>
    %19 = vector.shape_cast %18 : vector<1x32x64xbf16> to vector<32x64xbf16>
    %cst_13 = arith.constant dense<0.000000e+00> : vector<512x64xf32>
    %20 = tpu.matmul %17, %19, %cst_13 {dimension_numbers = #tpu.dot_dimension_numbers<[1], [0], [0], [1], [0, 0, 1, 1], [], []>} : vector<512x32xbf16>, vector<32x64xbf16>, vector<512x64xf32> -> vector<512x64xf32>
    %21 = vector.extract_strided_slice %15 {offsets = [0, 1, 0], sizes = [4, 128, 32], strides = [1, 1, 1]} : vector<4x130x32xbf16> to vector<4x128x32xbf16>
    %22 = vector.shape_cast %21 : vector<4x128x32xbf16> to vector<512x32xbf16>
    %c1 = arith.constant 1 : index
    %c0_14 = arith.constant 0 : index
    %c0_15 = arith.constant 0 : index
    %23 = vector.load %arg5[%c1, %c0_14, %c0_15] : memref<3x32x64xbf16, #tpu.memory_space<vmem>>, vector<1x32x64xbf16>
    %24 = vector.shape_cast %23 : vector<1x32x64xbf16> to vector<32x64xbf16>
    %cst_16 = arith.constant dense<0.000000e+00> : vector<512x64xf32>
    %25 = tpu.matmul %22, %24, %cst_16 {dimension_numbers = #tpu.dot_dimension_numbers<[1], [0], [0], [1], [0, 0, 1, 1], [], []>} : vector<512x32xbf16>, vector<32x64xbf16>, vector<512x64xf32> -> vector<512x64xf32>
    %26 = arith.addf %20, %25 : vector<512x64xf32>
    %27 = vector.extract_strided_slice %15 {offsets = [0, 2, 0], sizes = [4, 128, 32], strides = [1, 1, 1]} : vector<4x130x32xbf16> to vector<4x128x32xbf16>
    %28 = vector.shape_cast %27 : vector<4x128x32xbf16> to vector<512x32xbf16>
    %c2 = arith.constant 2 : index
    %c0_17 = arith.constant 0 : index
    %c0_18 = arith.constant 0 : index
    %29 = vector.load %arg5[%c2, %c0_17, %c0_18] : memref<3x32x64xbf16, #tpu.memory_space<vmem>>, vector<1x32x64xbf16>
    %30 = vector.shape_cast %29 : vector<1x32x64xbf16> to vector<32x64xbf16>
    %cst_19 = arith.constant dense<0.000000e+00> : vector<512x64xf32>
    %31 = tpu.matmul %28, %30, %cst_19 {dimension_numbers = #tpu.dot_dimension_numbers<[1], [0], [0], [1], [0, 0, 1, 1], [], []>} : vector<512x32xbf16>, vector<32x64xbf16>, vector<512x64xf32> -> vector<512x64xf32>
    %32 = arith.addf %26, %31 : vector<512x64xf32>
    %c0_20 = arith.constant 0 : index
    %c0_21 = arith.constant 0 : index
    %33 = vector.load %arg6[%c0_20, %c0_21] : memref<1x64xf32, #tpu.memory_space<vmem>>, vector<1x64xf32>
    %34 = vector.broadcast %33 : vector<1x64xf32> to vector<512x64xf32>
    %35 = arith.mulf %32, %34 : vector<512x64xf32>
    %c0_22 = arith.constant 0 : index
    %c0_23 = arith.constant 0 : index
    %36 = vector.load %arg7[%c0_22, %c0_23] : memref<1x64xf32, #tpu.memory_space<vmem>>, vector<1x64xf32>
    %37 = vector.broadcast %36 : vector<1x64xf32> to vector<512x64xf32>
    %38 = arith.addf %35, %37 : vector<512x64xf32>
    %cst_24 = arith.constant 0.000000e+00 : f32
    %39 = vector.broadcast %cst_24 : f32 to vector<512x64xf32>
    %40 = arith.maximumf %38, %39 : vector<512x64xf32>
    %41 = arith.truncf %40 : vector<512x64xf32> to vector<512x64xbf16>
    %42 = vector.shape_cast %41 : vector<512x64xbf16> to vector<4x128x64xbf16>
    %cst_25 = arith.constant 0.000000e+00 : bf16
    %43 = vector.broadcast %cst_25 : bf16 to vector<4x1x64xbf16>
    %44 = tpu.concatenate %43, %42, %43 in 1 : vector<4x1x64xbf16>, vector<4x128x64xbf16>, vector<4x1x64xbf16> -> vector<4x130x64xbf16>
    %45 = vector.extract_strided_slice %44 {offsets = [0, 0, 0], sizes = [4, 128, 64], strides = [1, 1, 1]} : vector<4x130x64xbf16> to vector<4x128x64xbf16>
    %46 = vector.shape_cast %45 : vector<4x128x64xbf16> to vector<512x64xbf16>
    %c0_26 = arith.constant 0 : index
    %c0_27 = arith.constant 0 : index
    %c0_28 = arith.constant 0 : index
    %47 = vector.load %arg8[%c0_26, %c0_27, %c0_28] : memref<3x64x128xbf16, #tpu.memory_space<vmem>>, vector<1x64x128xbf16>
    %48 = vector.shape_cast %47 : vector<1x64x128xbf16> to vector<64x128xbf16>
    %cst_29 = arith.constant dense<0.000000e+00> : vector<512x128xf32>
    %49 = tpu.matmul %46, %48, %cst_29 {dimension_numbers = #tpu.dot_dimension_numbers<[1], [0], [0], [1], [0, 0, 1, 1], [], []>} : vector<512x64xbf16>, vector<64x128xbf16>, vector<512x128xf32> -> vector<512x128xf32>
    %50 = vector.extract_strided_slice %44 {offsets = [0, 1, 0], sizes = [4, 128, 64], strides = [1, 1, 1]} : vector<4x130x64xbf16> to vector<4x128x64xbf16>
    %51 = vector.shape_cast %50 : vector<4x128x64xbf16> to vector<512x64xbf16>
    %c1_30 = arith.constant 1 : index
    %c0_31 = arith.constant 0 : index
    %c0_32 = arith.constant 0 : index
    %52 = vector.load %arg8[%c1_30, %c0_31, %c0_32] : memref<3x64x128xbf16, #tpu.memory_space<vmem>>, vector<1x64x128xbf16>
    %53 = vector.shape_cast %52 : vector<1x64x128xbf16> to vector<64x128xbf16>
    %cst_33 = arith.constant dense<0.000000e+00> : vector<512x128xf32>
    %54 = tpu.matmul %51, %53, %cst_33 {dimension_numbers = #tpu.dot_dimension_numbers<[1], [0], [0], [1], [0, 0, 1, 1], [], []>} : vector<512x64xbf16>, vector<64x128xbf16>, vector<512x128xf32> -> vector<512x128xf32>
    %55 = arith.addf %49, %54 : vector<512x128xf32>
    %56 = vector.extract_strided_slice %44 {offsets = [0, 2, 0], sizes = [4, 128, 64], strides = [1, 1, 1]} : vector<4x130x64xbf16> to vector<4x128x64xbf16>
    %57 = vector.shape_cast %56 : vector<4x128x64xbf16> to vector<512x64xbf16>
    %c2_34 = arith.constant 2 : index
    %c0_35 = arith.constant 0 : index
    %c0_36 = arith.constant 0 : index
    %58 = vector.load %arg8[%c2_34, %c0_35, %c0_36] : memref<3x64x128xbf16, #tpu.memory_space<vmem>>, vector<1x64x128xbf16>
    %59 = vector.shape_cast %58 : vector<1x64x128xbf16> to vector<64x128xbf16>
    %cst_37 = arith.constant dense<0.000000e+00> : vector<512x128xf32>
    %60 = tpu.matmul %57, %59, %cst_37 {dimension_numbers = #tpu.dot_dimension_numbers<[1], [0], [0], [1], [0, 0, 1, 1], [], []>} : vector<512x64xbf16>, vector<64x128xbf16>, vector<512x128xf32> -> vector<512x128xf32>
    %61 = arith.addf %55, %60 : vector<512x128xf32>
    %c0_38 = arith.constant 0 : index
    %c0_39 = arith.constant 0 : index
    %62 = vector.load %arg9[%c0_38, %c0_39] : memref<1x128xf32, #tpu.memory_space<vmem>>, vector<1x128xf32>
    %63 = vector.broadcast %62 : vector<1x128xf32> to vector<512x128xf32>
    %64 = arith.mulf %61, %63 : vector<512x128xf32>
    %c0_40 = arith.constant 0 : index
    %c0_41 = arith.constant 0 : index
    %65 = vector.load %arg10[%c0_40, %c0_41] : memref<1x128xf32, #tpu.memory_space<vmem>>, vector<1x128xf32>
    %66 = vector.broadcast %65 : vector<1x128xf32> to vector<512x128xf32>
    %67 = arith.addf %64, %66 : vector<512x128xf32>
    %cst_42 = arith.constant 0.000000e+00 : f32
    %68 = vector.broadcast %cst_42 : f32 to vector<512x128xf32>
    %69 = arith.maximumf %67, %68 : vector<512x128xf32>
    %70 = vector.shape_cast %69 : vector<512x128xf32> to vector<4x128x128xf32>
    %cst_43 = arith.constant dense<0.000000e+00> : vector<4x128xf32>
    %71 = vector.multi_reduction <add>, %70, %cst_43 [1] : vector<4x128x128xf32> to vector<4x128xf32>
    %cst_44 = arith.constant 7.812500e-03 : f32
    %72 = vector.broadcast %cst_44 : f32 to vector<4x128xf32>
    %73 = arith.mulf %71, %72 : vector<4x128xf32>
    %74 = arith.truncf %73 : vector<4x128xf32> to vector<4x128xbf16>
    %c0_45 = arith.constant 0 : index
    %c0_46 = arith.constant 0 : index
    %75 = vector.load %arg11[%c0_45, %c0_46] : memref<128x5xbf16, #tpu.memory_space<vmem>>, vector<128x5xbf16>
    %cst_47 = arith.constant dense<0.000000e+00> : vector<4x5xf32>
    %76 = tpu.matmul %74, %75, %cst_47 {dimension_numbers = #tpu.dot_dimension_numbers<[1], [0], [0], [1], [0, 0, 1, 1], [], []>} : vector<4x128xbf16>, vector<128x5xbf16>, vector<4x5xf32> -> vector<4x5xf32>
    %c0_48 = arith.constant 0 : index
    %c0_49 = arith.constant 0 : index
    %77 = vector.load %arg12[%c0_48, %c0_49] : memref<1x5xf32, #tpu.memory_space<vmem>>, vector<1x5xf32>
    %78 = vector.broadcast %77 : vector<1x5xf32> to vector<4x5xf32>
    %79 = arith.addf %76, %78 : vector<4x5xf32>
    %c0_50 = arith.constant 0 : index
    %c0_51 = arith.constant 0 : index
    %80 = vector.load %arg13[%c0_50, %c0_51] : memref<4x5xf32, #tpu.memory_space<vmem>>, vector<4x5xf32>
    tpu.vector_store %arg13[%c0_50, %c0_51], %79 {strides = array<i32>} : memref<4x5xf32, #tpu.memory_space<vmem>>, vector<4x5xf32>,
    return
  }
  func.func @transform_0(%arg0: i32) -> (i32, i32, i32) {
    %c0_i32 = arith.constant 0 : i32
    %c0_i32_0 = arith.constant 0 : i32
    %c0_i32_1 = arith.constant 0 : i32
    return %arg0, %c0_i32, %c0_i32_0 : i32, i32, i32
  }
  func.func @transform_1(%arg0: i32) -> (i32, i32) {
    %c0_i32 = arith.constant 0 : i32
    %c0_i32_0 = arith.constant 0 : i32
    %c0_i32_1 = arith.constant 0 : i32
    return %c0_i32, %c0_i32_0 : i32, i32
  }
  func.func @transform_2(%arg0: i32) -> (i32, i32) {
    %c0_i32 = arith.constant 0 : i32
    %c0_i32_0 = arith.constant 0 : i32
    %c0_i32_1 = arith.constant 0 : i32
    return %c0_i32, %c0_i32_0 : i32, i32
  }
  func.func @transform_3(%arg0: i32) -> (i32, i32) {
    %c0_i32 = arith.constant 0 : i32
    %c0_i32_0 = arith.constant 0 : i32
    %c0_i32_1 = arith.constant 0 : i32
    return %c0_i32, %c0_i32_0 : i32, i32
  }
  func.func @transform_4(%arg0: i32) -> (i32, i32, i32) {
    %c0_i32 = arith.constant 0 : i32
    %c0_i32_0 = arith.constant 0 : i32
    %c0_i32_1 = arith.constant 0 : i32
    %c0_i32_2 = arith.constant 0 : i32
    return %c0_i32, %c0_i32_0, %c0_i32_1 : i32, i32, i32
  }
  func.func @transform_5(%arg0: i32) -> (i32, i32) {
    %c0_i32 = arith.constant 0 : i32
    %c0_i32_0 = arith.constant 0 : i32
    %c0_i32_1 = arith.constant 0 : i32
    return %c0_i32, %c0_i32_0 : i32, i32
  }
  func.func @transform_6(%arg0: i32) -> (i32, i32) {
    %c0_i32 = arith.constant 0 : i32
    %c0_i32_0 = arith.constant 0 : i32
    %c0_i32_1 = arith.constant 0 : i32
    return %c0_i32, %c0_i32_0 : i32, i32
  }
  func.func @transform_7(%arg0: i32) -> (i32, i32, i32) {
    %c0_i32 = arith.constant 0 : i32
    %c0_i32_0 = arith.constant 0 : i32
    %c0_i32_1 = arith.constant 0 : i32
    %c0_i32_2 = arith.constant 0 : i32
    return %c0_i32, %c0_i32_0, %c0_i32_1 : i32, i32, i32
  }
  func.func @transform_8(%arg0: i32) -> (i32, i32) {
    %c0_i32 = arith.constant 0 : i32
    %c0_i32_0 = arith.constant 0 : i32
    %c0_i32_1 = arith.constant 0 : i32
    return %c0_i32, %c0_i32_0 : i32, i32
  }
  func.func @transform_9(%arg0: i32) -> (i32, i32) {
    %c0_i32 = arith.constant 0 : i32
    %c0_i32_0 = arith.constant 0 : i32
    %c0_i32_1 = arith.constant 0 : i32
    return %c0_i32, %c0_i32_0 : i32, i32
  }
  func.func @transform_10(%arg0: i32) -> (i32, i32) {
    %c0_i32 = arith.constant 0 : i32
    %c0_i32_0 = arith.constant 0 : i32
    %c0_i32_1 = arith.constant 0 : i32
    return %c0_i32, %c0_i32_0 : i32, i32
  }
  func.func @transform_11(%arg0: i32) -> (i32, i32) {
    %c0_i32 = arith.constant 0 : i32
    %c0_i32_0 = arith.constant 0 : i32
    %c0_i32_1 = arith.constant 0 : i32
    return %c0_i32, %c0_i32_0 : i32, i32
  }
  func.func @transform_12(%arg0: i32) -> (i32, i32) {
    %c0_i32 = arith.constant 0 : i32
    %c0_i32_0 = arith.constant 0 : i32
    return %arg0, %c0_i32 : i32, i32
  }
}

</mosaic_0001>

<bundles_post_ra>
// kernel: tpu_custom_call.1
= control target key start
LH: loop header
LB: loop body
LE: loop exit
PB: predicated region body
PF: predicated region fallthrough
CT: control target
= control target key end

     0   :  { %vm365_vm0 = vcmask 1043456   ;;  %vm268_vm1 = vcmask 64512   ;;  %s7390_s0 = inlined_call_operand.vmem [shape: bf16[4,128,8], index: 0, kind: input, shape index: {}]   ;;  %s7391_s1 = inlined_call_operand.vmem [shape: bf16[8,32], index: 1, kind: input, shape index: {}]   ;;  %s7392_s2 = inlined_call_operand.vmem [shape: f32[1,32], index: 2, kind: input, shape index: {}]   ;;  %s7393_s3 = inlined_call_operand.vmem [shape: f32[1,32], index: 3, kind: input, shape index: {}]   ;;  %s7394_s4 = inlined_call_operand.vmem [shape: bf16[3,32,64], index: 4, kind: input, shape index: {}]   ;;  %s7395_s5 = inlined_call_operand.vmem [shape: f32[1,64], index: 5, kind: input, shape index: {}]   ;;  %s7396_s6 = inlined_call_operand.vmem [shape: f32[1,64], index: 6, kind: input, shape index: {}]   ;;  %s7397_s7 = inlined_call_operand.vmem [shape: bf16[3,64,128], index: 7, kind: input, shape index: {}]   ;;  %s7398_s8 = inlined_call_operand.vmem [shape: f32[1,128], index: 8, kind: input, shape index: {}]   ;;  %s7399_s9 = inlined_call_operand.vmem [shape: f32[1,128], index: 9, kind: input, shape index: {}]   ;;  %s7400_s10 = inlined_call_operand.vmem [shape: bf16[128,5], index: 10, kind: input, shape index: {}]   ;;  %s7401_s11 = inlined_call_operand.vmem [shape: f32[1,5], index: 11, kind: input, shape index: {}]   ;;  %s7402_s12 = inlined_call_operand.hbm [shape: f32[4,5], index: 12, kind: output, shape index: {}]  }
   0x1   :  { %v107_v0 = vld [vmem:[%s7391_s1] sm:$0xf] }
   0x2   :  { %v5314_v1 = vld [vmem:[%s7390_s0] sm:$0xff]  ;;  %v367_v2 = vsel %vm365_vm0, %v107_v0, 0 }
   0x3   :  { %376 = vmatpush.bf16.msra.mxu0 %v367_v2  ;;  %5372 = vmatpush.bf16.msra.mxu3 %v367_v2 }
   0x4   :  { %17 = vsyncpa [#allocation3], 0  ;;  %v5315_v3 = vld [vmem:[%s7390_s0 + $0x8] sm:$0xff]  ;;  %v5316_v4 = vld [vmem:[%s7390_s0 + $0x10] sm:$0xff]  ;;  %vm962_vm2 = vsmask.f32 256 }
   0x5   :  { %v5317_v5 = vld [vmem:[%s7390_s0 + $0x18] sm:$0xff]  ;;  %v5318_v6 = vld [vmem:[%s7390_s0 + $0x20] sm:$0xff]  ;;  %v5319_v7 = vld [vmem:[%s7390_s0 + $0x28] sm:$0xff]  ;;  %vm1223_vm3 = vcmask 1040384   ;;  %vm1527_vm5 = vcmask 261120   ;;  %vm2046_vm6 = vcmask 1046528  }
   0x6   :  { %4962 = vmatmul.msk.bf16.vlgmr.msra.gmra.mxu0 %vm268_vm1, %v5314_v1  ;;  %v5320_v8 = vld [vmem:[%s7390_s0 + $0x30] sm:$0xff]  ;;  %v5321_v9 = vld [vmem:[%s7390_s0 + $0x38] sm:$0xff]  ;;  %v5525_v10 = vld [vmem:[%s7394_s4 + $0x8] sm:$0xff]  ;;  %vm1237_vm7 = vsmask.f32 7424  ;;  %vm3466_vm8 = vcmask 523264  }
   0x7   :  { %1875 = vmatpush.bf16.msra.mxu2 %v5525_v10  ;;  %v5531_v11 = vld [vmem:[%s7394_s4] sm:$0xff]  ;;  %v5349_v19 = vld [vmem:[%s7394_s4 + $0x18] sm:$0xff]  ;;  %v5348_v23 = vld [vmem:[%s7394_s4 + $0x10] sm:$0xff]  ;;  %vm4747_vm9 = vcmask 1041409   ;;  %vm4749_vm10 = vcmask 1042434   ;;  %vm4751_vm11 = vcmask 1043459  }
   0x8   :  { %v5537_v12 = vld [vmem:[%s7392_s2] ss:$0 sm:$0xff]  ;;  %1630 = vmatpush.bf16.msra.mxu1 %v5349_v19  ;;  %5373 = vmatpush.bf16.msrb.mxu3 %v5349_v19  ;;  %v5323_v27 = vld [vmem:[%s7390_s0 + $0x48] sm:$0xff]  ;;  %vm5565_vm4 = vmand %vm1223_vm3, %vm962_vm2  ;;  %s5421_s21 = smov [#allocation2]   ;;  %s4825_s25 = sshll.u32 %s7402_s12, 4  ;;  %vm4816_vm12 = vcmask 35840   ;;  %s4826_s25 = int_to_ptr.hbm [resolvable:$true] %s4825_s25 }
   0x9   :  { %v5322_v13 = vld [vmem:[%s7390_s0 + $0x40] sm:$0xff]  ;;  %v5324_v47 = vld [vmem:[%s7390_s0 + $0x50] sm:$0xff]  ;;  %s4823_s22 = sshll.u32 %s5421_s21, 4  ;;  %s4824_s22 = int_to_ptr.vmem [resolvable:$true] %s4823_s22 }
   0xa   :  { %v5546_v16 = vld [vmem:[%s7393_s3] ss:$0 sm:$0xff] }
   0xb   :  { %1876 = vmatpush.bf16.msra.mxu2 %v5531_v11 }
   0xc   :  { %1631 = vmatpush.bf16.msra.mxu1 %v5348_v23  ;;  %5374 = vmatpush.bf16.msrb.mxu3 %v5348_v23 }
  0x16   :  { %4963 = vmatmul.msk.bf16.gmra.mxu0 %vm268_vm1, %v5315_v3 }
  0x26   :  { %4964 = vmatmul.msk.bf16.gmra.mxu0 %vm268_vm1, %v5316_v4 }
  0x36   :  { %4965 = vmatmul.msk.bf16.gmra.mxu0 %vm268_vm1, %v5317_v5 }
  0x46   :  { %4966 = vmatmul.msk.bf16.gmra.mxu0 %vm268_vm1, %v5318_v6 }
  0x56   :  { %4967 = vmatmul.msk.bf16.gmra.mxu0 %vm268_vm1, %v5319_v7 }
  0x66   :  { %4968 = vmatmul.msk.bf16.gmra.mxu0 %vm268_vm1, %v5320_v8 }
  0x76   :  { %4969 = vmatmul.msk.bf16.gmra.mxu0 %vm268_vm1, %v5321_v9 }
  0x83   :  { %v378_v14 = vpop.f32.mrf.mxu0 }
  0x84   :  { %v542_v15 = vmul.f32 %v5537_v12, %v378_v14  ;;  %v5325_v14 = vld [vmem:[%s7390_s0 + $0x58] sm:$0xff] }
  0x86   :  { %4970 = vmatmul.msk.bf16.gmra.mxu0 %vm268_vm1, %v5322_v13  ;;  %v610_v17 = vadd.f32 %v5546_v16, %v542_v15 }
  0x88   :  { %v674_v20 = vmax.f32 %v610_v17, 0.0 }
  0x8a   :  { %v738_v24 = vpack.c.bf16 %v674_v20, %v674_v20 }
  0x8b   :  { %v380_v18 = vpop.f32.mrf.mxu0 }
  0x8c   :  { %v543_v21 = vmul.f32 %v5537_v12, %v380_v18  ;;  %v866_v29 = vunpack.c.l.b16 %v738_v24 }
  0x8e   :  { %v611_v22 = vadd.f32 %v5546_v16, %v543_v21 }
  0x90   :  { %v675_v25 = vmax.f32 %v611_v22, 0.0 }
  0x92   :  { %v739_v26 = vpack.c.bf16 %v675_v25, %v675_v25 }
  0x93   :  { %v383_v28 = vpop.f32.mrf.mxu0 }
  0x94   :  { %v867_v30 = vunpack.c.l.b16 %v739_v26  ;;  %v544_v31 = vmul.f32 %v5537_v12, %v383_v28 }
  0x96   :  { %v930_v32 = vpack.c.b16 %v867_v30, %v866_v29  ;;  %4971 = vmatmul.msk.bf16.gmra.mxu0 %vm268_vm1, %v5323_v27  ;;  %v612_v33 = vadd.f32 %v5546_v16, %v544_v31 }
  0x98   :  { %v964_v34 = vshrl.u32 %v930_v32, 16  ;;  %v967_v36 = vshll.u32 %v930_v32, 16  ;;  %v676_v39 = vmax.f32 %v612_v33, 0.0 }
  0x9a   :  { %v966_v35 = vrot.slane %v964_v34, 7  ;;  %v740_v44 = vpack.c.bf16 %v676_v39, %v676_v39 }
  0x9b   :  { %v385_v37 = vpop.f32.mrf.mxu0 }
  0x9c   :  { %v545_v40 = vmul.f32 %v5537_v12, %v385_v37  ;;  %v969_v41 = vor.u32 %v967_v36, %v966_v35  ;;  %v868_v49 = vunpack.c.l.b16 %v740_v44 }
  0x9e   :  { %v613_v42 = vadd.f32 %v5546_v16, %v545_v40  ;;  %v1225_v43 = vsel %vm5565_vm4, 0, %v969_v41 }
  0x9f   :  { %5046 = vmatmul.msk.bf16.vlgmr.msra.gmra.mxu2 %vm1527_vm5, %v1225_v43  ;;  %v1241_v55 = vshll.u32 %v1225_v43, 16  ;;  %v1239_v1 = vshrl.u32 %v1225_v43, 16  ;;  %v2047_v2 = vrot.slane %v1225_v43, 1 }
  0xa0   :  { %v677_v45 = vmax.f32 %v613_v42, 0.0  ;;  %v5326_v42 = vld [vmem:[%s7390_s0 + $0x60] sm:$0xff] }
  0xa1   :  { %v1243_v62 = vrot.slane %v1241_v55, 1 }
  0xa2   :  { %v741_v46 = vpack.c.bf16 %v677_v45, %v677_v45 }
  0xa3   :  { %v388_v48 = vpop.f32.mrf.mxu0  ;;  %v1244_v7 = vor.u32 %v1243_v62, %v1239_v1 }
  0xa4   :  { %v869_v50 = vunpack.c.l.b16 %v741_v46  ;;  %v546_v51 = vmul.f32 %v5537_v12, %v388_v48 }
  0xa6   :  { %v931_v52 = vpack.c.b16 %v869_v50, %v868_v49  ;;  %4972 = vmatmul.msk.bf16.gmra.mxu0 %vm268_vm1, %v5324_v47  ;;  %v614_v54 = vadd.f32 %v5546_v16, %v546_v51 }
  0xa8   :  { %v971_v53 = vshrl.u32 %v931_v52, 16  ;;  %v974_v57 = vshll.u32 %v931_v52, 16  ;;  %v678_v59 = vmax.f32 %v614_v54, 0.0 }
  0xaa   :  { %v973_v56 = vrot.slane %v971_v53, 7  ;;  %v742_v5 = vpack.c.bf16 %v678_v59, %v678_v59 }
  0xab   :  { %v390_v58 = vpop.f32.mrf.mxu0 }
  0xac   :  { %v547_v60 = vmul.f32 %v5537_v12, %v390_v58  ;;  %v976_v61 = vor.u32 %v974_v57, %v973_v56  ;;  %v870_v18 = vunpack.c.l.b16 %v742_v5 }
  0xae   :  { %v615_v63 = vadd.f32 %v5546_v16, %v547_v60  ;;  %v977_v0 = vsel %vm962_vm2, %v966_v35, %v976_v61 }
  0xaf   :  { %5047 = vmatmul.msk.bf16.gmra.mxu2 %vm1527_vm5, %v977_v0  ;;  %v2048_v3 = vrot.slane %v977_v0, 1  ;;  %v1246_v4 = vshll.u32 %v977_v0, 16  ;;  %v1250_v32 = vshrl.u32 %v977_v0, 16 }
  0xb0   :  { %v679_v6 = vmax.f32 %v615_v63, 0.0 }
  0xb1   :  { %v1248_v8 = vrot.slane %v1246_v4, 1  ;;  %v5585_v9 = vsel %vm2046_vm6, %v2047_v2, %v2048_v3  ;;  %v5327_v4 = vld [vmem:[%s7390_s0 + $0x68] sm:$0xff] }
  0xb2   :  { %v743_v13 = vpack.c.bf16 %v679_v6, %v679_v6 }
  0xb3   :  { %v393_v15 = vpop.f32.mrf.mxu0  ;;  %v1249_v17 = vsel %vm1237_vm7, %v1244_v7, %v1248_v8  ;;  %v1252_v37 = vor.u32 %v1250_v32, %v1248_v8 }
  0xb4   :  { %v871_v19 = vunpack.c.l.b16 %v743_v13  ;;  %v548_v20 = vmul.f32 %v5537_v12, %v393_v15  ;;  %5006 = vmatmul.msk.bf16.vlgmr.msra.gmra.mxu1 %vm1527_vm5, %v1249_v17 }
  0xb6   :  { %v932_v21 = vpack.c.b16 %v871_v19, %v870_v18  ;;  %4973 = vmatmul.msk.bf16.gmra.mxu0 %vm268_vm1, %v5325_v14  ;;  %v616_v23 = vadd.f32 %v5546_v16, %v548_v20 }
  0xb8   :  { %v979_v22 = vshrl.u32 %v932_v21, 16  ;;  %v982_v25 = vshll.u32 %v932_v21, 16  ;;  %v680_v27 = vmax.f32 %v616_v23, 0.0 }
  0xba   :  { %v981_v24 = vrot.slane %v979_v22, 7  ;;  %v744_v35 = vpack.c.bf16 %v680_v27, %v680_v27 }
  0xbb   :  { %v395_v26 = vpop.f32.mrf.mxu0 }
  0xbc   :  { %v549_v28 = vmul.f32 %v5537_v12, %v395_v26  ;;  %v984_v29 = vor.u32 %v982_v25, %v981_v24  ;;  %v872_v45 = vunpack.c.l.b16 %v744_v35  ;;  %v5328_v35 = vld [vmem:[%s7390_s0 + $0x70] sm:$0xff] }
  0xbe   :  { %v617_v30 = vadd.f32 %v5546_v16, %v549_v28  ;;  %v985_v31 = vsel %vm962_vm2, %v973_v56, %v984_v29 }
  0xbf   :  { %5048 = vmatmul.msk.bf16.gmra.mxu2 %vm1527_vm5, %v985_v31  ;;  %v2050_v33 = vrot.slane %v985_v31, 1  ;;  %v1254_v34 = vshll.u32 %v985_v31, 16  ;;  %v1258_v59 = vshrl.u32 %v985_v31, 16 }
  0xc0   :  { %v681_v36 = vmax.f32 %v617_v30, 0.0 }
  0xc1   :  { %v1256_v39 = vrot.slane %v1254_v34, 1  ;;  %v5600_v40 = vsel %vm2046_vm6, %v2048_v3, %v2050_v33 }
  0xc2   :  { %v745_v41 = vpack.c.bf16 %v681_v36, %v681_v36 }
  0xc3   :  { %v398_v43 = vpop.f32.mrf.mxu0  ;;  %v1257_v44 = vsel %vm1237_vm7, %v1252_v37, %v1256_v39  ;;  %v1260_v0 = vor.u32 %v1258_v59, %v1256_v39 }
  0xc4   :  { %v873_v46 = vunpack.c.l.b16 %v745_v41  ;;  %v550_v47 = vmul.f32 %v5537_v12, %v398_v43  ;;  %5007 = vmatmul.msk.bf16.gmra.mxu1 %vm1527_vm5, %v1257_v44 }
  0xc6   :  { %v933_v48 = vpack.c.b16 %v873_v46, %v872_v45  ;;  %4974 = vmatmul.msk.bf16.gmra.mxu0 %vm268_vm1, %v5326_v42  ;;  %v618_v50 = vadd.f32 %v5546_v16, %v550_v47 }
  0xc8   :  { %v987_v49 = vshrl.u32 %v933_v48, 16  ;;  %v990_v52 = vshll.u32 %v933_v48, 16  ;;  %v682_v54 = vmax.f32 %v618_v50, 0.0 }
  0xca   :  { %v989_v51 = vrot.slane %v987_v49, 7  ;;  %v746_v62 = vpack.c.bf16 %v682_v54, %v682_v54 }
  0xcb   :  { %v400_v53 = vpop.f32.mrf.mxu0 }
  0xcc   :  { %v551_v55 = vmul.f32 %v5537_v12, %v400_v53  ;;  %v992_v56 = vor.u32 %v990_v52, %v989_v51  ;;  %v874_v7 = vunpack.c.l.b16 %v746_v62 }
  0xce   :  { %v619_v57 = vadd.f32 %v5546_v16, %v551_v55  ;;  %v993_v58 = vsel %vm962_vm2, %v981_v24, %v992_v56 }
  0xcf   :  { %5049 = vmatmul.msk.bf16.gmra.mxu2 %vm1527_vm5, %v993_v58  ;;  %v2052_v60 = vrot.slane %v993_v58, 1  ;;  %v1262_v61 = vshll.u32 %v993_v58, 16  ;;  %v1266_v26 = vshrl.u32 %v993_v58, 16 }
  0xd0   :  { %v683_v63 = vmax.f32 %v619_v57, 0.0 }
  0xd1   :  { %v1264_v1 = vrot.slane %v1262_v61, 1  ;;  %v5615_v2 = vsel %vm2046_vm6, %v2050_v33, %v2052_v60 }
  0xd2   :  { %v747_v3 = vpack.c.bf16 %v683_v63, %v683_v63  ;;  %v5329_v63 = vld [vmem:[%s7390_s0 + $0x78] sm:$0xff] }
  0xd3   :  { %v403_v5 = vpop.f32.mrf.mxu0  ;;  %v1265_v6 = vsel %vm1237_vm7, %v1260_v0, %v1264_v1  ;;  %v1268_v31 = vor.u32 %v1266_v26, %v1264_v1 }
  0xd4   :  { %v875_v8 = vunpack.c.l.b16 %v747_v3  ;;  %v552_v13 = vmul.f32 %v5537_v12, %v403_v5  ;;  %5008 = vmatmul.msk.bf16.gmra.mxu1 %vm1527_vm5, %v1265_v6 }
  0xd6   :  { %v934_v14 = vpack.c.b16 %v875_v8, %v874_v7  ;;  %4975 = vmatmul.msk.bf16.gmra.mxu0 %vm268_vm1, %v5327_v4  ;;  %v620_v17 = vadd.f32 %v5546_v16, %v552_v13 }
  0xd8   :  { %v995_v15 = vshrl.u32 %v934_v14, 16  ;;  %v998_v19 = vshll.u32 %v934_v14, 16  ;;  %v684_v21 = vmax.f32 %v620_v17, 0.0 }
  0xda   :  { %v997_v18 = vrot.slane %v995_v15, 7  ;;  %v748_v29 = vpack.c.bf16 %v684_v21, %v684_v21 }
  0xdb   :  { %v405_v20 = vpop.f32.mrf.mxu0 }
  0xdc   :  { %v553_v22 = vmul.f32 %v5537_v12, %v405_v20  ;;  %v1000_v23 = vor.u32 %v998_v19, %v997_v18  ;;  %v876_v39 = vunpack.c.l.b16 %v748_v29 }
  0xde   :  { %v621_v24 = vadd.f32 %v5546_v16, %v553_v22  ;;  %v1001_v25 = vsel %vm962_vm2, %v989_v51, %v1000_v23 }
  0xdf   :  { %5050 = vmatmul.msk.bf16.gmra.mxu2 %vm1527_vm5, %v1001_v25  ;;  %v2054_v27 = vrot.slane %v1001_v25, 1  ;;  %v1270_v28 = vshll.u32 %v1001_v25, 16  ;;  %v1274_v54 = vshrl.u32 %v1001_v25, 16 }
  0xe0   :  { %v685_v30 = vmax.f32 %v621_v24, 0.0 }
  0xe1   :  { %v1272_v32 = vrot.slane %v1270_v28, 1  ;;  %v5630_v33 = vsel %vm2046_vm6, %v2052_v60, %v2054_v27 }
  0xe2   :  { %v749_v34 = vpack.c.bf16 %v685_v30, %v685_v30 }
  0xe3   :  { %v408_v36 = vpop.f32.mrf.mxu0  ;;  %v1273_v37 = vsel %vm1237_vm7, %v1268_v31, %v1272_v32  ;;  %v1276_v59 = vor.u32 %v1274_v54, %v1272_v32  ;;  %v5330_v31 = vld [vmem:[%s7390_s0 + $0x80] sm:$0xff] }
  0xe4   :  { %v877_v41 = vunpack.c.l.b16 %v749_v34  ;;  %v554_v42 = vmul.f32 %v5537_v12, %v408_v36  ;;  %5009 = vmatmul.msk.bf16.gmra.mxu1 %vm1527_vm5, %v1273_v37 }
  0xe6   :  { %v935_v43 = vpack.c.b16 %v877_v41, %v876_v39  ;;  %4976 = vmatmul.msk.bf16.gmra.mxu0 %vm268_vm1, %v5328_v35  ;;  %v622_v45 = vadd.f32 %v5546_v16, %v554_v42 }
  0xe8   :  { %v1003_v44 = vshrl.u32 %v935_v43, 16  ;;  %v1006_v47 = vshll.u32 %v935_v43, 16  ;;  %v686_v49 = vmax.f32 %v622_v45, 0.0 }
  0xea   :  { %v1005_v46 = vrot.slane %v1003_v44, 7  ;;  %v750_v57 = vpack.c.bf16 %v686_v49, %v686_v49 }
  0xeb   :  { %v410_v48 = vpop.f32.mrf.mxu0 }
  0xec   :  { %v555_v50 = vmul.f32 %v5537_v12, %v410_v48  ;;  %v1008_v51 = vor.u32 %v1006_v47, %v1005_v46  ;;  %v878_v3 = vunpack.c.l.b16 %v750_v57 }
  0xee   :  { %v623_v52 = vadd.f32 %v5546_v16, %v555_v50  ;;  %v1009_v53 = vsel %vm962_vm2, %v997_v18, %v1008_v51 }
  0xef   :  { %5051 = vmatmul.msk.bf16.gmra.mxu2 %vm1527_vm5, %v1009_v53  ;;  %v2056_v55 = vrot.slane %v1009_v53, 1  ;;  %v1278_v56 = vshll.u32 %v1009_v53, 16  ;;  %v1282_v22 = vshrl.u32 %v1009_v53, 16 }
  0xf0   :  { %v687_v58 = vmax.f32 %v623_v52, 0.0 }
  0xf1   :  { %v1280_v60 = vrot.slane %v1278_v56, 1  ;;  %v5645_v61 = vsel %vm2046_vm6, %v2054_v27, %v2056_v55 }
  0xf2   :  { %v751_v62 = vpack.c.bf16 %v687_v58, %v687_v58 }
  0xf3   :  { %v413_v0 = vpop.f32.mrf.mxu0  ;;  %v1281_v1 = vsel %vm1237_vm7, %v1276_v59, %v1280_v60  ;;  %v1284_v27 = vor.u32 %v1282_v22, %v1280_v60 }
  0xf4   :  { %v879_v4 = vunpack.c.l.b16 %v751_v62  ;;  %v556_v5 = vmul.f32 %v5537_v12, %v413_v0  ;;  %5010 = vmatmul.msk.bf16.gmra.mxu1 %vm1527_vm5, %v1281_v1  ;;  %v5331_v0 = vld [vmem:[%s7390_s0 + $0x88] sm:$0xff] }
  0xf6   :  { %v936_v6 = vpack.c.b16 %v879_v4, %v878_v3  ;;  %4977 = vmatmul.msk.bf16.gmra.mxu0 %vm268_vm1, %v5329_v63  ;;  %v624_v8 = vadd.f32 %v5546_v16, %v556_v5 }
  0xf8   :  { %v1011_v7 = vshrl.u32 %v936_v6, 16  ;;  %v1014_v14 = vshll.u32 %v936_v6, 16  ;;  %v688_v17 = vmax.f32 %v624_v8, 0.0 }
  0xfa   :  { %v1013_v13 = vrot.slane %v1011_v7, 7  ;;  %v752_v25 = vpack.c.bf16 %v688_v17, %v688_v17 }
  0xfb   :  { %v415_v15 = vpop.f32.mrf.mxu0 }
  0xfc   :  { %v557_v18 = vmul.f32 %v5537_v12, %v415_v15  ;;  %v1016_v19 = vor.u32 %v1014_v14, %v1013_v13  ;;  %v880_v35 = vunpack.c.l.b16 %v752_v25 }
  0xfe   :  { %v625_v20 = vadd.f32 %v5546_v16, %v557_v18  ;;  %v1017_v21 = vsel %vm962_vm2, %v1005_v46, %v1016_v19 }
  0xff   :  { %5052 = vmatmul.msk.bf16.gmra.mxu2 %vm1527_vm5, %v1017_v21  ;;  %v2058_v23 = vrot.slane %v1017_v21, 1  ;;  %v1286_v24 = vshll.u32 %v1017_v21, 16  ;;  %v1290_v52 = vshrl.u32 %v1017_v21, 16 }
 0x100   :  { %v689_v26 = vmax.f32 %v625_v20, 0.0 }
 0x101   :  { %v1288_v28 = vrot.slane %v1286_v24, 1  ;;  %v5660_v29 = vsel %vm2046_vm6, %v2056_v55, %v2058_v23 }
 0x102   :  { %v753_v30 = vpack.c.bf16 %v689_v26, %v689_v26 }
 0x103   :  { %v418_v32 = vpop.f32.mrf.mxu0  ;;  %v1289_v34 = vsel %vm1237_vm7, %v1284_v27, %v1288_v28  ;;  %v1292_v58 = vor.u32 %v1290_v52, %v1288_v28 }
 0x104   :  { %v881_v36 = vunpack.c.l.b16 %v753_v30  ;;  %v558_v37 = vmul.f32 %v5537_v12, %v418_v32  ;;  %5011 = vmatmul.msk.bf16.gmra.mxu1 %vm1527_vm5, %v1289_v34  ;;  %v5332_v32 = vld [vmem:[%s7390_s0 + $0x90] sm:$0xff] }
 0x106   :  { %v937_v39 = vpack.c.b16 %v881_v36, %v880_v35  ;;  %4978 = vmatmul.msk.bf16.gmra.mxu0 %vm268_vm1, %v5330_v31  ;;  %v626_v42 = vadd.f32 %v5546_v16, %v558_v37 }
 0x108   :  { %v1019_v41 = vshrl.u32 %v937_v39, 16  ;;  %v1022_v44 = vshll.u32 %v937_v39, 16  ;;  %v690_v46 = vmax.f32 %v626_v42, 0.0 }
 0x10a   :  { %v1021_v43 = vrot.slane %v1019_v41, 7  ;;  %v754_v56 = vpack.c.bf16 %v690_v46, %v690_v46  ;;  %v5339_v41 = vld [vmem:[%s7390_s0 + $0xc8] sm:$0xff] }
 0x10b   :  { %v420_v45 = vpop.f32.mrf.mxu0  ;;  %4987 = vmatmul.msk.bf16.vlgmr.msra.gmra.mxu3 %vm268_vm1, %v5339_v41 }
 0x10c   :  { %v559_v47 = vmul.f32 %v5537_v12, %v420_v45  ;;  %v1024_v48 = vor.u32 %v1022_v44, %v1021_v43  ;;  %v1229_v49 = vsel %vm5565_vm4, %v1021_v43, 0  ;;  %v882_v4 = vunpack.c.l.b16 %v754_v56  ;;  %5375 = vmatpush.bf16.msra.mxu3 %v5525_v10 }
 0x10d   :  { %v2062_v55 = vrot.slane %v1229_v49, 1  ;;  %v1302_v22 = vshll.u32 %v1229_v49, 16 }
 0x10e   :  { %v627_v50 = vadd.f32 %v5546_v16, %v559_v47  ;;  %v1025_v51 = vsel %vm962_vm2, %v1013_v13, %v1024_v48 }
 0x10f   :  { %5053 = vmatmul.msk.bf16.gmra.mxu2 %vm1527_vm5, %v1025_v51  ;;  %v2060_v53 = vrot.slane %v1025_v51, 1  ;;  %v1294_v54 = vshll.u32 %v1025_v51, 16  ;;  %v1298_v21 = vshrl.u32 %v1025_v51, 16  ;;  %v1304_v28 = vrot.slane %v1302_v22, 1 }
 0x110   :  { %v691_v57 = vmax.f32 %v627_v50, 0.0  ;;  %5376 = vmatpush.bf16.msra.mxu3 %v5531_v11 }
 0x111   :  { %v1296_v59 = vrot.slane %v1294_v54, 1  ;;  %v5677_v60 = vsel %vm2046_vm6, %v2058_v23, %v2060_v53  ;;  %v5680_v62 = vsel %vm2046_vm6, %v2060_v53, %v2062_v55 }
 0x112   :  { %v755_v63 = vpack.c.bf16 %v691_v57, %v691_v57 }
 0x113   :  { %v423_v1 = vpop.f32.mrf.mxu0  ;;  %v1297_v3 = vsel %vm1237_vm7, %v1292_v58, %v1296_v59  ;;  %v1300_v25 = vor.u32 %v1298_v21, %v1296_v59 }
 0x114   :  { %v883_v5 = vunpack.c.l.b16 %v755_v63  ;;  %v560_v6 = vmul.f32 %v5537_v12, %v423_v1  ;;  %5012 = vmatmul.msk.bf16.gmra.mxu1 %vm1527_vm5, %v1297_v3 }
 0x115   :  { %v1305_v35 = vsel %vm1237_vm7, %v1300_v25, %v1304_v28 }
 0x116   :  { %v938_v7 = vpack.c.b16 %v883_v5, %v882_v4  ;;  %4979 = vmatmul.msk.bf16.gmra.mxu0 %vm268_vm1, %v5331_v0  ;;  %v628_v8 = vadd.f32 %v5546_v16, %v560_v6 }
 0x118   :  { %v1027_v13 = vshrl.u32 %v938_v7, 16  ;;  %v1030_v15 = vshll.u32 %v938_v7, 16  ;;  %v692_v18 = vmax.f32 %v628_v8, 0.0  ;;  %v5333_v7 = vld [vmem:[%s7390_s0 + $0x98] sm:$0xff] }
 0x11a   :  { %v1029_v14 = vrot.slane %v1027_v13, 7  ;;  %v756_v26 = vpack.c.bf16 %v692_v18, %v692_v18  ;;  %v5340_v18 = vld [vmem:[%s7390_s0 + $0xd0] sm:$0xff] }
 0x11b   :  { %v425_v17 = vpop.f32.mrf.mxu0  ;;  %4988 = vmatmul.msk.bf16.gmra.mxu3 %vm268_vm1, %v5340_v18 }
 0x11c   :  { %v561_v19 = vmul.f32 %v5537_v12, %v425_v17  ;;  %v1032_v20 = vor.u32 %v1030_v15, %v1029_v14  ;;  %v884_v36 = vunpack.c.l.b16 %v756_v26 }
 0x11e   :  { %v629_v23 = vadd.f32 %v5546_v16, %v561_v19  ;;  %v1226_v24 = vsel %vm5565_vm4, 0, %v1032_v20 }
 0x11f   :  { %5054 = vmatmul.msk.bf16.gmra.mxu2 %vm1527_vm5, %v1226_v24  ;;  %v1309_v45 = vshll.u32 %v1226_v24, 16  ;;  %v1307_v10 = vshrl.u32 %v1226_v24, 16  ;;  %v2064_v56 = vrot.slane %v1226_v24, 1 }
 0x120   :  { %v693_v27 = vmax.f32 %v629_v23, 0.0 }
 0x121   :  { %v1311_v53 = vrot.slane %v1309_v45, 1 }
 0x122   :  { %v757_v30 = vpack.c.bf16 %v693_v27, %v693_v27  ;;  %v1878_v31 = vpop.f32.mrf.mxu2 }
 0x123   :  { %v428_v34 = vpop.f32.mrf.mxu0  ;;  %v1312_v1 = vor.u32 %v1311_v53, %v1307_v10 }
 0x124   :  { %v885_v37 = vunpack.c.l.b16 %v757_v30  ;;  %v562_v39 = vmul.f32 %v5537_v12, %v428_v34  ;;  %5013 = vmatmul.msk.bf16.gmra.mxu1 %vm1527_vm5, %v1305_v35 }
 0x126   :  { %v939_v42 = vpack.c.b16 %v885_v37, %v884_v36  ;;  %4980 = vmatmul.msk.bf16.gmra.mxu0 %vm268_vm1, %v5332_v32  ;;  %v630_v44 = vadd.f32 %v5546_v16, %v562_v39 }
 0x128   :  { %v1034_v43 = vshrl.u32 %v939_v42, 16  ;;  %v1037_v47 = vshll.u32 %v939_v42, 16  ;;  %v694_v50 = vmax.f32 %v630_v44, 0.0 }
 0x12a   :  { %v1036_v46 = vrot.slane %v1034_v43, 7  ;;  %v1880_v48 = vpop.f32.mrf.mxu2  ;;  %v758_v59 = vpack.c.bf16 %v694_v50, %v694_v50 }
 0x12b   :  { %v430_v49 = vpop.f32.mrf.mxu0 }
 0x12c   :  { %v563_v51 = vmul.f32 %v5537_v12, %v430_v49  ;;  %v1039_v52 = vor.u32 %v1037_v47, %v1036_v46 }
 0x12e   :  { %v631_v54 = vadd.f32 %v5546_v16, %v563_v51  ;;  %v1040_v55 = vsel %vm962_vm2, %v1029_v14, %v1039_v52  ;;  %v886_v14 = vunpack.c.l.b16 %v758_v59 }
 0x12f   :  { %5055 = vmatmul.msk.bf16.gmra.mxu2 %vm1527_vm5, %v1040_v55  ;;  %v2065_v57 = vrot.slane %v1040_v55, 1  ;;  %v1314_v58 = vshll.u32 %v1040_v55, 16  ;;  %v1318_v35 = vshrl.u32 %v1040_v55, 16  ;;  %v5341_v55 = vld [vmem:[%s7390_s0 + $0xd8] sm:$0xff] }
 0x130   :  { %v695_v63 = vmax.f32 %v631_v54, 0.0  ;;  %4989 = vmatmul.msk.bf16.gmra.mxu3 %vm268_vm1, %v5341_v55 }
 0x131   :  { %v1633_v0 = vpop.f32.mrf.mxu1  ;;  %v1316_v11 = vrot.slane %v1314_v58, 1  ;;  %v5714_v3 = vsel %vm2046_vm6, %v2064_v56, %v2065_v57 }
 0x132   :  { %v759_v4 = vpack.c.bf16 %v695_v63, %v695_v63  ;;  %v5716_v5 = vadd.f32 %v1878_v31, %v1633_v0  ;;  %v1883_v6 = vpop.f32.mrf.mxu2 }
 0x133   :  { %v433_v8 = vpop.f32.mrf.mxu0  ;;  %v1317_v13 = vsel %vm1237_vm7, %v1312_v1, %v1316_v11  ;;  %v1320_v43 = vor.u32 %v1318_v35, %v1316_v11 }
 0x134   :  { %v887_v15 = vunpack.c.l.b16 %v759_v4  ;;  %v564_v17 = vmul.f32 %v5537_v12, %v433_v8  ;;  %5014 = vmatmul.msk.bf16.gmra.mxu1 %vm1527_vm5, %v1317_v13 }
 0x136   :  { %v940_v19 = vpack.c.b16 %v887_v15, %v886_v14  ;;  %4981 = vmatmul.msk.bf16.gmra.mxu0 %vm268_vm1, %v5333_v7  ;;  %v632_v21 = vadd.f32 %v5546_v16, %v564_v17 }
 0x138   :  { %v1042_v20 = vshrl.u32 %v940_v19, 16  ;;  %v1045_v24 = vshll.u32 %v940_v19, 16  ;;  %v696_v28 = vmax.f32 %v632_v21, 0.0 }
 0x139   :  { %v1635_v22 = vpop.f32.mrf.mxu1 }
 0x13a   :  { %v1044_v23 = vrot.slane %v1042_v20, 7  ;;  %v5730_v25 = vadd.f32 %v1880_v48, %v1635_v22  ;;  %v1885_v26 = vpop.f32.mrf.mxu2  ;;  %v760_v39 = vpack.c.bf16 %v696_v28, %v696_v28 }
 0x13b   :  { %v435_v27 = vpop.f32.mrf.mxu0 }
 0x13c   :  { %v565_v30 = vmul.f32 %v5537_v12, %v435_v27  ;;  %v1047_v31 = vor.u32 %v1045_v24, %v1044_v23  ;;  %v888_v52 = vunpack.c.l.b16 %v760_v39 }
 0x13e   :  { %v633_v32 = vadd.f32 %v5546_v16, %v565_v30  ;;  %v1048_v34 = vsel %vm962_vm2, %v1036_v46, %v1047_v31  ;;  %v5334_v46 = vld [vmem:[%s7390_s0 + $0xa0] sm:$0xff] }
 0x13f   :  { %5056 = vmatmul.msk.bf16.gmra.mxu2 %vm1527_vm5, %v1048_v34  ;;  %v2067_v36 = vrot.slane %v1048_v34, 1  ;;  %v1322_v37 = vshll.u32 %v1048_v34, 16  ;;  %v1326_v14 = vshrl.u32 %v1048_v34, 16 }
 0x140   :  { %v697_v41 = vmax.f32 %v633_v32, 0.0 }
 0x141   :  { %v1638_v42 = vpop.f32.mrf.mxu1  ;;  %v1324_v44 = vrot.slane %v1322_v37, 1  ;;  %v5737_v45 = vsel %vm2046_vm6, %v2065_v57, %v2067_v36 }
 0x142   :  { %v761_v47 = vpack.c.bf16 %v697_v41, %v697_v41  ;;  %v5739_v48 = vadd.f32 %v1883_v6, %v1638_v42  ;;  %v1888_v49 = vpop.f32.mrf.mxu2 }
 0x143   :  { %v438_v50 = vpop.f32.mrf.mxu0  ;;  %v1325_v51 = vsel %vm1237_vm7, %v1320_v43, %v1324_v44  ;;  %v1328_v21 = vor.u32 %v1326_v14, %v1324_v44 }
 0x144   :  { %v889_v53 = vunpack.c.l.b16 %v761_v47  ;;  %v566_v54 = vmul.f32 %v5537_v12, %v438_v50  ;;  %5015 = vmatmul.msk.bf16.gmra.mxu1 %vm1527_vm5, %v1325_v51 }
 0x146   :  { %v941_v10 = vpack.c.b16 %v889_v53, %v888_v52  ;;  %4982 = vmatmul.msk.bf16.gmra.mxu0 %vm268_vm1, %v5334_v46  ;;  %v634_v57 = vadd.f32 %v5546_v16, %v566_v54 }
 0x148   :  { %v1050_v56 = vshrl.u32 %v941_v10, 16  ;;  %v1053_v63 = vshll.u32 %v941_v10, 16  ;;  %v698_v4 = vmax.f32 %v634_v57, 0.0 }
 0x149   :  { %v1640_v58 = vpop.f32.mrf.mxu1 }
 0x14a   :  { %v1052_v59 = vrot.slane %v1050_v56, 7  ;;  %v5753_v0 = vadd.f32 %v1885_v26, %v1640_v58  ;;  %v1890_v1 = vpop.f32.mrf.mxu2  ;;  %v762_v18 = vpack.c.bf16 %v698_v4, %v698_v4 }
 0x14b   :  { %v440_v11 = vpop.f32.mrf.mxu0 }
 0x14c   :  { %v567_v6 = vmul.f32 %v5537_v12, %v440_v11  ;;  %v1055_v7 = vor.u32 %v1053_v63, %v1052_v59  ;;  %v890_v32 = vunpack.c.l.b16 %v762_v18 }
 0x14e   :  { %v635_v8 = vadd.f32 %v5546_v16, %v567_v6  ;;  %v1056_v13 = vsel %vm962_vm2, %v1044_v23, %v1055_v7  ;;  %v5335_v23 = vld [vmem:[%s7390_s0 + $0xa8] sm:$0xff] }
 0x14f   :  { %5057 = vmatmul.msk.bf16.gmra.mxu2 %vm1527_vm5, %v1056_v13  ;;  %v2069_v15 = vrot.slane %v1056_v13, 1  ;;  %v1330_v17 = vshll.u32 %v1056_v13, 16  ;;  %v1334_v55 = vshrl.u32 %v1056_v13, 16 }
 0x150   :  { %v699_v19 = vmax.f32 %v635_v8, 0.0 }
 0x151   :  { %v1643_v20 = vpop.f32.mrf.mxu1  ;;  %v1332_v22 = vrot.slane %v1330_v17, 1  ;;  %v5760_v24 = vsel %vm2046_vm6, %v2067_v36, %v2069_v15  ;;  %v5342_v36 = vld [vmem:[%s7390_s0 + $0xe0] sm:$0xff] }
 0x152   :  { %v763_v26 = vpack.c.bf16 %v699_v19, %v699_v19  ;;  %v5762_v27 = vadd.f32 %v1888_v49, %v1643_v20  ;;  %v1893_v28 = vpop.f32.mrf.mxu2  ;;  %4990 = vmatmul.msk.bf16.gmra.mxu3 %vm268_vm1, %v5342_v36 }
 0x153   :  { %v443_v30 = vpop.f32.mrf.mxu0  ;;  %v1333_v31 = vsel %vm1237_vm7, %v1328_v21, %v1332_v22 }
 0x154   :  { %v891_v34 = vunpack.c.l.b16 %v763_v26  ;;  %v568_v35 = vmul.f32 %v5537_v12, %v443_v30  ;;  %5016 = vmatmul.msk.bf16.gmra.mxu1 %vm1527_vm5, %v1333_v31 }
 0x156   :  { %v942_v37 = vpack.c.b16 %v891_v34, %v890_v32  ;;  %4983 = vmatmul.msk.bf16.gmra.mxu0 %vm268_vm1, %v5335_v23  ;;  %v636_v41 = vadd.f32 %v5546_v16, %v568_v35 }
 0x158   :  { %v1058_v39 = vshrl.u32 %v942_v37, 16  ;;  %v1061_v44 = vshll.u32 %v942_v37, 16  ;;  %v700_v50 = vmax.f32 %v636_v41, 0.0 }
 0x159   :  { %v1645_v42 = vpop.f32.mrf.mxu1 }
 0x15a   :  { %v1060_v43 = vrot.slane %v1058_v39, 7  ;;  %v5776_v47 = vadd.f32 %v1890_v1, %v1645_v42  ;;  %v1895_v49 = vpop.f32.mrf.mxu2  ;;  %v764_v57 = vpack.c.bf16 %v700_v50, %v700_v50  ;;  %v1336_v1 = vor.u32 %v1334_v55, %v1332_v22 }
 0x15b   :  { %v445_v46 = vpop.f32.mrf.mxu0 }
 0x15c   :  { %v569_v51 = vmul.f32 %v5537_v12, %v445_v46  ;;  %v1063_v52 = vor.u32 %v1061_v44, %v1060_v43  ;;  %v892_v17 = vunpack.c.l.b16 %v764_v57 }
 0x15e   :  { %v637_v53 = vadd.f32 %v5546_v16, %v569_v51  ;;  %v1064_v54 = vsel %vm962_vm2, %v1052_v59, %v1063_v52  ;;  %v5336_v59 = vld [vmem:[%s7390_s0 + $0xb0] sm:$0xff] }
 0x15f   :  { %5058 = vmatmul.msk.bf16.gmra.mxu2 %vm1527_vm5, %v1064_v54  ;;  %v2071_v10 = vrot.slane %v1064_v54, 1  ;;  %v1338_v56 = vshll.u32 %v1064_v54, 16  ;;  %v1342_v41 = vshrl.u32 %v1064_v54, 16 }
 0x160   :  { %v701_v58 = vmax.f32 %v637_v53, 0.0 }
 0x161   :  { %v1648_v63 = vpop.f32.mrf.mxu1  ;;  %v1340_v11 = vrot.slane %v1338_v56, 1  ;;  %v5783_v4 = vsel %vm2046_vm6, %v2069_v15, %v2071_v10  ;;  %v5343_v15 = vld [vmem:[%s7390_s0 + $0xe8] sm:$0xff] }
 0x162   :  { %v765_v6 = vpack.c.bf16 %v701_v58, %v701_v58  ;;  %v5785_v7 = vadd.f32 %v1893_v28, %v1648_v63  ;;  %v1898_v8 = vpop.f32.mrf.mxu2  ;;  %4991 = vmatmul.msk.bf16.gmra.mxu3 %vm268_vm1, %v5343_v15 }
 0x163   :  { %v448_v13 = vpop.f32.mrf.mxu0  ;;  %v1341_v14 = vsel %vm1237_vm7, %v1336_v1, %v1340_v11 }
 0x164   :  { %v893_v18 = vunpack.c.l.b16 %v765_v6  ;;  %v570_v19 = vmul.f32 %v5537_v12, %v448_v13  ;;  %5017 = vmatmul.msk.bf16.gmra.mxu1 %vm1527_vm5, %v1341_v14 }
 0x166   :  { %v943_v20 = vpack.c.b16 %v893_v18, %v892_v17  ;;  %4984 = vmatmul.msk.bf16.gmra.mxu0 %vm268_vm1, %v5336_v59  ;;  %v638_v22 = vadd.f32 %v5546_v16, %v570_v19 }
 0x168   :  { %v1066_v21 = vshrl.u32 %v943_v20, 16  ;;  %v1069_v23 = vshll.u32 %v943_v20, 16  ;;  %v702_v34 = vmax.f32 %v638_v22, 0.0 }
 0x169   :  { %v1650_v26 = vpop.f32.mrf.mxu1 }
 0x16a   :  { %v1068_v28 = vrot.slane %v1066_v21, 7  ;;  %v5799_v30 = vadd.f32 %v1895_v49, %v1650_v26  ;;  %v1900_v31 = vpop.f32.mrf.mxu2  ;;  %v766_v46 = vpack.c.bf16 %v702_v34, %v702_v34  ;;  %v1344_v49 = vor.u32 %v1342_v41, %v1340_v11 }
 0x16b   :  { %v450_v32 = vpop.f32.mrf.mxu0 }
 0x16c   :  { %v571_v35 = vmul.f32 %v5537_v12, %v450_v32  ;;  %v1071_v36 = vor.u32 %v1069_v23, %v1068_v28  ;;  %v894_v63 = vunpack.c.l.b16 %v766_v46 }
 0x16e   :  { %v639_v37 = vadd.f32 %v5546_v16, %v571_v35  ;;  %v1072_v39 = vsel %vm962_vm2, %v1060_v43, %v1071_v36  ;;  %v5337_v43 = vld [vmem:[%s7390_s0 + $0xb8] sm:$0xff] }
 0x16f   :  { %v1346_v42 = vshll.u32 %v1072_v39, 16  ;;  %5059 = vmatmul.msk.bf16.gmra.mxu2 %vm1527_vm5, %v1072_v39  ;;  %v2073_v44 = vrot.slane %v1072_v39, 1  ;;  %v1350_v32 = vshrl.u32 %v1072_v39, 16 }
 0x170   :  { %v703_v50 = vmax.f32 %v639_v37, 0.0 }
 0x171   :  { %v1653_v51 = vpop.f32.mrf.mxu1  ;;  %v1348_v52 = vrot.slane %v1346_v42, 1  ;;  %v5806_v53 = vsel %vm2046_vm6, %v2071_v10, %v2073_v44  ;;  %v5344_v10 = vld [vmem:[%s7390_s0 + $0xf0] sm:$0xff] }
 0x172   :  { %v767_v55 = vpack.c.bf16 %v703_v50, %v703_v50  ;;  %v5808_v56 = vadd.f32 %v1898_v8, %v1653_v51  ;;  %v1903_v57 = vpop.f32.mrf.mxu2  ;;  %4992 = vmatmul.msk.bf16.gmra.mxu3 %vm268_vm1, %v5344_v10 }
 0x173   :  { %v453_v54 = vpop.f32.mrf.mxu0  ;;  %v1349_v58 = vsel %vm1237_vm7, %v1344_v49, %v1348_v52 }
 0x174   :  { %v895_v1 = vunpack.c.l.b16 %v767_v55  ;;  %v572_v6 = vmul.f32 %v5537_v12, %v453_v54  ;;  %5018 = vmatmul.msk.bf16.gmra.mxu1 %vm1527_vm5, %v1349_v58  ;;  %v5852_v58 = vld [vmem:[%s7393_s3] ss:$0 sm:$0xff] }
 0x176   :  { %v944_v11 = vpack.c.b16 %v895_v1, %v894_v63  ;;  %4985 = vmatmul.msk.bf16.gmra.mxu0 %vm268_vm1, %v5337_v43  ;;  %v640_v59 = vadd.f32 %v5546_v16, %v572_v6 }
 0x178   :  { %v1074_v8 = vshrl.u32 %v944_v11, 16  ;;  %v1077_v17 = vshll.u32 %v944_v11, 16  ;;  %v704_v20 = vmax.f32 %v640_v59, 0.0 }
 0x179   :  { %v1655_v13 = vpop.f32.mrf.mxu1 }
 0x17a   :  { %v1076_v14 = vrot.slane %v1074_v8, 7  ;;  %v5822_v18 = vadd.f32 %v1900_v31, %v1655_v13  ;;  %v1905_v19 = vpop.f32.mrf.mxu2  ;;  %v768_v36 = vpack.c.bf16 %v704_v20, %v704_v20  ;;  %v1352_v31 = vor.u32 %v1350_v32, %v1348_v52  ;;  %v5840_v52 = vld [vmem:[%s7392_s2] ss:$0 sm:$0xff] }
 0x17b   :  { %v455_v15 = vpop.f32.mrf.mxu0 }
 0x17c   :  { %v573_v21 = vmul.f32 %v5537_v12, %v455_v15  ;;  %v1079_v22 = vor.u32 %v1077_v17, %v1076_v14  ;;  %v896_v49 = vunpack.c.l.b16 %v768_v36 }
 0x17e   :  { %v641_v26 = vadd.f32 %v5546_v16, %v573_v21  ;;  %v1080_v23 = vsel %vm962_vm2, %v1068_v28, %v1079_v22  ;;  %v5338_v16 = vld [vmem:[%s7390_s0 + $0xc0] sm:$0xff] }
 0x17f   :  { %v1354_v34 = vshll.u32 %v1080_v23, 16  ;;  %5060 = vmatmul.msk.bf16.gmra.mxu2 %vm1527_vm5, %v1080_v23  ;;  %v2075_v35 = vrot.slane %v1080_v23, 1 }
 0x180   :  { %v705_v37 = vmax.f32 %v641_v26, 0.0  ;;  %v1358_v26 = vshrl.u32 %v1080_v23, 16 }
 0x181   :  { %v1658_v41 = vpop.f32.mrf.mxu1  ;;  %v1356_v42 = vrot.slane %v1354_v34, 1  ;;  %v5829_v46 = vsel %vm2046_vm6, %v2073_v44, %v2075_v35 }
 0x182   :  { %v769_v50 = vpack.c.bf16 %v705_v37, %v705_v37  ;;  %v5831_v12 = vadd.f32 %v1903_v57, %v1658_v41  ;;  %v1908_v51 = vpop.f32.mrf.mxu2  ;;  %v5345_v57 = vld [vmem:[%s7390_s0 + $0xf8] sm:$0xff] }
 0x183   :  { %v458_v28 = vpop.f32.mrf.mxu0  ;;  %v1357_v39 = vsel %vm1237_vm7, %v1352_v31, %v1356_v42  ;;  %4993 = vmatmul.msk.bf16.gmra.mxu3 %vm268_vm1, %v5345_v57  ;;  %v1360_v31 = vor.u32 %v1358_v26, %v1356_v42 }
 0x184   :  { %v897_v55 = vunpack.c.l.b16 %v769_v50  ;;  %v574_v44 = vmul.f32 %v5840_v52, %v458_v28  ;;  %5019 = vmatmul.msk.bf16.gmra.mxu1 %vm1527_vm5, %v1357_v39 }
 0x186   :  { %v945_v43 = vpack.c.b16 %v897_v55, %v896_v49  ;;  %4986 = vmatmul.msk.bf16.gmra.mxu0 %vm268_vm1, %v5338_v16  ;;  %v642_v63 = vadd.f32 %v5852_v58, %v574_v44 }
 0x188   :  { %v1082_v54 = vshrl.u32 %v945_v43, 16  ;;  %v1085_v10 = vshll.u32 %v945_v43, 16  ;;  %v706_v13 = vmax.f32 %v642_v63, 0.0 }
 0x189   :  { %v1660_v1 = vpop.f32.mrf.mxu1 }
 0x18a   :  { %v1084_v6 = vrot.slane %v1082_v54, 7  ;;  %v5855_v11 = vadd.f32 %v1905_v19, %v1660_v1  ;;  %v1910_v8 = vpop.f32.mrf.mxu2  ;;  %v770_v36 = vpack.c.bf16 %v706_v13, %v706_v13 }
 0x18b   :  { %v460_v59 = vpop.f32.mrf.mxu0 }
 0x18c   :  { %v575_v17 = vmul.f32 %v5840_v52, %v460_v59  ;;  %v1087_v15 = vor.u32 %v1085_v10, %v1084_v6  ;;  %v1230_v20 = vsel %vm5565_vm4, %v1084_v6, 0  ;;  %v898_v44 = vunpack.c.l.b16 %v770_v36 }
 0x18d   :  { %v2079_v19 = vrot.slane %v1230_v20, 1  ;;  %v1370_v26 = vshll.u32 %v1230_v20, 16 }
 0x18e   :  { %v643_v21 = vadd.f32 %v5852_v58, %v575_v17  ;;  %v1088_v22 = vsel %vm962_vm2, %v1076_v14, %v1087_v15 }
 0x18f   :  { %v1362_v32 = vshll.u32 %v1088_v22, 16  ;;  %5061 = vmatmul.msk.bf16.gmra.mxu2 %vm1527_vm5, %v1088_v22  ;;  %v2077_v34 = vrot.slane %v1088_v22, 1 }
 0x190   :  { %v707_v37 = vmax.f32 %v643_v21, 0.0  ;;  %v1366_v21 = vshrl.u32 %v1088_v22, 16 }
 0x191   :  { %v1663_v41 = vpop.f32.mrf.mxu1  ;;  %v1364_v50 = vrot.slane %v1362_v32, 1  ;;  %v5864_v16 = vsel %vm2046_vm6, %v2075_v35, %v2077_v34  ;;  %v5867_v28 = vsel %vm2046_vm6, %v2077_v34, %v2079_v19 }
 0x192   :  { %7408 = vst [vmem:[#allocation5_spill] sm:$0xff] %v5867_v28  ;;  %v771_v39 = vpack.c.bf16 %v707_v37, %v707_v37  ;;  %v5869_v49 = vadd.f32 %v1908_v51, %v1663_v41  ;;  %v1913_v14 = vpop.f32.mrf.mxu2  ;;  %v1372_v41 = vrot.slane %v1370_v26, 1 }
 0x193   :  { %v463_v23 = vpop.f32.mrf.mxu0  ;;  %v1365_v55 = vsel %vm1237_vm7, %v1360_v31, %v1364_v50  ;;  %v1368_v19 = vor.u32 %v1366_v21, %v1364_v50 }
 0x194   :  { %v899_v57 = vunpack.c.l.b16 %v771_v39  ;;  %v576_v43 = vmul.f32 %v5840_v52, %v463_v23  ;;  %5020 = vmatmul.msk.bf16.gmra.mxu1 %vm1527_vm5, %v1365_v55 }
 0x195   :  { %v1373_v22 = vsel %vm1237_vm7, %v1368_v19, %v1372_v41 }
 0x196   :  { %v946_v42 = vpack.c.b16 %v899_v57, %v898_v44  ;;  %v644_v35 = vadd.f32 %v5852_v58, %v576_v43 }
 0x198   :  { %v1090_v54 = vshrl.u32 %v946_v42, 16  ;;  %v1093_v10 = vshll.u32 %v946_v42, 16  ;;  %v708_v13 = vmax.f32 %v644_v35, 0.0 }
 0x199   :  { %v1665_v63 = vpop.f32.mrf.mxu1 }
 0x19a   :  { %v5875_v1 = vadd.f32 %v1910_v8, %v1665_v63  ;;  %v1915_v6 = vpop.f32.mrf.mxu2  ;;  %v1092_v51 = vrot.slane %v1090_v54, 7  ;;  %v772_v8 = vpack.c.bf16 %v708_v13, %v708_v13 }
 0x19b   :  { %v465_v59 = vpop.f32.mrf.mxu0 }
 0x19c   :  { %7409 = vst [vmem:[#allocation6_spill] sm:$0xff] %v5875_v1  ;;  %v577_v17 = vmul.f32 %v5840_v52, %v465_v59  ;;  %v1095_v15 = vor.u32 %v1093_v10, %v1092_v51  ;;  %v900_v20 = vunpack.c.l.b16 %v772_v8 }
 0x19e   :  { %v645_v32 = vadd.f32 %v5852_v58, %v577_v17  ;;  %v1227_v34 = vsel %vm5565_vm4, 0, %v1095_v15 }
 0x19f   :  { %5062 = vmatmul.msk.bf16.gmra.mxu2 %vm1527_vm5, %v1227_v34  ;;  %v1377_v35 = vshll.u32 %v1227_v34, 16  ;;  %v1375_v8 = vshrl.u32 %v1227_v34, 16 }
 0x1a0   :  { %v709_v36 = vmax.f32 %v645_v32, 0.0 }
 0x1a1   :  { %v1668_v37 = vpop.f32.mrf.mxu1  ;;  %v1379_v26 = vrot.slane %v1377_v35, 1 }
 0x1a2   :  { %v773_v31 = vpack.c.bf16 %v709_v36, %v709_v36  ;;  %v5882_v39 = vadd.f32 %v1913_v14, %v1668_v37  ;;  %v1918_v23 = vpop.f32.mrf.mxu2  ;;  %v2081_v36 = vrot.slane %v1227_v34, 1 }
 0x1a3   :  { %v468_v55 = vpop.f32.mrf.mxu0 }
 0x1a4   :  { %7410 = vst [vmem:[#allocation7_spill] sm:$0xff] %v5882_v39  ;;  %v901_v44 = vunpack.c.l.b16 %v773_v31  ;;  %v578_v57 = vmul.f32 %v5840_v52, %v468_v55  ;;  %5021 = vmatmul.msk.bf16.gmra.mxu1 %vm1527_vm5, %v1373_v22  ;;  %v1380_v22 = vor.u32 %v1379_v26, %v1375_v8 }
 0x1a6   :  { %v947_v43 = vpack.c.b16 %v901_v44, %v900_v20  ;;  %v646_v50 = vadd.f32 %v5852_v58, %v578_v57 }
 0x1a8   :  { %v1097_v42 = vshrl.u32 %v947_v43, 16  ;;  %v1100_v10 = vshll.u32 %v947_v43, 16  ;;  %v710_v17 = vmax.f32 %v646_v50, 0.0 }
 0x1a9   :  { %v1670_v54 = vpop.f32.mrf.mxu1 }
 0x1aa   :  { %v1099_v63 = vrot.slane %v1097_v42, 7  ;;  %v5888_v14 = vadd.f32 %v1915_v6, %v1670_v54  ;;  %v1920_v59 = vpop.f32.mrf.mxu2  ;;  %v774_v31 = vpack.c.bf16 %v710_v17, %v710_v17 }
 0x1ab   :  { %v470_v13 = vpop.f32.mrf.mxu0 }
 0x1ac   :  { %7411 = vst [vmem:[#allocation8_spill] sm:$0xff] %v5888_v14  ;;  %v579_v15 = vmul.f32 %v5840_v52, %v470_v13  ;;  %v1102_v21 = vor.u32 %v1100_v10, %v1099_v63  ;;  %v902_v34 = vunpack.c.l.b16 %v774_v31 }
 0x1ae   :  { %v647_v32 = vadd.f32 %v5852_v58, %v579_v15  ;;  %v1103_v19 = vsel %vm962_vm2, %v1092_v51, %v1102_v21 }
 0x1af   :  { %v1382_v37 = vshll.u32 %v1103_v19, 16  ;;  %5063 = vmatmul.msk.bf16.gmra.mxu2 %vm1527_vm5, %v1103_v19  ;;  %v2082_v41 = vrot.slane %v1103_v19, 1 }
 0x1b0   :  { %v711_v6 = vmax.f32 %v647_v32, 0.0 }
 0x1b1   :  { %v1673_v55 = vpop.f32.mrf.mxu1  ;;  %v1384_v20 = vrot.slane %v1382_v37, 1  ;;  %v5895_v44 = vsel %vm2046_vm6, %v2081_v36, %v2082_v41 }
 0x1b2   :  { %7412 = vst [vmem:[#allocation9_spill] sm:$0xff] %v5895_v44  ;;  %v775_v57 = vpack.c.bf16 %v711_v6, %v711_v6  ;;  %v5897_v43 = vadd.f32 %v1918_v23, %v1673_v55  ;;  %v1923_v42 = vpop.f32.mrf.mxu2 }
 0x1b3   :  { %v473_v50 = vpop.f32.mrf.mxu0  ;;  %v1385_v51 = vsel %vm1237_vm7, %v1380_v22, %v1384_v20  ;;  %v1386_v22 = vshrl.u32 %v1103_v19, 16 }
 0x1b4   :  { %7413 = vst [vmem:[#allocation10_spill] sm:$0xff] %v5897_v43  ;;  %v903_v35 = vunpack.c.l.b16 %v775_v57  ;;  %v580_v54 = vmul.f32 %v5840_v52, %v473_v50  ;;  %5022 = vmatmul.msk.bf16.gmra.mxu1 %vm1527_vm5, %v1385_v51  ;;  %v5909_v51 = vpop.f32.mrf.mxu3 }
 0x1b6   :  { %v948_v10 = vpack.c.b16 %v903_v35, %v902_v34  ;;  %v648_v17 = vadd.f32 %v5852_v58, %v580_v54  ;;  %v1388_v54 = vor.u32 %v1386_v22, %v1384_v20 }
 0x1b8   :  { %v1105_v13 = vshrl.u32 %v948_v10, 16  ;;  %v1108_v26 = vshll.u32 %v948_v10, 16  ;;  %v712_v36 = vmax.f32 %v648_v17, 0.0 }
 0x1b9   :  { %v1675_v15 = vpop.f32.mrf.mxu1 }
 0x1ba   :  { %v1107_v21 = vrot.slane %v1105_v13, 7  ;;  %v5903_v32 = vadd.f32 %v1920_v59, %v1675_v15  ;;  %v1925_v23 = vpop.f32.mrf.mxu2  ;;  %v776_v34 = vpack.c.bf16 %v712_v36, %v712_v36 }
 0x1bb   :  { %v475_v8 = vpop.f32.mrf.mxu0 }
 0x1bc   :  { %7414 = vst [vmem:[#allocation11_spill] sm:$0xff] %v5903_v32  ;;  %v581_v37 = vmul.f32 %v5840_v52, %v475_v8  ;;  %v1110_v31 = vor.u32 %v1108_v26, %v1107_v21  ;;  %v904_v8 = vunpack.c.l.b16 %v776_v34 }
 0x1be   :  { %v649_v6 = vadd.f32 %v5852_v58, %v581_v37  ;;  %v1111_v55 = vsel %vm962_vm2, %v1099_v63, %v1110_v31 }
 0x1bf   :  { %v1390_v57 = vshll.u32 %v1111_v55, 16  ;;  %5064 = vmatmul.msk.bf16.gmra.mxu2 %vm1527_vm5, %v1111_v55  ;;  %v2084_v50 = vrot.slane %v1111_v55, 1 }
 0x1c0   :  { %v713_v59 = vmax.f32 %v649_v6, 0.0 }
 0x1c1   :  { %v1678_v35 = vpop.f32.mrf.mxu1  ;;  %v1392_v10 = vrot.slane %v1390_v57, 1  ;;  %v5912_v13 = vsel %vm2046_vm6, %v2082_v41, %v2084_v50  ;;  %v5920_v41 = vpop.f32.mrf.mxu3 }
 0x1c2   :  { %7415 = vst [vmem:[#allocation12_spill] sm:$0xff] %v5912_v13  ;;  %v777_v17 = vpack.c.bf16 %v713_v59, %v713_v59  ;;  %v5914_v15 = vadd.f32 %v1923_v42, %v1678_v35  ;;  %v1928_v26 = vpop.f32.mrf.mxu2 }
 0x1c3   :  { %v478_v63 = vpop.f32.mrf.mxu0  ;;  %v1393_v19 = vsel %vm1237_vm7, %v1388_v54, %v1392_v10 }
 0x1c4   :  { %7416 = vst [vmem:[#allocation13_spill] sm:$0xff] %v5914_v15  ;;  %v905_v37 = vunpack.c.l.b16 %v777_v17  ;;  %v582_v31 = vmul.f32 %v5840_v52, %v478_v63  ;;  %5023 = vmatmul.msk.bf16.gmra.mxu1 %vm1527_vm5, %v1393_v19 }
 0x1c6   :  { %v949_v36 = vpack.c.b16 %v905_v37, %v904_v8  ;;  %v650_v20 = vadd.f32 %v5852_v58, %v582_v31  ;;  %v1394_v8 = vshrl.u32 %v1111_v55, 16 }
 0x1c8   :  { %v1113_v6 = vshrl.u32 %v949_v36, 16  ;;  %v1116_v42 = vshll.u32 %v949_v36, 16  ;;  %v714_v54 = vmax.f32 %v650_v20, 0.0 }
 0x1c9   :  { %v1680_v22 = vpop.f32.mrf.mxu1  ;;  %v5934_v55 = vpop.f32.mrf.mxu3 }
 0x1ca   :  { %v1115_v57 = vrot.slane %v1113_v6, 7  ;;  %v5922_v59 = vadd.f32 %v1925_v23, %v1680_v22  ;;  %v1930_v35 = vpop.f32.mrf.mxu2  ;;  %v778_v13 = vpack.c.bf16 %v714_v54, %v714_v54  ;;  %v1396_v23 = vor.u32 %v1394_v8, %v1392_v10 }
 0x1cb   :  { %v480_v15 = vpop.f32.mrf.mxu0 }
 0x1cc   :  { %7417 = vst [vmem:[#allocation14_spill] sm:$0xff] %v5922_v59  ;;  %v583_v34 = vmul.f32 %v5840_v52, %v480_v15  ;;  %v1118_v17 = vor.u32 %v1116_v42, %v1115_v57 }
 0x1ce   :  { %v651_v63 = vadd.f32 %v5852_v58, %v583_v34  ;;  %v1119_v19 = vsel %vm962_vm2, %v1107_v21, %v1118_v17  ;;  %v906_v17 = vunpack.c.l.b16 %v778_v13 }
 0x1cf   :  { %v1398_v37 = vshll.u32 %v1119_v19, 16  ;;  %5065 = vmatmul.msk.bf16.gmra.mxu2 %vm1527_vm5, %v1119_v19  ;;  %v2086_v31 = vrot.slane %v1119_v19, 1 }
 0x1d0   :  { %v715_v6 = vmax.f32 %v651_v63, 0.0 }
 0x1d1   :  { %v1683_v36 = vpop.f32.mrf.mxu1  ;;  %v1400_v22 = vrot.slane %v1398_v37, 1  ;;  %v5929_v59 = vsel %vm2046_vm6, %v2084_v50, %v2086_v31 }
 0x1d2   :  { %7418 = vst [vmem:[#allocation15_spill] sm:$0xff] %v5929_v59  ;;  %v779_v20 = vpack.c.bf16 %v715_v6, %v715_v6  ;;  %v5931_v15 = vadd.f32 %v1928_v26, %v1683_v36  ;;  %v1933_v42 = vpop.f32.mrf.mxu2 }
 0x1d3   :  { %v483_v34 = vpop.f32.mrf.mxu0  ;;  %v1401_v21 = vsel %vm1237_vm7, %v1396_v23, %v1400_v22 }
 0x1d4   :  { %7419 = vst [vmem:[#allocation16_spill] sm:$0xff] %v5931_v15  ;;  %v907_v32 = vunpack.c.l.b16 %v779_v20  ;;  %v584_v54 = vmul.f32 %v5840_v52, %v483_v34  ;;  %5024 = vmatmul.msk.bf16.gmra.mxu1 %vm1527_vm5, %v1401_v21  ;;  %v510_v20 = vpop.f32.mrf.mxu3 }
 0x1d6   :  { %v950_v10 = vpack.c.b16 %v907_v32, %v906_v17  ;;  %v652_v50 = vadd.f32 %v5852_v58, %v584_v54  ;;  %v1402_v32 = vshrl.u32 %v1119_v19, 16 }
 0x1d8   :  { %v1121_v63 = vshrl.u32 %v950_v10, 16  ;;  %v1124_v26 = vshll.u32 %v950_v10, 16  ;;  %v716_v23 = vmax.f32 %v652_v50, 0.0 }
 0x1d9   :  { %v1685_v8 = vpop.f32.mrf.mxu1 }
 0x1da   :  { %v1123_v37 = vrot.slane %v1121_v63, 7  ;;  %v5939_v6 = vadd.f32 %v1930_v35, %v1685_v8  ;;  %v1935_v36 = vpop.f32.mrf.mxu2  ;;  %v780_v63 = vpack.c.bf16 %v716_v23, %v716_v23  ;;  %v1404_v8 = vor.u32 %v1402_v32, %v1400_v22 }
 0x1db   :  { %v485_v15 = vpop.f32.mrf.mxu0 }
 0x1dc   :  { %7420 = vst [vmem:[#allocation17_spill] sm:$0xff] %v5939_v6  ;;  %v585_v59 = vmul.f32 %v5840_v52, %v485_v15  ;;  %v1126_v13 = vor.u32 %v1124_v26, %v1123_v37  ;;  %v908_v19 = vunpack.c.l.b16 %v780_v63 }
 0x1de   :  { %v653_v34 = vadd.f32 %v5852_v58, %v585_v59  ;;  %v1127_v21 = vsel %vm962_vm2, %v1115_v57, %v1126_v13 }
 0x1df   :  { %v1406_v17 = vshll.u32 %v1127_v21, 16  ;;  %5066 = vmatmul.msk.bf16.gmra.mxu2 %vm1527_vm5, %v1127_v21  ;;  %v2088_v54 = vrot.slane %v1127_v21, 1 }
 0x1e0   :  { %v717_v10 = vmax.f32 %v653_v34, 0.0  ;;  %v5953_v34 = vpop.f32.mrf.mxu3 }
 0x1e1   :  { %v1688_v35 = vpop.f32.mrf.mxu1  ;;  %v1408_v6 = vrot.slane %v1406_v17, 1  ;;  %v5946_v50 = vsel %vm2046_vm6, %v2086_v31, %v2088_v54 }
 0x1e2   :  { %7421 = vst [vmem:[#allocation18_spill] sm:$0xff] %v5946_v50  ;;  %v781_v15 = vpack.c.bf16 %v717_v10, %v717_v10  ;;  %v5948_v26 = vadd.f32 %v1933_v42, %v1688_v35  ;;  %v1938_v43 = vpop.f32.mrf.mxu2 }
 0x1e3   :  { %v488_v59 = vpop.f32.mrf.mxu0  ;;  %v1409_v57 = vsel %vm1237_vm7, %v1404_v8, %v1408_v6 }
 0x1e4   :  { %7422 = vst [vmem:[#allocation19_spill] sm:$0xff] %v5948_v26  ;;  %v909_v13 = vunpack.c.l.b16 %v781_v15  ;;  %v586_v44 = vmul.f32 %v5840_v52, %v488_v59  ;;  %5025 = vmatmul.msk.bf16.gmra.mxu1 %vm1527_vm5, %v1409_v57 }
 0x1e6   :  { %v951_v23 = vpack.c.b16 %v909_v13, %v908_v19  ;;  %v654_v31 = vadd.f32 %v5852_v58, %v586_v44  ;;  %v1410_v19 = vshrl.u32 %v1127_v21, 16 }
 0x1e8   :  { %v1129_v22 = vshrl.u32 %v951_v23, 16  ;;  %v1132_v42 = vshll.u32 %v951_v23, 16  ;;  %v718_v8 = vmax.f32 %v654_v31, 0.0  ;;  %v515_v23 = vpop.f32.mrf.mxu3 }
 0x1e9   :  { %v1690_v32 = vpop.f32.mrf.mxu1 }
 0x1ea   :  { %v1131_v17 = vrot.slane %v1129_v22, 7  ;;  %v5956_v10 = vadd.f32 %v1935_v36, %v1690_v32  ;;  %v1940_v35 = vpop.f32.mrf.mxu2  ;;  %v782_v50 = vpack.c.bf16 %v718_v8, %v718_v8  ;;  %v1412_v32 = vor.u32 %v1410_v19, %v1408_v6 }
 0x1eb   :  { %v490_v26 = vpop.f32.mrf.mxu0  ;;  %v594_v6 = vmul.f32 %v5840_v52, %v5934_v55  ;;  %v595_v8 = vmul.f32 %v5840_v52, %v510_v20 }
 0x1ec   :  { %7423 = vst [vmem:[#allocation20_spill] sm:$0xff] %v5956_v10  ;;  %v587_v63 = vmul.f32 %v5840_v52, %v490_v26  ;;  %v1134_v15 = vor.u32 %v1132_v42, %v1131_v17  ;;  %v910_v21 = vunpack.c.l.b16 %v782_v50 }
 0x1ee   :  { %v655_v59 = vadd.f32 %v5852_v58, %v587_v63  ;;  %v1135_v57 = vsel %vm962_vm2, %v1123_v37, %v1134_v15 }
 0x1ef   :  { %v1414_v13 = vshll.u32 %v1135_v57, 16  ;;  %5067 = vmatmul.msk.bf16.gmra.mxu2 %vm1527_vm5, %v1135_v57  ;;  %v2090_v44 = vrot.slane %v1135_v57, 1 }
 0x1f0   :  { %v719_v22 = vmax.f32 %v655_v59, 0.0  ;;  %v593_v59 = vmul.f32 %v5840_v52, %v5920_v41 }
 0x1f1   :  { %v1693_v36 = vpop.f32.mrf.mxu1  ;;  %v1416_v10 = vrot.slane %v1414_v13, 1  ;;  %v5963_v31 = vsel %vm2046_vm6, %v2088_v54, %v2090_v44  ;;  %v662_v13 = vadd.f32 %v5852_v58, %v594_v6 }
 0x1f2   :  { %7424 = vst [vmem:[#allocation21_spill] sm:$0xff] %v5963_v31  ;;  %v783_v26 = vpack.c.bf16 %v719_v22, %v719_v22  ;;  %v5965_v42 = vadd.f32 %v1938_v43, %v1693_v36  ;;  %v1943_v63 = vpop.f32.mrf.mxu2  ;;  %v592_v43 = vmul.f32 %v5840_v52, %v5909_v51  ;;  %v663_v22 = vadd.f32 %v5852_v58, %v595_v8 }
 0x1f3   :  { %v493_v14 = vpop.f32.mrf.mxu0  ;;  %v1417_v37 = vsel %vm1237_vm7, %v1412_v32, %v1416_v10  ;;  %v726_v6 = vmax.f32 %v662_v13, 0.0  ;;  %v596_v13 = vmul.f32 %v5840_v52, %v5953_v34 }
 0x1f4   :  { %7425 = vst [vmem:[#allocation22_spill] sm:$0xff] %v5965_v42  ;;  %v911_v15 = vunpack.c.l.b16 %v783_v26  ;;  %v588_v39 = vmul.f32 %v5840_v52, %v493_v14  ;;  %5026 = vmatmul.msk.bf16.gmra.mxu1 %vm1527_vm5, %v1417_v37  ;;  %v660_v51 = vadd.f32 %v5852_v58, %v592_v43  ;;  %v5987_v26 = vpop.f32.mrf.mxu3  ;;  %v661_v37 = vadd.f32 %v5852_v58, %v593_v59 }
 0x1f5   :  { %v727_v8 = vmax.f32 %v663_v22, 0.0 }
 0x1f6   :  { %v952_v54 = vpack.c.b16 %v911_v15, %v910_v21  ;;  %v656_v50 = vadd.f32 %v5852_v58, %v588_v39 }
 0x1f8   :  { %v1137_v19 = vshrl.u32 %v952_v54, 16  ;;  %v1140_v55 = vshll.u32 %v952_v54, 16  ;;  %v720_v39 = vmax.f32 %v656_v50, 0.0  ;;  %v725_v50 = vmax.f32 %v661_v37, 0.0 }
 0x1f9   :  { %v1695_v14 = vpop.f32.mrf.mxu1 }
 0x1fa   :  { %v5980_v36 = vrot.slane %v1137_v19, 7  ;;  %v5982_v32 = vadd.f32 %v1940_v35, %v1695_v14  ;;  %v5984_v20 = vpop.f32.mrf.mxu2  ;;  %v724_v19 = vmax.f32 %v660_v51, 0.0  ;;  %v1418_v14 = vshrl.u32 %v1135_v57, 16 }
 0x1fb   :  { %7427 = vst [vmem:[#allocation24_spill] sm:$0xff] %v5984_v20  ;;  %v495_v41 = vpop.f32.mrf.mxu0  ;;  %v790_v57 = vpack.c.bf16 %v726_v6, %v726_v6  ;;  %v791_v51 = vpack.c.bf16 %v727_v8, %v727_v8  ;;  %v789_v31 = vpack.c.bf16 %v725_v50, %v725_v50 }
 0x1fc   :  { %7426 = vst [vmem:[#allocation23_spill] sm:$0xff] %v5982_v32  ;;  %v589_v21 = vmul.f32 %v5840_v52, %v495_v41  ;;  %v1142_v15 = vor.u32 %v1140_v55, %v5980_v36  ;;  %v784_v41 = vpack.c.bf16 %v720_v39, %v720_v39  ;;  %v1420_v55 = vor.u32 %v1418_v14, %v1416_v10 }
 0x1fd   :  { %v788_v37 = vpack.c.bf16 %v724_v19, %v724_v19  ;;  %v597_v39 = vmul.f32 %v5840_v52, %v515_v23  ;;  %v918_v6 = vunpack.c.l.b16 %v790_v57  ;;  %v919_v8 = vunpack.c.l.b16 %v791_v51  ;;  %v5355_v57 = vld [vmem:[%s7397_s7 + $0x18] sm:$0xff] }
 0x1fe   :  { %v657_v54 = vadd.f32 %v5852_v58, %v589_v21  ;;  %v5994_v35 = vsel %vm962_vm2, %v1131_v17, %v1142_v15  ;;  %v912_v10 = vunpack.c.l.b16 %v784_v41  ;;  %v917_v41 = vunpack.c.l.b16 %v789_v31  ;;  %3824 = vmatpush.bf16.msrb.mxu1 %v5355_v57 }
 0x1ff   :  { %v1422_v43 = vshll.u32 %v5994_v35, 16  ;;  %5068 = vmatmul.msk.bf16.gmra.mxu2 %vm1527_vm5, %v5994_v35  ;;  %v7403_v59 = vrot.slane %v5994_v35, 1  ;;  %v665_v19 = vadd.f32 %v5852_v58, %v597_v39  ;;  %v916_v50 = vunpack.c.l.b16 %v788_v37 }
 0x200   :  { %v721_v20 = vmax.f32 %v657_v54, 0.0 }
 0x201   :  { %v1698_v22 = vpop.f32.mrf.mxu1  ;;  %v1424_v21 = vrot.slane %v1422_v43, 1  ;;  %v6005_v17 = vsel %vm2046_vm6, %v2090_v44, %v7403_v59  ;;  %v5363_v44 = vld [vmem:[%s7397_s7 + $0x58] sm:$0xff]  ;;  %v729_v31 = vmax.f32 %v665_v19, 0.0  ;;  %v955_v37 = vpack.c.b16 %v917_v41, %v916_v50 }
 0x202   :  { %7428 = vst [vmem:[#allocation25_spill] sm:$0xff] %v6005_v17  ;;  %v785_v15 = vpack.c.bf16 %v721_v20, %v721_v20  ;;  %v6007_v32 = vadd.f32 %v1943_v63, %v1698_v22  ;;  %v1948_v42 = vpop.f32.mrf.mxu2  ;;  %v664_v63 = vadd.f32 %v5852_v58, %v596_v13  ;;  %v520_v20 = vpop.f32.mrf.mxu3  ;;  %4198 = vmatpush.bf16.msrb.mxu2 %v5363_v44  ;;  %v5359_v13 = vld [vmem:[%s7397_s7 + $0x38] sm:$0xff]  ;;  %v1426_v19 = vshrl.u32 %v5994_v35, 16 }
 0x203   :  { %v498_v54 = vpop.f32.mrf.mxu0  ;;  %v1425_v34 = vsel %vm1237_vm7, %v1420_v55, %v1424_v21  ;;  %3567 = vmatpush.bf16.msrb.mxu0 %v5359_v13 }
 0x204   :  { %7429 = vst [vmem:[#allocation26_spill] sm:$0xff] %v6007_v32  ;;  %v913_v14 = vunpack.c.l.b16 %v785_v15  ;;  %v590_v43 = vmul.f32 %v5840_v52, %v498_v54  ;;  %5027 = vmatmul.msk.bf16.gmra.mxu1 %vm1527_vm5, %v1425_v34  ;;  %v728_v15 = vmax.f32 %v664_v63, 0.0  ;;  %v956_v34 = vpack.c.b16 %v919_v8, %v918_v6 }
 0x205   :  { %v1428_v57 = vor.u32 %v1426_v19, %v1424_v21  ;;  %v599_v19 = vmul.f32 %v5840_v52, %v520_v20 }
 0x206   :  { %v953_v23 = vpack.c.b16 %v913_v14, %v912_v10  ;;  %v658_v55 = vadd.f32 %v5852_v58, %v590_v43  ;;  %v792_v43 = vpack.c.bf16 %v728_v15, %v728_v15  ;;  %v1168_v44 = vshrl.u32 %v956_v34, 16 }
 0x208   :  { %v1145_v22 = vshrl.u32 %v953_v23, 16  ;;  %v1148_v32 = vshll.u32 %v953_v23, 16  ;;  %v722_v39 = vmax.f32 %v658_v55, 0.0  ;;  %v793_v23 = vpack.c.bf16 %v729_v31, %v729_v31 }
 0x209   :  { %v6019_v54 = vpop.f32.mrf.mxu1  ;;  %v920_v1 = vunpack.c.l.b16 %v792_v43 }
 0x20a   :  { %7430 = vst [vmem:[#allocation27_spill] sm:$0xff] %v6019_v54  ;;  %v1147_v59 = vrot.slane %v1145_v22, 7  ;;  %v6021_v17 = vpop.f32.mrf.mxu2  ;;  %v6038_v50 = vpop.f32.mrf.mxu3  ;;  %v1160_v22 = vshrl.u32 %v955_v37, 16  ;;  %v786_v55 = vpack.c.bf16 %v722_v39, %v722_v39  ;;  %v921_v39 = vunpack.c.l.b16 %v793_v23 }
 0x20b   :  { %7431 = vst [vmem:[#allocation28_spill] sm:$0xff] %v6021_v17  ;;  %v500_v51 = vpop.f32.mrf.mxu0 }
 0x20c   :  { %v591_v10 = vmul.f32 %v5840_v52, %v500_v51  ;;  %v1150_v14 = vor.u32 %v1148_v32, %v1147_v59  ;;  %v6035_v8 = vsel %vm5565_vm4, %v1147_v59, 0  ;;  %v957_v23 = vpack.c.b16 %v921_v39, %v920_v1 }
 0x20d   :  { %v2096_v31 = vrot.slane %v6035_v8, 1 }
 0x20e   :  { %v659_v63 = vadd.f32 %v5852_v58, %v591_v10  ;;  %v1151_v6 = vsel %vm962_vm2, %v5980_v36, %v1150_v14  ;;  %v7432_v36 = vrot.slane %v5994_v35, 1  ;;  %v6047_v10 = vrot.slane %v1168_v44, 7 }
 0x20f   :  { %v1430_v41 = vshll.u32 %v1151_v6, 16  ;;  %5069 = vmatmul.msk.bf16.gmra.mxu2 %vm1527_vm5, %v1151_v6  ;;  %v2094_v32 = vrot.slane %v1151_v6, 1  ;;  %v1171_v14 = vshll.u32 %v956_v34, 16  ;;  %v598_v35 = vmul.f32 %v5840_v52, %v5987_v26 }
 0x210   :  { %v723_v15 = vmax.f32 %v659_v63, 0.0  ;;  %v1162_v34 = vrot.slane %v1160_v22, 7 }
 0x211   :  { %v1703_v13 = vpop.f32.mrf.mxu1  ;;  %v1432_v51 = vrot.slane %v1430_v41, 1  ;;  %v6044_v59 = vsel %vm2046_vm6, %v7432_v36, %v2094_v32  ;;  %v6053_v21 = vsel %vm2046_vm6, %v2094_v32, %v2096_v31  ;;  %v914_v41 = vunpack.c.l.b16 %v786_v55 }
 0x212   :  { %7433 = vst [vmem:[#allocation29_spill] sm:$0xff] %v6044_v59  ;;  %v787_v17 = vpack.c.bf16 %v723_v15, %v723_v15  ;;  %v6049_v54 = vadd.f32 %v1948_v42, %v1703_v13  ;;  %v1953_v28 = vpop.f32.mrf.mxu2  ;;  %v1163_v42 = vshll.u32 %v955_v37, 16  ;;  %v1173_v15 = vor.u32 %v1171_v14, %v6047_v10  ;;  %v525_v36 = vpop.f32.mrf.mxu3 }
 0x213   :  { %v1433_v63 = vsel %vm1237_vm7, %v1428_v57, %v1432_v51  ;;  %7435 = vst [vmem:[#allocation31_spill] sm:$0xff] %v6053_v21  ;;  %v666_v13 = vadd.f32 %v5852_v58, %v598_v35  ;;  %v667_v32 = vadd.f32 %v5852_v58, %v599_v19  ;;  %v1176_v37 = vshrl.u32 %v957_v23, 16 }
 0x214   :  { %7434 = vst [vmem:[#allocation30_spill] sm:$0xff] %v6049_v54  ;;  %v915_v44 = vunpack.c.l.b16 %v787_v17  ;;  %5028 = vmatmul.msk.bf16.gmra.mxu1 %vm1527_vm5, %v1433_v63  ;;  %v1165_v26 = vor.u32 %v1163_v42, %v1162_v34  ;;  %v6067_v22 = vsel %vm962_vm2, %v1162_v34, %v1173_v15  ;;  %v1434_v35 = vshrl.u32 %v1151_v6, 16 }
 0x215   :  { %v730_v14 = vmax.f32 %v666_v13, 0.0  ;;  %v731_v63 = vmax.f32 %v667_v32, 0.0  ;;  %v1438_v19 = vshll.u32 %v6035_v8, 16  ;;  %v1178_v13 = vrot.slane %v1176_v37, 7 }
 0x216   :  { %v954_v43 = vpack.c.b16 %v915_v44, %v914_v41  ;;  %v1458_v44 = vshll.u32 %v6067_v22, 16  ;;  %v1436_v34 = vor.u32 %v1434_v35, %v1432_v51  ;;  %v1179_v32 = vshll.u32 %v957_v23, 16 }
 0x217   :  { %v794_v6 = vpack.c.bf16 %v730_v14, %v730_v14 }
 0x218   :  { %v1153_v57 = vshrl.u32 %v954_v43, 16  ;;  %v1156_v55 = vshll.u32 %v954_v43, 16  ;;  %v1181_v23 = vor.u32 %v1179_v32, %v1178_v13 }
 0x219   :  { %v6062_v31 = vpop.f32.mrf.mxu1  ;;  %v922_v14 = vunpack.c.l.b16 %v794_v6 }
 0x21a   :  { %7436 = vst [vmem:[#allocation32_spill] sm:$0xff] %v6062_v31  ;;  %v6064_v20 = vpop.f32.mrf.mxu2  ;;  %v1155_v17 = vrot.slane %v1153_v57, 7  ;;  %v795_v57 = vpack.c.bf16 %v731_v63, %v731_v63  ;;  %v601_v31 = vmul.f32 %v5840_v52, %v525_v36  ;;  %v528_v51 = vpop.f32.mrf.mxu3  ;;  %v6096_v36 = vsel %vm962_vm2, %v6047_v10, %v1181_v23 }
 0x21b   :  { %7437 = vst [vmem:[#allocation33_spill] sm:$0xff] %v6064_v20 }
 0x21c   :  { %v1158_v1 = vor.u32 %v1156_v55, %v1155_v17  ;;  %v6070_v39 = vsel %vm962_vm2, %v1155_v17, %v1165_v26  ;;  %v1440_v26 = vrot.slane %v1438_v19, 1  ;;  %v1460_v55 = vrot.slane %v1458_v44, 1 }
 0x21d   :  { %v1450_v41 = vshll.u32 %v6070_v39, 16  ;;  %v1454_v43 = vshrl.u32 %v6070_v39, 16  ;;  %v923_v63 = vunpack.c.l.b16 %v795_v57  ;;  %v669_v19 = vadd.f32 %v5852_v58, %v601_v31 }
 0x21e   :  { %v6077_v42 = vsel %vm5565_vm4, 0, %v1158_v1  ;;  %v600_v1 = vmul.f32 %v5840_v52, %v6038_v50  ;;  %v1441_v35 = vsel %vm1237_vm7, %v1436_v34, %v1440_v26 }
 0x21f   :  { %7438 = vst [vmem:[#allocation34_spill] sm:$0xff] %v6077_v42  ;;  %5070 = vmatmul.msk.bf16.gmra.mxu2 %vm1527_vm5, %v6077_v42  ;;  %v1452_v15 = vrot.slane %v1450_v41, 1  ;;  %v1445_v50 = vshll.u32 %v6077_v42, 16  ;;  %v958_v41 = vpack.c.b16 %v923_v63, %v922_v14  ;;  %v733_v6 = vmax.f32 %v669_v19, 0.0 }
 0x220   :  { %v1443_v31 = vshrl.u32 %v6077_v42, 16  ;;  %v602_v42 = vmul.f32 %v5840_v52, %v528_v51 }
 0x221   :  { %v1708_v8 = vpop.f32.mrf.mxu1  ;;  %v1456_v17 = vor.u32 %v1454_v43, %v1452_v15  ;;  %v1462_v43 = vshrl.u32 %v6067_v22, 16  ;;  %v1447_v57 = vrot.slane %v1445_v50, 1  ;;  %v1184_v26 = vshrl.u32 %v958_v41, 16 }
 0x222   :  { %v6082_v20 = vadd.f32 %v1953_v28, %v1708_v8  ;;  %v1958_v21 = vpop.f32.mrf.mxu2  ;;  %v668_v28 = vadd.f32 %v5852_v58, %v600_v1  ;;  %v1466_v8 = vshll.u32 %v6096_v36, 16  ;;  %v1187_v63 = vshll.u32 %v958_v41, 16 }
 0x223   :  { %v1461_v37 = vsel %vm1237_vm7, %v1456_v17, %v1460_v55  ;;  %v530_v17 = vpop.f32.mrf.mxu3  ;;  %v1464_v1 = vor.u32 %v1462_v43, %v1460_v55  ;;  %v1448_v10 = vor.u32 %v1447_v57, %v1443_v31  ;;  %v1186_v14 = vrot.slane %v1184_v26, 7 }
 0x224   :  { %7439 = vst [vmem:[#allocation35_spill] sm:$0xff] %v6082_v20  ;;  %5029 = vmatmul.msk.bf16.gmra.mxu1 %vm1527_vm5, %v1441_v35  ;;  %5031 = vmatmul.msk.bf16.vlgmr.msrb.gmra.mxu3 %vm1527_vm5, %v1461_v37  ;;  %v732_v32 = vmax.f32 %v668_v28, 0.0  ;;  %v797_v37 = vpack.c.bf16 %v733_v6, %v733_v6  ;;  %v1468_v23 = vrot.slane %v1466_v8, 1  ;;  %v603_v55 = vmul.f32 %v5840_v52, %v530_v17 }
 0x225   :  { %v1453_v50 = vsel %vm1237_vm7, %v1448_v10, %v1452_v15  ;;  %v1189_v59 = vor.u32 %v1187_v63, %v1186_v14  ;;  %v1470_v57 = vshrl.u32 %v6096_v36, 16 }
 0x226   :  { %v796_v35 = vpack.c.bf16 %v732_v32, %v732_v32  ;;  %v925_v19 = vunpack.c.l.b16 %v797_v37  ;;  %v1469_v54 = vsel %vm1237_vm7, %v1464_v1, %v1468_v23 }
 0x227   :  { %v6116_v32 = vsel %vm962_vm2, %v1178_v13, %v1189_v59  ;;  %v1472_v1 = vor.u32 %v1470_v57, %v1468_v23 }
 0x228   :  { %v924_v28 = vunpack.c.l.b16 %v796_v35  ;;  %v1474_v8 = vshll.u32 %v6116_v32, 16 }
 0x229   :  { %v6098_v44 = vpop.f32.mrf.mxu1 }
 0x22a   :  { %7440 = vst [vmem:[#allocation36_spill] sm:$0xff] %v6098_v44  ;;  %v6100_v34 = vpop.f32.mrf.mxu2  ;;  %v959_v41 = vpack.c.b16 %v925_v19, %v924_v28 }
 0x22b   :  { %7441 = vst [vmem:[#allocation37_spill] sm:$0xff] %v6100_v34  ;;  %v533_v43 = vpop.f32.mrf.mxu3 }
 0x22c   :  { %v1192_v51 = vshrl.u32 %v959_v41, 16  ;;  %v1195_v17 = vshll.u32 %v959_v41, 16 }
 0x22e   :  { %v1194_v31 = vrot.slane %v1192_v51, 7 }
 0x230   :  { %v1197_v28 = vor.u32 %v1195_v17, %v1194_v31 }
 0x231   :  { %v1713_v44 = vpop.f32.mrf.mxu1 }
 0x232   :  { %v6105_v34 = vadd.f32 %v1958_v21, %v1713_v44  ;;  %v1963_v20 = vpop.f32.mrf.mxu2  ;;  %v670_v21 = vadd.f32 %v5852_v58, %v602_v42  ;;  %v671_v44 = vadd.f32 %v5852_v58, %v603_v55  ;;  %v1476_v42 = vrot.slane %v1474_v8, 1 }
 0x233   :  { %v535_v10 = vpop.f32.mrf.mxu3  ;;  %v1478_v8 = vshrl.u32 %v6116_v32, 16 }
 0x234   :  { %5030 = vmatmul.msk.bf16.gmra.mxu1 %vm1527_vm5, %v1453_v50  ;;  %5032 = vmatmul.msk.bf16.gmra.mxu3 %vm1527_vm5, %v1469_v54  ;;  %v734_v26 = vmax.f32 %v670_v21, 0.0  ;;  %v735_v54 = vmax.f32 %v671_v44, 0.0  ;;  %v1477_v19 = vsel %vm1237_vm7, %v1472_v1, %v1476_v42  ;;  %v605_v21 = vmul.f32 %v5840_v52, %v535_v10 }
 0x235   :  { %v1480_v17 = vor.u32 %v1478_v8, %v1476_v42 }
 0x236   :  { %v798_v35 = vpack.c.bf16 %v734_v26, %v734_v26  ;;  %v799_v37 = vpack.c.bf16 %v735_v54, %v735_v54  ;;  %v673_v44 = vadd.f32 %v5852_v58, %v605_v21 }
 0x238   :  { %v926_v50 = vunpack.c.l.b16 %v798_v35  ;;  %v927_v55 = vunpack.c.l.b16 %v799_v37  ;;  %v737_v54 = vmax.f32 %v673_v44, 0.0 }
 0x239   :  { %v6118_v15 = vpop.f32.mrf.mxu1 }
 0x23a   :  { %v6120_v6 = vpop.f32.mrf.mxu2  ;;  %v960_v23 = vpack.c.b16 %v927_v55, %v926_v50 }
 0x23b   :  { %7442 = vst [vmem:[#allocation38_spill] sm:$0xff] %v6120_v6  ;;  %v604_v6 = vmul.f32 %v5840_v52, %v533_v43 }
 0x23c   :  { %v1200_v26 = vshrl.u32 %v960_v23, 16 }
 0x23d   :  { %v672_v41 = vadd.f32 %v5852_v58, %v604_v6  ;;  %v1203_v6 = vshll.u32 %v960_v23, 16  ;;  %v801_v58 = vpack.c.bf16 %v737_v54, %v737_v54 }
 0x23e   :  { %v1202_v35 = vrot.slane %v1200_v26, 7 }
 0x23f   :  { %v736_v52 = vmax.f32 %v672_v41, 0.0  ;;  %v929_v55 = vunpack.c.l.b16 %v801_v58 }
 0x241   :  { %v1718_v59 = vpop.f32.mrf.mxu1  ;;  %v800_v37 = vpack.c.bf16 %v736_v52, %v736_v52 }
 0x242   :  { %v6124_v13 = vadd.f32 %v1963_v20, %v1718_v59  ;;  %v1968_v63 = vpop.f32.mrf.mxu2  ;;  %v6133_v20 = vsel %vm962_vm2, %v1186_v14, %v1197_v28 }
 0x243   :  { %v1482_v43 = vshll.u32 %v6133_v20, 16  ;;  %v928_v50 = vunpack.c.l.b16 %v800_v37  ;;  %v1486_v44 = vshrl.u32 %v6133_v20, 16 }
 0x244   :  { %5033 = vmatmul.msk.bf16.gmra.mxu3 %vm1527_vm5, %v1477_v19  ;;  %v1205_v19 = vor.u32 %v1203_v6, %v1202_v35 }
 0x245   :  { %v1484_v1 = vrot.slane %v1482_v43, 1  ;;  %v961_v21 = vpack.c.b16 %v929_v55, %v928_v50 }
 0x246   :  { %v6146_v41 = vsel %vm962_vm2, %v1194_v31, %v1205_v19  ;;  %v5354_v19 = vld [vmem:[%s7397_s7 + $0x10] sm:$0xff] }
 0x247   :  { %v1485_v28 = vsel %vm1237_vm7, %v1480_v17, %v1484_v1  ;;  %v1208_v8 = vshrl.u32 %v961_v21, 16  ;;  %v1488_v43 = vor.u32 %v1486_v44, %v1484_v1  ;;  %v1211_v54 = vshll.u32 %v961_v21, 16  ;;  %v5362_v1 = vld [vmem:[%s7397_s7 + $0x50] sm:$0xff]  ;;  %3825 = vmatpush.bf16.msrb.mxu1 %v5354_v19 }
 0x248   :  { %v1494_v55 = vshrl.u32 %v6146_v41, 16  ;;  %4199 = vmatpush.bf16.msrb.mxu2 %v5362_v1 }
 0x249   :  { %v6135_v51 = vpop.f32.mrf.mxu1  ;;  %v1210_v52 = vrot.slane %v1208_v8, 7 }
 0x24a   :  { %v6137_v57 = vpop.f32.mrf.mxu2 }
 0x24b   :  { %v1213_v58 = vor.u32 %v1211_v54, %v1210_v52  ;;  %v5351_v54 = vld [vmem:[%s7394_s4 + $0x28] sm:$0xff] }
 0x24c   :  { %2234 = vmatpush.bf16.msrb.mxu3 %v5351_v54 }
 0x251   :  { %v1723_v10 = vpop.f32.mrf.mxu1 }
 0x252   :  { %v6141_v14 = vadd.f32 %v1968_v63, %v1723_v10  ;;  %v1973_v59 = vpop.f32.mrf.mxu2  ;;  %v1490_v63 = vshll.u32 %v6146_v41, 16  ;;  %v6159_v10 = vsel %vm962_vm2, %v1202_v35, %v1213_v58 }
 0x253   :  { %v1498_v35 = vshll.u32 %v6159_v10, 16 }
 0x254   :  { %5034 = vmatmul.msk.bf16.gmra.mxu3 %vm1527_vm5, %v1485_v28  ;;  %v1492_v26 = vrot.slane %v1490_v63, 1 }
 0x255   :  { %v1500_v44 = vrot.slane %v1498_v35, 1 }
 0x256   :  { %v1493_v31 = vsel %vm1237_vm7, %v1488_v43, %v1492_v26  ;;  %v1496_v21 = vor.u32 %v1494_v55, %v1492_v26  ;;  %v1502_v26 = vshrl.u32 %v6159_v10, 16 }
 0x258   :  { %v1501_v43 = vsel %vm1237_vm7, %v1496_v21, %v1500_v44 }
 0x259   :  { %v6148_v42 = vpop.f32.mrf.mxu1 }
 0x25a   :  { %v6150_v23 = vpop.f32.mrf.mxu2 }
 0x261   :  { %v1728_v17 = vpop.f32.mrf.mxu1 }
 0x262   :  { %v6154_v6 = vadd.f32 %v1973_v59, %v1728_v17  ;;  %v1978_v37 = vpop.f32.mrf.mxu2  ;;  %v5358_v59 = vld [vmem:[%s7397_s7 + $0x30] sm:$0xff] }
 0x263   :  { %3568 = vmatpush.bf16.msrb.mxu0 %v5358_v59  ;;  %v1504_v59 = vor.u32 %v1502_v26, %v1500_v44 }
 0x264   :  { %5035 = vmatmul.msk.bf16.gmra.mxu3 %vm1527_vm5, %v1493_v31  ;;  %v6185_v31 = vsel %vm5565_vm4, %v1210_v52, 0 }
 0x265   :  { %7444 = vst [vmem:[#allocation40_spill] sm:$0xff] %v6185_v31 }
 0x269   :  { %v6161_v28 = vpop.f32.mrf.mxu1 }
 0x26a   :  { %v6172_v50 = vpop.f32.mrf.mxu2 }
 0x26b   :  { %7443 = vst [vmem:[#allocation39_spill] sm:$0xff] %v6172_v50 }
 0x271   :  { %v1733_v63 = vpop.f32.mrf.mxu1 }
 0x272   :  { %v6176_v8 = vadd.f32 %v1978_v37, %v1733_v63  ;;  %v1983_v17 = vpop.f32.mrf.mxu2  ;;  %v1506_v37 = vshll.u32 %v6185_v31, 16 }
 0x274   :  { %5036 = vmatmul.msk.bf16.gmra.mxu3 %vm1527_vm5, %v1501_v43  ;;  %v1508_v19 = vrot.slane %v1506_v37, 1 }
 0x276   :  { %v1509_v21 = vsel %vm1237_vm7, %v1504_v59, %v1508_v19 }
 0x279   :  { %v6187_v58 = vpop.f32.mrf.mxu1 }
 0x27a   :  { %v6191_v1 = vpop.f32.mrf.mxu2 }
 0x281   :  { %v1738_v55 = vpop.f32.mrf.mxu1 }
 0x282   :  { %v6193_v35 = vadd.f32 %v1983_v17, %v1738_v55  ;;  %v1988_v63 = vpop.f32.mrf.mxu2  ;;  %v5350_v55 = vld [vmem:[%s7394_s4 + $0x20] sm:$0xff] }
 0x283   :  { %2235 = vmatpush.bf16.msrb.mxu3 %v5350_v55  ;;  %v5361_v55 = vld [vmem:[%s7397_s7 + $0x48] sm:$0xff] }
 0x284   :  { %5037 = vmatmul.msk.bf16.gmra.mxu3 %vm1527_vm5, %v1509_v21  ;;  %4200 = vmatpush.bf16.msrb.mxu2 %v5361_v55 }
 0x289   :  { %v6197_v52 = vpop.f32.mrf.mxu1 }
 0x28a   :  { %v6201_v50 = vpop.f32.mrf.mxu2 }
 0x291   :  { %v1743_v43 = vpop.f32.mrf.mxu1 }
 0x292   :  { %v6199_v54 = vadd.f32 %v1988_v63, %v1743_v43  ;;  %v1993_v26 = vpop.f32.mrf.mxu2 }
 0x294   :  { %5071 = vmatmul.msk.bf16.vlgmr.msra.gmra.mxu3 %vm1527_vm5, %v6070_v39 }
 0x299   :  { %v6205_v44 = vpop.f32.mrf.mxu1 }
 0x29a   :  { %v6211_v59 = vpop.f32.mrf.mxu2 }
 0x29b   :  { %7445 = vst [vmem:[#allocation41_spill] sm:$0xff] %v6211_v59 }
 0x2a1   :  { %v1748_v17 = vpop.f32.mrf.mxu1 }
 0x2a2   :  { %v6207_v37 = vadd.f32 %v1993_v26, %v1748_v17  ;;  %v1998_v43 = vpop.f32.mrf.mxu2 }
 0x2a4   :  { %5072 = vmatmul.msk.bf16.gmra.mxu3 %vm1527_vm5, %v6067_v22 }
 0x2a7   :  { %v6213_v19 = vpop.f32.mrf.mxu3 }
 0x2a8   :  { %7446 = vst [vmem:[#allocation42_spill] sm:$0xff] %v6213_v19 }
 0x2a9   :  { %v6218_v21 = vpop.f32.mrf.mxu1 }
 0x2aa   :  { %7447 = vst [vmem:[#allocation43_spill] sm:$0xff] %v6218_v21 }
 0x2af   :  { %v6220_v63 = vpop.f32.mrf.mxu3 }
 0x2b0   :  { %7448 = vst [vmem:[#allocation44_spill] sm:$0xff] %v6220_v63 }
 0x2b1   :  { %v1753_v31 = vpop.f32.mrf.mxu1 }
 0x2b2   :  { %v6222_v26 = vadd.f32 %v1998_v43, %v1753_v31  ;;  %v5357_v31 = vld [vmem:[%s7397_s7 + $0x28] sm:$0xff] }
 0x2b3   :  { %v5353_v43 = vld [vmem:[%s7397_s7 + $0x8] sm:$0xff]  ;;  %3569 = vmatpush.bf16.msrb.mxu0 %v5357_v31 }
 0x2b4   :  { %5073 = vmatmul.msk.bf16.gmra.mxu3 %vm1527_vm5, %v6096_v36  ;;  %3826 = vmatpush.bf16.msrb.mxu1 %v5353_v43 }
 0x2b7   :  { %v6226_v17 = vpop.f32.mrf.mxu3 }
 0x2b8   :  { %7449 = vst [vmem:[#allocation45_spill] sm:$0xff] %v6226_v17 }
 0x2bf   :  { %v6228_v59 = vpop.f32.mrf.mxu3 }
 0x2c0   :  { %7450 = vst [vmem:[#allocation46_spill] sm:$0xff] %v6228_v59 }
 0x2c4   :  { %5074 = vmatmul.msk.bf16.gmra.mxu3 %vm1527_vm5, %v6116_v32 }
 0x2c7   :  { %v6232_v19 = vpop.f32.mrf.mxu3 }
 0x2c8   :  { %7451 = vst [vmem:[#allocation47_spill] sm:$0xff] %v6232_v19 }
 0x2cf   :  { %v6234_v21 = vpop.f32.mrf.mxu3 }
 0x2d0   :  { %7452 = vst [vmem:[#allocation48_spill] sm:$0xff] %v6234_v21 }
 0x2d4   :  { %5075 = vmatmul.msk.bf16.gmra.mxu3 %vm1527_vm5, %v6133_v20 }
 0x2d7   :  { %v6247_v19 = vpop.f32.mrf.mxu3 }
 0x2d8   :  { %7453 = vst [vmem:[#allocation49_spill] sm:$0xff] %v6247_v19 }
 0x2df   :  { %v6249_v21 = vpop.f32.mrf.mxu3 }
 0x2e0   :  { %7454 = vst [vmem:[#allocation50_spill] sm:$0xff] %v6249_v21 }
 0x2e4   :  { %5076 = vmatmul.msk.bf16.gmra.mxu3 %vm1527_vm5, %v6146_v41 }
 0x2e7   :  { %v6253_v55 = vpop.f32.mrf.mxu3 }
 0x2e8   :  { %7455 = vst [vmem:[#allocation51_spill] sm:$0xff] %v6253_v55 }
 0x2ef   :  { %v6255_v59 = vpop.f32.mrf.mxu3 }
 0x2f0   :  { %7456 = vst [vmem:[#allocation52_spill] sm:$0xff] %v6255_v59 }
 0x2f4   :  { %5077 = vmatmul.msk.bf16.gmra.mxu3 %vm1527_vm5, %v6159_v10 }
 0x2f7   :  { %v6259_v17 = vpop.f32.mrf.mxu3 }
 0x2f8   :  { %7457 = vst [vmem:[#allocation53_spill] sm:$0xff] %v6259_v17 }
 0x2ff   :  { %v6261_v63 = vpop.f32.mrf.mxu3 }
 0x300   :  { %7458 = vst [vmem:[#allocation54_spill] sm:$0xff] %v6261_v63 }
 0x304   :  { %5090 = vmatmul.msk.bf16.vlgmr.msrb.gmra.mxu3 %vm1527_vm5, %v5585_v9  ;;  %v5360_v9 = vld [vmem:[%s7397_s7 + $0x40] sm:$0xff] }
 0x305   :  { %4201 = vmatpush.bf16.msrb.mxu2 %v5360_v9 }
 0x307   :  { %v6265_v31 = vpop.f32.mrf.mxu3 }
 0x308   :  { %7459 = vst [vmem:[#allocation55_spill] sm:$0xff] %v6265_v31 }
 0x30f   :  { %v6267_v43 = vpop.f32.mrf.mxu3 }
 0x310   :  { %7460 = vst [vmem:[#allocation56_spill] sm:$0xff] %v6267_v43  ;;  %v5356_v43 = vld [vmem:[%s7397_s7 + $0x20] sm:$0xff] }
 0x311   :  { %3570 = vmatpush.bf16.msrb.mxu0 %v5356_v43 }
 0x314   :  { %5091 = vmatmul.msk.bf16.gmra.mxu3 %vm1527_vm5, %v5600_v40 }
 0x317   :  { %v6271_v55 = vpop.f32.mrf.mxu3 }
 0x318   :  { %7461 = vst [vmem:[#allocation57_spill] sm:$0xff] %v6271_v55 }
 0x31f   :  { %v6273_v59 = vpop.f32.mrf.mxu3 }
 0x320   :  { %7462 = vst [vmem:[#allocation58_spill] sm:$0xff] %v6273_v59 }
 0x324   :  { %5092 = vmatmul.msk.bf16.gmra.mxu3 %vm1527_vm5, %v5615_v2  ;;  %v5352_v2 = vld [vmem:[%s7397_s7] sm:$0xff] }
 0x325   :  { %3827 = vmatpush.bf16.msrb.mxu1 %v5352_v2 }
 0x327   :  { %v6277_v17 = vpop.f32.mrf.mxu3 }
 0x328   :  { %7463 = vst [vmem:[#allocation59_spill] sm:$0xff] %v6277_v17 }
 0x32f   :  { %v6279_v63 = vpop.f32.mrf.mxu3 }
 0x330   :  { %7464 = vst [vmem:[#allocation60_spill] sm:$0xff] %v6279_v63 }
 0x334   :  { %5093 = vmatmul.msk.bf16.gmra.mxu3 %vm1527_vm5, %v5630_v33 }
 0x337   :  { %v6286_v40 = vpop.f32.mrf.mxu3 }
 0x338   :  { %7465 = vst [vmem:[#allocation61_spill] sm:$0xff] %v6286_v40 }
 0x33f   :  { %v6294_v31 = vpop.f32.mrf.mxu3 }
 0x340   :  { %7466 = vst [vmem:[#allocation62_spill] sm:$0xff] %v6294_v31 }
 0x344   :  { %5094 = vmatmul.msk.bf16.gmra.mxu3 %vm1527_vm5, %v5645_v61 }
 0x347   :  { %v6298_v33 = vpop.f32.mrf.mxu3 }
 0x348   :  { %7467 = vst [vmem:[#allocation63_spill] sm:$0xff] %v6298_v33 }
 0x34f   :  { %v6300_v9 = vpop.f32.mrf.mxu3 }
 0x350   :  { %7468 = vst [vmem:[#allocation64_spill] sm:$0xff] %v6300_v9 }
 0x354   :  { %5095 = vmatmul.msk.bf16.gmra.mxu3 %vm1527_vm5, %v5660_v29  ;;  %v6325_v29 = vld [vmem:[%s7395_s5] ss:$0 sm:$0xff] }
 0x357   :  { %v6304_v21 = vpop.f32.mrf.mxu3 }
 0x358   :  { %7469 = vst [vmem:[#allocation65_spill] sm:$0xff] %v6304_v21 }
 0x35f   :  { %v6306_v19 = vpop.f32.mrf.mxu3 }
 0x360   :  { %7470 = vst [vmem:[#allocation66_spill] sm:$0xff] %v6306_v19 }
 0x364   :  { %5096 = vmatmul.msk.bf16.gmra.mxu3 %vm1527_vm5, %v5677_v60 }
 0x367   :  { %v6310_v43 = vpop.f32.mrf.mxu3 }
 0x368   :  { %7471 = vst [vmem:[#allocation67_spill] sm:$0xff] %v6310_v43 }
 0x36f   :  { %v6312_v2 = vpop.f32.mrf.mxu3 }
 0x370   :  { %7472 = vst [vmem:[#allocation68_spill] sm:$0xff] %v6312_v2 }
 0x374   :  { %5097 = vmatmul.msk.bf16.gmra.mxu3 %vm1527_vm5, %v5680_v62  ;;  %v6332_v62 = vld [vmem:[%s7396_s6] ss:$0 sm:$0xff] }
 0x377   :  { %v6316_v61 = vpop.f32.mrf.mxu3 }
 0x378   :  { %7473 = vst [vmem:[#allocation69_spill] sm:$0xff] %v6316_v61 }
 0x37f   :  { %v6318_v9 = vpop.f32.mrf.mxu3 }
 0x380   :  { %7474 = vst [vmem:[#allocation70_spill] sm:$0xff] %v6318_v9 }
 0x384   :  { %5098 = vmatmul.msk.bf16.gmra.mxu3 %vm1527_vm5, %v5714_v3 }
 0x387   :  { %v2237_v60 = vpop.f32.mrf.mxu3 }
 0x388   :  { %v2397_v43 = vadd.f32 %v2237_v60, %v5716_v5 }
 0x38a   :  { %v2465_v2 = vmul.f32 %v6325_v29, %v2397_v43 }
 0x38c   :  { %v2533_v9 = vadd.f32 %v6332_v62, %v2465_v2 }
 0x38e   :  { %v2597_v19 = vmax.f32 %v2533_v9, 0.0 }
 0x38f   :  { %v2239_v61 = vpop.f32.mrf.mxu3 }
 0x390   :  { %v2398_v3 = vadd.f32 %v2239_v61, %v5730_v25  ;;  %v2661_v5 = vpack.c.bf16 %v2597_v19, %v2597_v19 }
 0x392   :  { %v2466_v21 = vmul.f32 %v6325_v29, %v2398_v3  ;;  %v2789_v63 = vunpack.c.l.b16 %v2661_v5 }
 0x394   :  { %v2534_v33 = vadd.f32 %v6332_v62, %v2466_v21  ;;  %5099 = vmatmul.msk.bf16.gmra.mxu3 %vm1527_vm5, %v5737_v45 }
 0x396   :  { %v2598_v43 = vmax.f32 %v2534_v33, 0.0 }
 0x397   :  { %v2242_v60 = vpop.f32.mrf.mxu3 }
 0x398   :  { %v2662_v31 = vpack.c.bf16 %v2598_v43, %v2598_v43  ;;  %v2399_v40 = vadd.f32 %v2242_v60, %v5739_v48 }
 0x39a   :  { %v2790_v17 = vunpack.c.l.b16 %v2662_v31  ;;  %v2467_v2 = vmul.f32 %v6325_v29, %v2399_v40 }
 0x39c   :  { %v2853_v59 = vpack.c.b16 %v2790_v17, %v2789_v63  ;;  %v2535_v25 = vadd.f32 %v6332_v62, %v2467_v2 }
 0x39e   :  { %v2886_v9 = vshrl.u32 %v2853_v59, 16  ;;  %v2889_v55 = vshll.u32 %v2853_v59, 16  ;;  %v2599_v45 = vmax.f32 %v2535_v25, 0.0 }
 0x39f   :  { %v2244_v61 = vpop.f32.mrf.mxu3 }
 0x3a0   :  { %v2400_v21 = vadd.f32 %v2244_v61, %v5753_v0  ;;  %v2888_v3 = vrot.slane %v2886_v9, 7  ;;  %v2663_v17 = vpack.c.bf16 %v2599_v45, %v2599_v45 }
 0x3a2   :  { %v2468_v19 = vmul.f32 %v6325_v29, %v2400_v21  ;;  %v2891_v33 = vor.u32 %v2889_v55, %v2888_v3  ;;  %v2791_v5 = vunpack.c.l.b16 %v2663_v17 }
 0x3a4   :  { %v2536_v48 = vadd.f32 %v6332_v62, %v2468_v19  ;;  %5100 = vmatmul.msk.bf16.gmra.mxu3 %vm1527_vm5, %v5760_v24  ;;  %v3145_v63 = vsel %vm5565_vm4, 0, %v2891_v33 }
 0x3a5   :  { %5194 = vmatmul.msk.bf16.vlgmr.msrb.gmra.mxu1 %vm3466_vm8, %v3145_v63  ;;  %v3164_v24 = vshll.u32 %v3145_v63, 16 }
 0x3a6   :  { %v2600_v31 = vmax.f32 %v2536_v48, 0.0 }
 0x3a7   :  { %v2247_v0 = vpop.f32.mrf.mxu3 }
 0x3a8   :  { %v2664_v40 = vpack.c.bf16 %v2600_v31, %v2600_v31  ;;  %v2401_v59 = vadd.f32 %v2247_v0, %v5762_v27  ;;  %v3166_v31 = vrot.slane %v3164_v24, 1  ;;  %v3162_v0 = vshrl.u32 %v3145_v63, 16 }
 0x3aa   :  { %v2792_v43 = vunpack.c.l.b16 %v2664_v40  ;;  %v2469_v55 = vmul.f32 %v6325_v29, %v2401_v59  ;;  %v3997_v40 = vrot.slane %v3145_v63, 1 }
 0x3ac   :  { %v2854_v60 = vpack.c.b16 %v2792_v43, %v2791_v5  ;;  %v2537_v2 = vadd.f32 %v6332_v62, %v2469_v55 }
 0x3ae   :  { %v2893_v25 = vshrl.u32 %v2854_v60, 16  ;;  %v2896_v19 = vshll.u32 %v2854_v60, 16  ;;  %v2601_v45 = vmax.f32 %v2537_v2, 0.0 }
 0x3af   :  { %v2249_v9 = vpop.f32.mrf.mxu3 }
 0x3b0   :  { %v2402_v61 = vadd.f32 %v2249_v9, %v5776_v47  ;;  %v2895_v21 = vrot.slane %v2893_v25, 7  ;;  %v2665_v5 = vpack.c.bf16 %v2601_v45, %v2601_v45  ;;  %v3167_v25 = vor.u32 %v3166_v31, %v3162_v0 }
 0x3b2   :  { %v2470_v33 = vmul.f32 %v6325_v29, %v2402_v61  ;;  %v2898_v48 = vor.u32 %v2896_v19, %v2895_v21 }
 0x3b4   :  { %v2538_v27 = vadd.f32 %v6332_v62, %v2470_v33  ;;  %5101 = vmatmul.msk.bf16.gmra.mxu3 %vm1527_vm5, %v5783_v4  ;;  %v2899_v17 = vsel %vm962_vm2, %v2888_v3, %v2898_v48  ;;  %v2793_v3 = vunpack.c.l.b16 %v2665_v5 }
 0x3b5   :  { %v3169_v59 = vshll.u32 %v2899_v17, 16  ;;  %5195 = vmatmul.msk.bf16.gmra.mxu1 %vm3466_vm8, %v2899_v17  ;;  %v3998_v47 = vrot.slane %v2899_v17, 1 }
 0x3b6   :  { %v2602_v43 = vmax.f32 %v2538_v27, 0.0 }
 0x3b7   :  { %v3171_v55 = vrot.slane %v3169_v59, 1  ;;  %v2252_v60 = vpop.f32.mrf.mxu3  ;;  %v3999_v2 = vsel %vm2046_vm6, %v3997_v40, %v3998_v47 }
 0x3b8   :  { %v2666_v24 = vpack.c.bf16 %v2602_v43, %v2602_v43  ;;  %v2403_v9 = vadd.f32 %v2252_v60, %v5785_v7  ;;  %5250 = vmatmul.msk.bf16.vlgmr.msrb.gmra.mxu2 %vm3466_vm8, %v3999_v2  ;;  %v3173_v60 = vshrl.u32 %v2899_v17, 16 }
 0x3b9   :  { %v3172_v4 = vsel %vm1237_vm7, %v3167_v25, %v3171_v55 }
 0x3ba   :  { %v2794_v63 = vunpack.c.l.b16 %v2666_v24  ;;  %v2471_v61 = vmul.f32 %v6325_v29, %v2403_v9  ;;  %5146 = vmatmul.msk.bf16.vlgmr.msrb.gmra.mxu0 %vm3466_vm8, %v3172_v4 }
 0x3bc   :  { %v2855_v19 = vpack.c.b16 %v2794_v63, %v2793_v3  ;;  %v2539_v45 = vadd.f32 %v6332_v62, %v2471_v61  ;;  %v3175_v3 = vor.u32 %v3173_v60, %v3171_v55 }
 0x3be   :  { %v2901_v33 = vshrl.u32 %v2855_v19, 16  ;;  %v2904_v0 = vshll.u32 %v2855_v19, 16  ;;  %v2603_v7 = vmax.f32 %v2539_v45, 0.0 }
 0x3bf   :  { %v2254_v48 = vpop.f32.mrf.mxu3 }
 0x3c0   :  { %v2404_v31 = vadd.f32 %v2254_v48, %v5799_v30  ;;  %v2903_v27 = vrot.slane %v2901_v33, 7  ;;  %v2667_v24 = vpack.c.bf16 %v2603_v7, %v2603_v7 }
 0x3c2   :  { %v2472_v40 = vmul.f32 %v6325_v29, %v2404_v31  ;;  %v2906_v59 = vor.u32 %v2904_v0, %v2903_v27 }
 0x3c4   :  { %v2540_v5 = vadd.f32 %v6332_v62, %v2472_v40  ;;  %5102 = vmatmul.msk.bf16.gmra.mxu3 %vm1527_vm5, %v5806_v53  ;;  %v2907_v43 = vsel %vm962_vm2, %v2895_v21, %v2906_v59  ;;  %v2795_v21 = vunpack.c.l.b16 %v2667_v24 }
 0x3c5   :  { %v3177_v2 = vshll.u32 %v2907_v43, 16  ;;  %5196 = vmatmul.msk.bf16.gmra.mxu1 %vm3466_vm8, %v2907_v43  ;;  %v4000_v25 = vrot.slane %v2907_v43, 1 }
 0x3c6   :  { %v2604_v30 = vmax.f32 %v2540_v5, 0.0 }
 0x3c7   :  { %v2257_v9 = vpop.f32.mrf.mxu3  ;;  %v4001_v4 = vsel %vm2046_vm6, %v3998_v47, %v4000_v25  ;;  %v3179_v63 = vrot.slane %v3177_v2, 1  ;;  %v3181_v2 = vshrl.u32 %v2907_v43, 16 }
 0x3c8   :  { %v2668_v61 = vpack.c.bf16 %v2604_v30, %v2604_v30  ;;  %v2405_v19 = vadd.f32 %v2257_v9, %v5808_v56  ;;  %5251 = vmatmul.msk.bf16.gmra.mxu2 %vm3466_vm8, %v4001_v4 }
 0x3c9   :  { %v3180_v53 = vsel %vm1237_vm7, %v3175_v3, %v3179_v63 }
 0x3ca   :  { %v2796_v17 = vunpack.c.l.b16 %v2668_v61  ;;  %v2473_v45 = vmul.f32 %v6325_v29, %v2405_v19  ;;  %5147 = vmatmul.msk.bf16.gmra.mxu0 %vm3466_vm8, %v3180_v53  ;;  %v3183_v61 = vor.u32 %v3181_v2, %v3179_v63 }
 0x3cc   :  { %v2856_v33 = vpack.c.b16 %v2796_v17, %v2795_v21  ;;  %v2541_v48 = vadd.f32 %v6332_v62, %v2473_v45 }
 0x3ce   :  { %v2909_v31 = vshrl.u32 %v2856_v33, 16  ;;  %v2912_v7 = vshll.u32 %v2856_v33, 16  ;;  %v2605_v56 = vmax.f32 %v2541_v48, 0.0 }
 0x3cf   :  { %v2259_v47 = vpop.f32.mrf.mxu3 }
 0x3d0   :  { %v2406_v55 = vadd.f32 %v2259_v47, %v5822_v18  ;;  %v2911_v0 = vrot.slane %v2909_v31, 7  ;;  %v2669_v9 = vpack.c.bf16 %v2605_v56, %v2605_v56 }
 0x3d2   :  { %v2474_v40 = vmul.f32 %v6325_v29, %v2406_v55  ;;  %v2914_v59 = vor.u32 %v2912_v7, %v2911_v0 }
 0x3d4   :  { %v2542_v5 = vadd.f32 %v6332_v62, %v2474_v40  ;;  %5103 = vmatmul.msk.bf16.gmra.mxu3 %vm1527_vm5, %v5829_v46  ;;  %v2915_v60 = vsel %vm962_vm2, %v2903_v27, %v2914_v59  ;;  %v2797_v27 = vunpack.c.l.b16 %v2669_v9 }
 0x3d5   :  { %v3185_v24 = vshll.u32 %v2915_v60, 16  ;;  %5197 = vmatmul.msk.bf16.gmra.mxu1 %vm3466_vm8, %v2915_v60  ;;  %v4002_v30 = vrot.slane %v2915_v60, 1  ;;  %v3189_v59 = vshrl.u32 %v2915_v60, 16 }
 0x3d6   :  { %v2606_v18 = vmax.f32 %v2542_v5, 0.0 }
 0x3d7   :  { %v2262_v4 = vpop.f32.mrf.mxu3  ;;  %v4003_v3 = vsel %vm2046_vm6, %v4000_v25, %v4002_v30  ;;  %v3187_v19 = vrot.slane %v3185_v24, 1 }
 0x3d8   :  { %v2670_v53 = vpack.c.bf16 %v2606_v18, %v2606_v18  ;;  %v2407_v21 = vadd.f32 %v2262_v4, %v5831_v12  ;;  %5252 = vmatmul.msk.bf16.gmra.mxu2 %vm3466_vm8, %v4003_v3 }
 0x3d9   :  { %v3188_v46 = vsel %vm1237_vm7, %v3183_v61, %v3187_v19  ;;  %v3191_v4 = vor.u32 %v3189_v59, %v3187_v19  ;;  %v7475_v19 = vld [vmem:[#allocation6_spill] sm:$0xff] }
 0x3da   :  { %v2798_v43 = vunpack.c.l.b16 %v2670_v53  ;;  %v2475_v17 = vmul.f32 %v6325_v29, %v2407_v21  ;;  %5148 = vmatmul.msk.bf16.gmra.mxu0 %vm3466_vm8, %v3188_v46 }
 0x3dc   :  { %v2857_v45 = vpack.c.b16 %v2798_v43, %v2797_v27  ;;  %v2543_v33 = vadd.f32 %v6332_v62, %v2475_v17 }
 0x3de   :  { %v2917_v48 = vshrl.u32 %v2857_v45, 16  ;;  %v2920_v47 = vshll.u32 %v2857_v45, 16  ;;  %v2607_v12 = vmax.f32 %v2543_v33, 0.0 }
 0x3df   :  { %v2264_v25 = vpop.f32.mrf.mxu3 }
 0x3e0   :  { %v2408_v63 = vadd.f32 %v2264_v25, %v5855_v11  ;;  %v2919_v31 = vrot.slane %v2917_v48, 7  ;;  %v2671_v24 = vpack.c.bf16 %v2607_v12, %v2607_v12 }
 0x3e2   :  { %v2476_v55 = vmul.f32 %v6325_v29, %v2408_v63  ;;  %v2922_v7 = vor.u32 %v2920_v47, %v2919_v31  ;;  %v7476_v47 = vld [vmem:[#allocation5_spill] sm:$0xff] }
 0x3e4   :  { %v2544_v56 = vadd.f32 %v6332_v62, %v2476_v55  ;;  %5104 = vmatmul.msk.bf16.gmra.mxu3 %vm1527_vm5, %v5864_v16  ;;  %v2923_v40 = vsel %vm962_vm2, %v2911_v0, %v2922_v7  ;;  %v2799_v0 = vunpack.c.l.b16 %v2671_v24 }
 0x3e5   :  { %v3193_v5 = vshll.u32 %v2923_v40, 16  ;;  %5198 = vmatmul.msk.bf16.gmra.mxu1 %vm3466_vm8, %v2923_v40  ;;  %v4004_v2 = vrot.slane %v2923_v40, 1  ;;  %v3197_v55 = vshrl.u32 %v2923_v40, 16 }
 0x3e6   :  { %v2608_v11 = vmax.f32 %v2544_v56, 0.0 }
 0x3e7   :  { %v2267_v9 = vpop.f32.mrf.mxu3  ;;  %v4005_v18 = vsel %vm2046_vm6, %v4002_v30, %v4004_v2  ;;  %v3195_v3 = vrot.slane %v3193_v5, 1 }
 0x3e8   :  { %v2672_v61 = vpack.c.bf16 %v2608_v11, %v2608_v11  ;;  %v2409_v53 = vadd.f32 %v2267_v9, %v5869_v49  ;;  %5253 = vmatmul.msk.bf16.gmra.mxu2 %vm3466_vm8, %v4005_v18 }
 0x3e9   :  { %v3196_v16 = vsel %vm1237_vm7, %v3191_v4, %v3195_v3  ;;  %v3199_v9 = vor.u32 %v3197_v55, %v3195_v3  ;;  %v7478_v3 = vld [vmem:[#allocation8_spill] sm:$0xff] }
 0x3ea   :  { %v2800_v60 = vunpack.c.l.b16 %v2672_v61  ;;  %v2477_v21 = vmul.f32 %v6325_v29, %v2409_v53  ;;  %5149 = vmatmul.msk.bf16.gmra.mxu0 %vm3466_vm8, %v3196_v16  ;;  %v7477_v61 = vld [vmem:[#allocation7_spill] sm:$0xff] }
 0x3ec   :  { %v2858_v46 = vpack.c.b16 %v2800_v60, %v2799_v0  ;;  %v2545_v27 = vadd.f32 %v6332_v62, %v2477_v21 }
 0x3ee   :  { %v2925_v43 = vshrl.u32 %v2858_v46, 16  ;;  %v2928_v33 = vshll.u32 %v2858_v46, 16  ;;  %v2609_v49 = vmax.f32 %v2545_v27, 0.0 }
 0x3ef   :  { %v2269_v30 = vpop.f32.mrf.mxu3 }
 0x3f0   :  { %v2410_v17 = vadd.f32 %v2269_v30, %v7475_v19  ;;  %v2927_v45 = vrot.slane %v2925_v43, 7  ;;  %v2673_v59 = vpack.c.bf16 %v2609_v49, %v2609_v49 }
 0x3f2   :  { %v2478_v48 = vmul.f32 %v6325_v29, %v2410_v17  ;;  %v2930_v25 = vor.u32 %v2928_v33, %v2927_v45 }
 0x3f4   :  { %v2546_v63 = vadd.f32 %v6332_v62, %v2478_v48  ;;  %5105 = vmatmul.msk.bf16.gmra.mxu3 %vm1527_vm5, %v7476_v47  ;;  %v2931_v12 = vsel %vm962_vm2, %v2919_v31, %v2930_v25  ;;  %v2801_v31 = vunpack.c.l.b16 %v2673_v59  ;;  %v7479_v48 = vld [vmem:[#allocation9_spill] sm:$0xff] }
 0x3f5   :  { %v3201_v7 = vshll.u32 %v2931_v12, 16  ;;  %5199 = vmatmul.msk.bf16.gmra.mxu1 %vm3466_vm8, %v2931_v12  ;;  %v4006_v56 = vrot.slane %v2931_v12, 1 }
 0x3f6   :  { %v2610_v5 = vmax.f32 %v2546_v63, 0.0  ;;  %v3205_v63 = vshrl.u32 %v2931_v12, 16 }
 0x3f7   :  { %v2272_v24 = vpop.f32.mrf.mxu3  ;;  %v4007_v11 = vsel %vm2046_vm6, %v4004_v2, %v4006_v56  ;;  %v3203_v18 = vrot.slane %v3201_v7, 1 }
 0x3f8   :  { %v2674_v4 = vpack.c.bf16 %v2610_v5, %v2610_v5  ;;  %v2411_v53 = vadd.f32 %v2272_v24, %v7477_v61  ;;  %5254 = vmatmul.msk.bf16.gmra.mxu2 %vm3466_vm8, %v4007_v11  ;;  %v7480_v61 = vld [vmem:[#allocation10_spill] sm:$0xff] }
 0x3f9   :  { %v3204_v16 = vsel %vm1237_vm7, %v3199_v9, %v3203_v18  ;;  %v3207_v11 = vor.u32 %v3205_v63, %v3203_v18  ;;  %v7481_v18 = vld [vmem:[#allocation11_spill] sm:$0xff] }
 0x3fa   :  { %v2802_v40 = vunpack.c.l.b16 %v2674_v4  ;;  %v2479_v0 = vmul.f32 %v6325_v29, %v2411_v53  ;;  %5150 = vmatmul.msk.bf16.gmra.mxu0 %vm3466_vm8, %v3204_v16 }
 0x3fc   :  { %v2859_v60 = vpack.c.b16 %v2802_v40, %v2801_v31  ;;  %v2547_v21 = vadd.f32 %v6332_v62, %v2479_v0 }
 0x3fe   :  { %v2933_v46 = vshrl.u32 %v2859_v60, 16  ;;  %v2936_v30 = vshll.u32 %v2859_v60, 16  ;;  %v2611_v19 = vmax.f32 %v2547_v21, 0.0 }
 0x3ff   :  { %v2274_v2 = vpop.f32.mrf.mxu3 }
 0x400   :  { %v2412_v27 = vadd.f32 %v2274_v2, %v7478_v3  ;;  %v2935_v43 = vrot.slane %v2933_v46, 7  ;;  %v2675_v7 = vpack.c.bf16 %v2611_v19, %v2611_v19 }
 0x402   :  { %v2480_v17 = vmul.f32 %v6325_v29, %v2412_v27  ;;  %v2938_v33 = vor.u32 %v2936_v30, %v2935_v43 }
 0x404   :  { %v2548_v49 = vadd.f32 %v6332_v62, %v2480_v17  ;;  %5106 = vmatmul.msk.bf16.gmra.mxu3 %vm1527_vm5, %v7479_v48  ;;  %v2939_v25 = vsel %vm962_vm2, %v2927_v45, %v2938_v33  ;;  %v2803_v45 = vunpack.c.l.b16 %v2675_v7 }
 0x405   :  { %v3209_v47 = vshll.u32 %v2939_v25, 16  ;;  %5200 = vmatmul.msk.bf16.gmra.mxu1 %vm3466_vm8, %v2939_v25  ;;  %v4008_v55 = vrot.slane %v2939_v25, 1  ;;  %v3213_v17 = vshrl.u32 %v2939_v25, 16 }
 0x406   :  { %v2612_v59 = vmax.f32 %v2548_v49, 0.0  ;;  %v7482_v49 = vld [vmem:[#allocation12_spill] sm:$0xff] }
 0x407   :  { %v2277_v5 = vpop.f32.mrf.mxu3  ;;  %v4009_v24 = vsel %vm2046_vm6, %v4006_v56, %v4008_v55  ;;  %v3211_v9 = vrot.slane %v3209_v47, 1 }
 0x408   :  { %v2676_v4 = vpack.c.bf16 %v2612_v59, %v2612_v59  ;;  %v2413_v53 = vadd.f32 %v2277_v5, %v7480_v61  ;;  %5255 = vmatmul.msk.bf16.gmra.mxu2 %vm3466_vm8, %v4009_v24 }
 0x409   :  { %v3212_v16 = vsel %vm1237_vm7, %v3207_v11, %v3211_v9  ;;  %v3215_v11 = vor.u32 %v3213_v17, %v3211_v9 }
 0x40a   :  { %v2804_v12 = vunpack.c.l.b16 %v2676_v4  ;;  %v2481_v31 = vmul.f32 %v6325_v29, %v2413_v53  ;;  %5151 = vmatmul.msk.bf16.gmra.mxu0 %vm3466_vm8, %v3212_v16 }
 0x40c   :  { %v2860_v40 = vpack.c.b16 %v2804_v12, %v2803_v45  ;;  %v2549_v0 = vadd.f32 %v6332_v62, %v2481_v31  ;;  %v7483_v12 = vld [vmem:[#allocation13_spill] sm:$0xff] }
 0x40e   :  { %v2941_v60 = vshrl.u32 %v2860_v40, 16  ;;  %v2944_v2 = vshll.u32 %v2860_v40, 16  ;;  %v2613_v3 = vmax.f32 %v2549_v0, 0.0 }
 0x40f   :  { %v2279_v56 = vpop.f32.mrf.mxu3 }
 0x410   :  { %v2414_v21 = vadd.f32 %v2279_v56, %v7481_v18  ;;  %v2943_v46 = vrot.slane %v2941_v60, 7  ;;  %v2677_v5 = vpack.c.bf16 %v2613_v3, %v2613_v3  ;;  %v6452_v60 = vpop.f32.mrf.mxu1 }
 0x412   :  { %v2482_v27 = vmul.f32 %v6325_v29, %v2414_v21  ;;  %v2946_v30 = vor.u32 %v2944_v2, %v2943_v46  ;;  %v3149_v19 = vsel %vm5565_vm4, %v2943_v46, 0  ;;  %v2805_v56 = vunpack.c.l.b16 %v2677_v5 }
 0x413   :  { %v4012_v7 = vrot.slane %v3149_v19, 1  ;;  %v3225_v59 = vshll.u32 %v3149_v19, 16 }
 0x414   :  { %v2550_v33 = vadd.f32 %v6332_v62, %v2482_v27  ;;  %5107 = vmatmul.msk.bf16.gmra.mxu3 %vm1527_vm5, %v7482_v49  ;;  %v2947_v48 = vsel %vm962_vm2, %v2935_v43, %v2946_v30  ;;  %v7484_v27 = vld [vmem:[#allocation14_spill] sm:$0xff] }
 0x415   :  { %v3217_v63 = vshll.u32 %v2947_v48, 16  ;;  %5201 = vmatmul.msk.bf16.gmra.mxu1 %vm3466_vm8, %v2947_v48  ;;  %v4010_v47 = vrot.slane %v2947_v48, 1  ;;  %v3221_v4 = vshrl.u32 %v2947_v48, 16  ;;  %v3227_v0 = vrot.slane %v3225_v59, 1 }
 0x416   :  { %v2614_v24 = vmax.f32 %v2550_v33, 0.0 }
 0x417   :  { %v2282_v61 = vpop.f32.mrf.mxu3  ;;  %v4011_v25 = vsel %vm2046_vm6, %v4008_v55, %v4010_v47  ;;  %v3219_v53 = vrot.slane %v3217_v63, 1  ;;  %v4013_v16 = vsel %vm2046_vm6, %v4010_v47, %v4012_v7  ;;  %v7485_v7 = vld [vmem:[#allocation15_spill] sm:$0xff] }
 0x418   :  { %v2678_v45 = vpack.c.bf16 %v2614_v24, %v2614_v24  ;;  %v2415_v31 = vadd.f32 %v2282_v61, %v7483_v12  ;;  %5256 = vmatmul.msk.bf16.gmra.mxu2 %vm3466_vm8, %v4011_v25  ;;  %v7486_v61 = vld [vmem:[#allocation16_spill] sm:$0xff] }
 0x419   :  { %v3220_v43 = vsel %vm1237_vm7, %v3215_v11, %v3219_v53  ;;  %v3223_v40 = vor.u32 %v3221_v4, %v3219_v53 }
 0x41a   :  { %v2806_v9 = vunpack.c.l.b16 %v2678_v45  ;;  %v2483_v18 = vmul.f32 %v6325_v29, %v2415_v31  ;;  %5152 = vmatmul.msk.bf16.gmra.mxu0 %vm3466_vm8, %v3220_v43 }
 0x41b   :  { %v3228_v55 = vsel %vm1237_vm7, %v3223_v40, %v3227_v0 }
 0x41c   :  { %v2861_v21 = vpack.c.b16 %v2806_v9, %v2805_v56  ;;  %v2551_v46 = vadd.f32 %v6332_v62, %v2483_v18  ;;  %v7487_v18 = vld [vmem:[#allocation17_spill] sm:$0xff] }
 0x41e   :  { %v2949_v2 = vshrl.u32 %v2861_v21, 16  ;;  %v2952_v17 = vshll.u32 %v2861_v21, 16  ;;  %v2615_v33 = vmax.f32 %v2551_v46, 0.0 }
 0x41f   :  { %v2284_v3 = vpop.f32.mrf.mxu3 }
 0x420   :  { %v2416_v30 = vadd.f32 %v2284_v3, %v7484_v27  ;;  %v2951_v19 = vrot.slane %v2949_v2, 7  ;;  %v2679_v5 = vpack.c.bf16 %v2615_v33, %v2615_v33 }
 0x422   :  { %v2484_v49 = vmul.f32 %v6325_v29, %v2416_v30  ;;  %v3829_v48 = vpop.f32.mrf.mxu1  ;;  %v2954_v63 = vor.u32 %v2952_v17, %v2951_v19  ;;  %v2807_v53 = vunpack.c.l.b16 %v2679_v5  ;;  %v6475_v17 = vpop.f32.mrf.mxu2 }
 0x424   :  { %v2552_v47 = vadd.f32 %v6332_v62, %v2484_v49  ;;  %5108 = vmatmul.msk.bf16.gmra.mxu3 %vm1527_vm5, %v7485_v7  ;;  %v3146_v59 = vsel %vm5565_vm4, 0, %v2954_v63  ;;  %v7488_v49 = vld [vmem:[#allocation18_spill] sm:$0xff] }
 0x425   :  { %5202 = vmatmul.msk.bf16.gmra.mxu1 %vm3466_vm8, %v3146_v59  ;;  %v3232_v56 = vshll.u32 %v3146_v59, 16  ;;  %v4014_v7 = vrot.slane %v3146_v59, 1 }
 0x426   :  { %v2616_v24 = vmax.f32 %v2552_v47, 0.0  ;;  %v3230_v47 = vshrl.u32 %v3146_v59, 16 }
 0x427   :  { %v2287_v11 = vpop.f32.mrf.mxu3 }
 0x428   :  { %v2680_v4 = vpack.c.bf16 %v2616_v24, %v2616_v24  ;;  %v2417_v25 = vadd.f32 %v2287_v11, %v7486_v61  ;;  %5257 = vmatmul.msk.bf16.gmra.mxu2 %vm3466_vm8, %v4013_v16 }
 0x42a   :  { %v2808_v45 = vunpack.c.l.b16 %v2680_v4  ;;  %v2485_v12 = vmul.f32 %v6325_v29, %v2417_v25  ;;  %5153 = vmatmul.msk.bf16.gmra.mxu0 %vm3466_vm8, %v3228_v55  ;;  %v3831_v31 = vpop.f32.mrf.mxu1  ;;  %v3234_v55 = vrot.slane %v3232_v56, 1 }
 0x42c   :  { %v2862_v43 = vpack.c.b16 %v2808_v45, %v2807_v53  ;;  %v2553_v40 = vadd.f32 %v6332_v62, %v2485_v12  ;;  %v3235_v45 = vor.u32 %v3234_v55, %v3230_v47  ;;  %v6502_v55 = vld [vmem:[%s7398_s8] ss:$0 sm:$0xff] }
 0x42e   :  { %v2956_v0 = vshrl.u32 %v2862_v43, 16  ;;  %v2959_v2 = vshll.u32 %v2862_v43, 16  ;;  %v2617_v3 = vmax.f32 %v2553_v40, 0.0 }
 0x42f   :  { %v2289_v9 = vpop.f32.mrf.mxu3 }
 0x430   :  { %v2418_v21 = vadd.f32 %v2289_v9, %v7487_v18  ;;  %v2958_v46 = vrot.slane %v2956_v0, 7  ;;  %v2681_v11 = vpack.c.bf16 %v2617_v3, %v2617_v3 }
 0x432   :  { %v2486_v16 = vmul.f32 %v6325_v29, %v2418_v21  ;;  %v6473_v27 = vpop.f32.mrf.mxu1  ;;  %v2961_v30 = vor.u32 %v2959_v2, %v2958_v46  ;;  %v2809_v56 = vunpack.c.l.b16 %v2681_v11 }
 0x434   :  { %v2554_v33 = vadd.f32 %v6332_v62, %v2486_v16  ;;  %5109 = vmatmul.msk.bf16.gmra.mxu3 %vm1527_vm5, %v7488_v49  ;;  %v6481_v63 = vsel %vm962_vm2, %v2951_v19, %v2961_v30  ;;  %v7489_v19 = vld [vmem:[#allocation19_spill] sm:$0xff] }
 0x435   :  { %v3237_v5 = vshll.u32 %v6481_v63, 16  ;;  %5203 = vmatmul.msk.bf16.gmra.mxu1 %vm3466_vm8, %v6481_v63  ;;  %v4015_v24 = vrot.slane %v6481_v63, 1  ;;  %v5371_v30 = vld [vmem:[%s7400_s10 + $0x38] sm:$0xff] }
 0x436   :  { %v2618_v4 = vmax.f32 %v2554_v33, 0.0  ;;  %4803 = vmatpush.bf16.msra.mxu3 %v5371_v30 }
 0x437   :  { %v2292_v61 = vpop.f32.mrf.mxu3  ;;  %v3572_v25 = vpop.f32.mrf.mxu0  ;;  %v4016_v53 = vsel %vm2046_vm6, %v4014_v7, %v4015_v24  ;;  %v3239_v12 = vrot.slane %v3237_v5, 1  ;;  %v7490_v7 = vld [vmem:[#allocation20_spill] sm:$0xff] }
 0x438   :  { %v2682_v43 = vpack.c.bf16 %v2618_v4, %v2618_v4  ;;  %v2419_v40 = vadd.f32 %v2292_v61, %v7489_v19  ;;  %v3830_v0 = vadd.f32 %v3829_v48, %v3572_v25  ;;  %5258 = vmatmul.msk.bf16.gmra.mxu2 %vm3466_vm8, %v4016_v53 }
 0x439   :  { %v3240_v59 = vsel %vm1237_vm7, %v3235_v45, %v3239_v12  ;;  %v6511_v45 = vld [vmem:[%s7399_s9] ss:$0 sm:$0xff] }
 0x43a   :  { %v2810_v9 = vunpack.c.l.b16 %v2682_v43  ;;  %v2487_v18 = vmul.f32 %v6325_v29, %v2419_v40  ;;  %5154 = vmatmul.msk.bf16.gmra.mxu0 %vm3466_vm8, %v3240_v59  ;;  %v6493_v21 = vpop.f32.mrf.mxu1 }
 0x43b   :  { %v4203_v2 = vpop.f32.mrf.mxu2 }
 0x43c   :  { %v2863_v3 = vpack.c.b16 %v2810_v9, %v2809_v56  ;;  %v4363_v16 = vadd.f32 %v4203_v2, %v3830_v0  ;;  %v2555_v48 = vadd.f32 %v6332_v62, %v2487_v18  ;;  %v7491_v56 = vld [vmem:[#allocation21_spill] sm:$0xff] }
 0x43e   :  { %v2964_v33 = vshrl.u32 %v2863_v3, 16  ;;  %v2619_v4 = vmax.f32 %v2555_v48, 0.0  ;;  %v2967_v25 = vshll.u32 %v2863_v3, 16  ;;  %v4431_v53 = vmul.f32 %v6502_v55, %v4363_v16 }
 0x43f   :  { %v2294_v49 = vpop.f32.mrf.mxu3  ;;  %v3574_v47 = vpop.f32.mrf.mxu0  ;;  %v3241_v48 = vshrl.u32 %v6481_v63, 16 }
 0x440   :  { %v2420_v5 = vadd.f32 %v2294_v49, %v7490_v7  ;;  %v3832_v11 = vadd.f32 %v3831_v31, %v3574_v47  ;;  %v6505_v61 = vrot.slane %v2964_v33, 7  ;;  %v2683_v9 = vpack.c.bf16 %v2619_v4, %v2619_v4 }
 0x441   :  { %v4499_v2 = vadd.f32 %v6511_v45, %v4431_v53 }
 0x442   :  { %v2488_v43 = vmul.f32 %v6325_v29, %v2420_v5  ;;  %v6514_v19 = vpop.f32.mrf.mxu1  ;;  %v2969_v0 = vor.u32 %v2967_v25, %v6505_v61  ;;  %v7492_v5 = vld [vmem:[#allocation22_spill] sm:$0xff]  ;;  %v2811_v25 = vunpack.c.l.b16 %v2683_v9 }
 0x443   :  { %v4205_v40 = vpop.f32.mrf.mxu2 }
 0x444   :  { %v2556_v31 = vadd.f32 %v6332_v62, %v2488_v43  ;;  %v4364_v59 = vadd.f32 %v4205_v40, %v3832_v11  ;;  %5110 = vmatmul.msk.bf16.gmra.mxu3 %vm1527_vm5, %v7491_v56  ;;  %v6521_v18 = vsel %vm962_vm2, %v2958_v46, %v2969_v0  ;;  %v3243_v43 = vor.u32 %v3241_v48, %v3239_v12 }
 0x445   :  { %v3245_v30 = vshll.u32 %v6521_v18, 16  ;;  %5204 = vmatmul.msk.bf16.gmra.mxu1 %vm3466_vm8, %v6521_v18  ;;  %v4017_v33 = vrot.slane %v6521_v18, 1  ;;  %v4563_v0 = vmax.f32 %v4499_v2, 0.0 }
 0x446   :  { %v2620_v3 = vmax.f32 %v2556_v31, 0.0  ;;  %v4432_v16 = vmul.f32 %v6502_v55, %v4364_v59 }
 0x447   :  { %v2297_v49 = vpop.f32.mrf.mxu3  ;;  %v3577_v47 = vpop.f32.mrf.mxu0  ;;  %v4018_v53 = vsel %vm2046_vm6, %v4015_v24, %v4017_v33  ;;  %v3247_v40 = vrot.slane %v3245_v30, 1 }
 0x448   :  { %v2684_v7 = vpack.c.bf16 %v2620_v3, %v2620_v3  ;;  %v4500_v46 = vadd.f32 %v6511_v45, %v4432_v16  ;;  %v2421_v11 = vadd.f32 %v2297_v49, %v7492_v5  ;;  %v3835_v4 = vadd.f32 %v6473_v27, %v3577_v47  ;;  %5259 = vmatmul.msk.bf16.gmra.mxu2 %vm3466_vm8, %v4018_v53  ;;  %v7493_v47 = vld [vmem:[#allocation23_spill] sm:$0xff] }
 0x449   :  { %v3248_v3 = vsel %vm1237_vm7, %v3243_v43, %v3247_v40 }
 0x44a   :  { %v2812_v31 = vunpack.c.l.b16 %v2684_v7  ;;  %v4564_v59 = vmax.f32 %v4500_v46, 0.0  ;;  %v2489_v63 = vmul.f32 %v6325_v29, %v2421_v11  ;;  %v6536_v56 = vpop.f32.mrf.mxu1  ;;  %5155 = vmatmul.msk.bf16.gmra.mxu0 %vm3466_vm8, %v3248_v3 }
 0x44b   :  { %v4208_v16 = vpop.f32.mrf.mxu2 }
 0x44c   :  { %v2864_v49 = vpack.c.b16 %v2812_v31, %v2811_v25  ;;  %v4627_v5 = vadd.f32 %v4564_v59, %v4563_v0  ;;  %v4365_v27 = vadd.f32 %v4208_v16, %v3835_v4  ;;  %v2557_v24 = vadd.f32 %v6332_v62, %v2489_v63 }
 0x44e   :  { %v4433_v12 = vmul.f32 %v6502_v55, %v4365_v27  ;;  %v2972_v9 = vshrl.u32 %v2864_v49, 16  ;;  %v2975_v25 = vshll.u32 %v2864_v49, 16  ;;  %v2621_v53 = vmax.f32 %v2557_v24, 0.0  ;;  %v7494_v27 = vld [vmem:[#allocation25_spill] sm:$0xff] }
 0x44f   :  { %v2299_v2 = vpop.f32.mrf.mxu3  ;;  %v3579_v30 = vpop.f32.mrf.mxu0 }
 0x450   :  { %v4501_v48 = vadd.f32 %v6511_v45, %v4433_v12  ;;  %v2422_v7 = vadd.f32 %v2299_v2, %v7493_v47  ;;  %v3837_v46 = vadd.f32 %v6493_v21, %v3579_v30  ;;  %v6545_v11 = vrot.slane %v2972_v9, 7 }
 0x451   :  { %v2685_v49 = vpack.c.bf16 %v2621_v53, %v2621_v53 }
 0x452   :  { %v4565_v43 = vmax.f32 %v4501_v48, 0.0  ;;  %v2490_v4 = vmul.f32 %v6325_v29, %v2422_v7  ;;  %v6548_v0 = vpop.f32.mrf.mxu1  ;;  %v2977_v59 = vor.u32 %v2975_v25, %v6545_v11 }
 0x453   :  { %v4210_v31 = vpop.f32.mrf.mxu2 }
 0x454   :  { %v4628_v63 = vadd.f32 %v4627_v5, %v4565_v43  ;;  %v2558_v3 = vadd.f32 %v6332_v62, %v2490_v4  ;;  %v4366_v16 = vadd.f32 %v4210_v31, %v3837_v46  ;;  %5111 = vmatmul.msk.bf16.gmra.mxu3 %vm1527_vm5, %v7494_v27  ;;  %v6556_v21 = vsel %vm962_vm2, %v6505_v61, %v2977_v59  ;;  %v7495_v61 = vld [vmem:[#allocation26_spill] sm:$0xff] }
 0x455   :  { %v3253_v9 = vshll.u32 %v6556_v21, 16  ;;  %5205 = vmatmul.msk.bf16.gmra.mxu1 %vm3466_vm8, %v6556_v21  ;;  %v3249_v5 = vshrl.u32 %v6521_v18, 16  ;;  %v4019_v2 = vrot.slane %v6556_v21, 1  ;;  %v2813_v31 = vunpack.c.l.b16 %v2685_v49 }
 0x456   :  { %v2622_v24 = vmax.f32 %v2558_v3, 0.0  ;;  %v4434_v12 = vmul.f32 %v6502_v55, %v4366_v16 }
 0x457   :  { %v2302_v30 = vpop.f32.mrf.mxu3  ;;  %v3582_v48 = vpop.f32.mrf.mxu0  ;;  %v4020_v53 = vsel %vm2046_vm6, %v4017_v33, %v4019_v2  ;;  %v3251_v43 = vor.u32 %v3249_v5, %v3247_v40  ;;  %v3255_v4 = vrot.slane %v3253_v9, 1  ;;  %v7496_v33 = vld [vmem:[#allocation27_spill] sm:$0xff]  ;;  %v7497_v40 = vld [vmem:[#allocation24_spill] sm:$0xff] }
 0x458   :  { %v2686_v47 = vpack.c.bf16 %v2622_v24, %v2622_v24  ;;  %v4502_v7 = vadd.f32 %v6511_v45, %v4434_v12  ;;  %v2423_v46 = vadd.f32 %v2302_v30, %v7495_v61  ;;  %v3840_v25 = vadd.f32 %v6514_v19, %v3582_v48  ;;  %5260 = vmatmul.msk.bf16.gmra.mxu2 %vm3466_vm8, %v4020_v53 }
 0x459   :  { %v3256_v27 = vsel %vm1237_vm7, %v3251_v43, %v3255_v4  ;;  %v1946_v9 = vadd.f32 %v7497_v40, %v7496_v33  ;;  %v7498_v40 = vld [vmem:[#allocation29_spill] sm:$0xff] }
 0x45a   :  { %v2814_v59 = vunpack.c.l.b16 %v2686_v47  ;;  %v4566_v3 = vmax.f32 %v4502_v7, 0.0  ;;  %v2491_v18 = vmul.f32 %v6325_v29, %v2423_v46  ;;  %v6570_v16 = vpop.f32.mrf.mxu1  ;;  %5156 = vmatmul.msk.bf16.gmra.mxu0 %vm3466_vm8, %v3256_v27 }
 0x45b   :  { %v4213_v24 = vpop.f32.mrf.mxu2 }
 0x45c   :  { %v2865_v12 = vpack.c.b16 %v2814_v59, %v2813_v31  ;;  %v4629_v30 = vadd.f32 %v4628_v63, %v4566_v3  ;;  %v4367_v19 = vadd.f32 %v4213_v24, %v3840_v25  ;;  %v2559_v49 = vadd.f32 %v6332_v62, %v2491_v18 }
 0x45e   :  { %v4435_v5 = vmul.f32 %v6502_v55, %v4367_v19  ;;  %v2980_v48 = vshrl.u32 %v2865_v12, 16  ;;  %v2983_v63 = vshll.u32 %v2865_v12, 16  ;;  %v2623_v31 = vmax.f32 %v2559_v49, 0.0 }
 0x45f   :  { %v2304_v47 = vpop.f32.mrf.mxu3  ;;  %v3584_v7 = vpop.f32.mrf.mxu0 }
 0x460   :  { %v4503_v61 = vadd.f32 %v6511_v45, %v4435_v5  ;;  %v2424_v46 = vadd.f32 %v2304_v47, %v1946_v9  ;;  %v3842_v53 = vadd.f32 %v6536_v56, %v3584_v7  ;;  %v6580_v43 = vrot.slane %v2980_v48, 7 }
 0x461   :  { %v2687_v12 = vpack.c.bf16 %v2623_v31, %v2623_v31 }
 0x462   :  { %v4567_v25 = vmax.f32 %v4503_v61, 0.0  ;;  %v2492_v59 = vmul.f32 %v6325_v29, %v2424_v46  ;;  %v6583_v3 = vpop.f32.mrf.mxu1  ;;  %v2985_v27 = vor.u32 %v2983_v63, %v6580_v43 }
 0x463   :  { %v4215_v18 = vpop.f32.mrf.mxu2 }
 0x464   :  { %v4630_v24 = vadd.f32 %v4629_v30, %v4567_v25  ;;  %v2560_v19 = vadd.f32 %v6332_v62, %v2492_v59  ;;  %v4368_v33 = vadd.f32 %v4215_v18, %v3842_v53  ;;  %5112 = vmatmul.msk.bf16.gmra.mxu3 %vm1527_vm5, %v7498_v40  ;;  %v6591_v56 = vsel %vm962_vm2, %v6545_v11, %v2985_v27  ;;  %v7499_v11 = vld [vmem:[#allocation30_spill] sm:$0xff] }
 0x465   :  { %v3261_v5 = vshll.u32 %v6591_v56, 16  ;;  %5206 = vmatmul.msk.bf16.gmra.mxu1 %vm3466_vm8, %v6591_v56  ;;  %v3257_v30 = vshrl.u32 %v6556_v21, 16  ;;  %v4021_v48 = vrot.slane %v6591_v56, 1  ;;  %v2815_v18 = vunpack.c.l.b16 %v2687_v12 }
 0x466   :  { %v2624_v9 = vmax.f32 %v2560_v19, 0.0  ;;  %v4436_v49 = vmul.f32 %v6502_v55, %v4368_v33 }
 0x467   :  { %v2307_v47 = vpop.f32.mrf.mxu3  ;;  %v3587_v7 = vpop.f32.mrf.mxu0  ;;  %v4022_v31 = vsel %vm2046_vm6, %v4019_v2, %v4021_v48  ;;  %v3259_v25 = vor.u32 %v3257_v30, %v3255_v4  ;;  %v3263_v59 = vrot.slane %v3261_v5, 1  ;;  %v7500_v2 = vld [vmem:[#allocation32_spill] sm:$0xff] }
 0x468   :  { %v2688_v61 = vpack.c.bf16 %v2624_v9, %v2624_v9  ;;  %v4504_v46 = vadd.f32 %v6511_v45, %v4436_v49  ;;  %v2425_v53 = vadd.f32 %v2307_v47, %v7499_v11  ;;  %v3845_v63 = vadd.f32 %v6548_v0, %v3587_v7  ;;  %5261 = vmatmul.msk.bf16.gmra.mxu2 %vm3466_vm8, %v4022_v31  ;;  %v7501_v4 = vld [vmem:[#allocation28_spill] sm:$0xff] }
 0x469   :  { %v3264_v40 = vsel %vm1237_vm7, %v3259_v25, %v3263_v59  ;;  %v1951_v5 = vadd.f32 %v7501_v4, %v7500_v2  ;;  %v7502_v4 = vld [vmem:[#allocation31_spill] sm:$0xff] }
 0x46a   :  { %v2816_v27 = vunpack.c.l.b16 %v2688_v61  ;;  %v4568_v19 = vmax.f32 %v4504_v46, 0.0  ;;  %v2493_v21 = vmul.f32 %v6325_v29, %v2425_v53  ;;  %v6605_v33 = vpop.f32.mrf.mxu1  ;;  %5157 = vmatmul.msk.bf16.gmra.mxu0 %vm3466_vm8, %v3264_v40 }
 0x46b   :  { %v4218_v9 = vpop.f32.mrf.mxu2 }
 0x46c   :  { %v2866_v49 = vpack.c.b16 %v2816_v27, %v2815_v18  ;;  %v4631_v47 = vadd.f32 %v4630_v24, %v4568_v19  ;;  %v4369_v0 = vadd.f32 %v4218_v9, %v3845_v63  ;;  %v2561_v12 = vadd.f32 %v6332_v62, %v2493_v21 }
 0x46e   :  { %v4437_v30 = vmul.f32 %v6502_v55, %v4369_v0  ;;  %v2988_v7 = vshrl.u32 %v2866_v49, 16  ;;  %v2991_v24 = vshll.u32 %v2866_v49, 16  ;;  %v2625_v18 = vmax.f32 %v2561_v12, 0.0 }
 0x46f   :  { %v2309_v61 = vpop.f32.mrf.mxu3  ;;  %v3589_v46 = vpop.f32.mrf.mxu0 }
 0x470   :  { %v4505_v11 = vadd.f32 %v6511_v45, %v4437_v30  ;;  %v2426_v53 = vadd.f32 %v2309_v61, %v1951_v5  ;;  %v3847_v31 = vadd.f32 %v6570_v16, %v3589_v46  ;;  %v6615_v25 = vrot.slane %v2988_v7, 7 }
 0x471   :  { %v2689_v49 = vpack.c.bf16 %v2625_v18, %v2625_v18 }
 0x472   :  { %v4569_v63 = vmax.f32 %v4505_v11, 0.0  ;;  %v2494_v27 = vmul.f32 %v6325_v29, %v2426_v53  ;;  %v6618_v19 = vpop.f32.mrf.mxu1  ;;  %v2993_v40 = vor.u32 %v2991_v24, %v6615_v25 }
 0x473   :  { %v4220_v21 = vpop.f32.mrf.mxu2 }
 0x474   :  { %v4632_v9 = vadd.f32 %v4631_v47, %v4569_v63  ;;  %v2562_v0 = vadd.f32 %v6332_v62, %v2494_v27  ;;  %v4370_v2 = vadd.f32 %v4220_v21, %v3847_v31  ;;  %5113 = vmatmul.msk.bf16.gmra.mxu3 %vm1527_vm5, %v7502_v4  ;;  %v6626_v16 = vsel %vm962_vm2, %v6580_v43, %v2993_v40  ;;  %v7503_v43 = vld [vmem:[#allocation35_spill] sm:$0xff]  ;;  %v6643_v21 = vld [vmem:[%s7395_s5] ss:$0 sm:$0xff] }
 0x475   :  { %v3269_v12 = vshll.u32 %v6626_v16, 16  ;;  %5207 = vmatmul.msk.bf16.gmra.mxu1 %vm3466_vm8, %v6626_v16  ;;  %v3265_v47 = vshrl.u32 %v6591_v56, 16  ;;  %v4023_v62 = vrot.slane %v6626_v16, 1  ;;  %v2817_v63 = vunpack.c.l.b16 %v2689_v49  ;;  %v5370_v49 = vld [vmem:[%s7400_s10 + $0x30] sm:$0xff] }
 0x476   :  { %v2626_v5 = vmax.f32 %v2562_v0, 0.0  ;;  %v4438_v29 = vmul.f32 %v6502_v55, %v4370_v2  ;;  %4804 = vmatpush.bf16.msra.mxu3 %v5370_v49 }
 0x477   :  { %v2312_v30 = vpop.f32.mrf.mxu3  ;;  %v3592_v7 = vpop.f32.mrf.mxu0  ;;  %v4024_v31 = vsel %vm2046_vm6, %v4021_v48, %v4023_v62  ;;  %v3267_v24 = vor.u32 %v3265_v47, %v3263_v59  ;;  %v3271_v18 = vrot.slane %v3269_v12, 1  ;;  %v6659_v47 = vld [vmem:[%s7396_s6] ss:$0 sm:$0xff] }
 0x478   :  { %v2690_v61 = vpack.c.bf16 %v2626_v5, %v2626_v5  ;;  %v4506_v46 = vadd.f32 %v6511_v45, %v4438_v29  ;;  %v2427_v11 = vadd.f32 %v2312_v30, %v7503_v43  ;;  %v3850_v53 = vadd.f32 %v6583_v3, %v3592_v7  ;;  %5262 = vmatmul.msk.bf16.gmra.mxu2 %vm3466_vm8, %v4024_v31  ;;  %v7504_v5 = vld [vmem:[#allocation36_spill] sm:$0xff]  ;;  %v7505_v29 = vld [vmem:[#allocation33_spill] sm:$0xff] }
 0x479   :  { %v3272_v3 = vsel %vm1237_vm7, %v3267_v24, %v3271_v18  ;;  %v1956_v12 = vadd.f32 %v7505_v29, %v7504_v5 }
 0x47a   :  { %v2818_v27 = vunpack.c.l.b16 %v2690_v61  ;;  %v4570_v56 = vmax.f32 %v4506_v46, 0.0  ;;  %v2495_v40 = vmul.f32 %v6643_v21, %v2427_v11  ;;  %v6647_v0 = vpop.f32.mrf.mxu1  ;;  %5158 = vmatmul.msk.bf16.gmra.mxu0 %vm3466_vm8, %v3272_v3  ;;  %v7506_v61 = vld [vmem:[#allocation34_spill] sm:$0xff] }
 0x47b   :  { %v4223_v2 = vpop.f32.mrf.mxu2  ;;  %v2098_v46 = vrot.slane %v7506_v61, 1 }
 0x47c   :  { %v2867_v48 = vpack.c.b16 %v2818_v27, %v2817_v63  ;;  %v4633_v59 = vadd.f32 %v4632_v9, %v4570_v56  ;;  %v4371_v4 = vadd.f32 %v4223_v2, %v3850_v53  ;;  %v2563_v30 = vadd.f32 %v6659_v47, %v2495_v40 }
 0x47d   :  { %v2099_v63 = vrot.slane %v6070_v39, 1 }
 0x47e   :  { %v4439_v7 = vmul.f32 %v6502_v55, %v4371_v4  ;;  %v2996_v9 = vshrl.u32 %v2867_v48, 16  ;;  %v2999_v56 = vshll.u32 %v2867_v48, 16  ;;  %v2627_v3 = vmax.f32 %v2563_v30, 0.0 }
 0x47f   :  { %v2314_v43 = vpop.f32.mrf.mxu3  ;;  %v3594_v11 = vpop.f32.mrf.mxu0  ;;  %v2100_v5 = vsel %vm2046_vm6, %v2098_v46, %v2099_v63 }
 0x480   :  { %v4507_v53 = vadd.f32 %v6511_v45, %v4439_v7  ;;  %v2428_v31 = vadd.f32 %v2314_v43, %v1956_v12  ;;  %v3852_v24 = vadd.f32 %v6605_v33, %v3594_v11  ;;  %v6667_v27 = vrot.slane %v2996_v9, 7 }
 0x481   :  { %v2691_v48 = vpack.c.bf16 %v2627_v3, %v2627_v3 }
 0x482   :  { %v4571_v40 = vmax.f32 %v4507_v53, 0.0  ;;  %v2496_v2 = vmul.f32 %v6643_v21, %v2428_v31  ;;  %v6670_v4 = vpop.f32.mrf.mxu1  ;;  %v3001_v29 = vor.u32 %v2999_v56, %v6667_v27 }
 0x483   :  { %v4225_v49 = vpop.f32.mrf.mxu2 }
 0x484   :  { %v4634_v7 = vadd.f32 %v4633_v59, %v4571_v40  ;;  %v2564_v12 = vadd.f32 %v6659_v47, %v2496_v2  ;;  %v4372_v33 = vadd.f32 %v4225_v49, %v3852_v24  ;;  %5114 = vmatmul.msk.bf16.gmra.mxu3 %vm1527_vm5, %v2100_v5  ;;  %v6678_v39 = vsel %vm962_vm2, %v6615_v25, %v3001_v29 }
 0x485   :  { %v3277_v61 = vshll.u32 %v6678_v39, 16  ;;  %5208 = vmatmul.msk.bf16.gmra.mxu1 %vm3466_vm8, %v6678_v39  ;;  %v3273_v59 = vshrl.u32 %v6626_v16, 16  ;;  %v4025_v46 = vrot.slane %v6678_v39, 1  ;;  %v2819_v2 = vunpack.c.l.b16 %v2691_v48 }
 0x486   :  { %v2628_v30 = vmax.f32 %v2564_v12, 0.0  ;;  %v4440_v9 = vmul.f32 %v6502_v55, %v4372_v33 }
 0x487   :  { %v2317_v43 = vpop.f32.mrf.mxu3  ;;  %v3597_v11 = vpop.f32.mrf.mxu0  ;;  %v4026_v56 = vsel %vm2046_vm6, %v4023_v62, %v4025_v46  ;;  %v3275_v3 = vor.u32 %v3273_v59, %v3271_v18  ;;  %v3279_v40 = vrot.slane %v3277_v61, 1  ;;  %v7507_v62 = vld [vmem:[#allocation37_spill] sm:$0xff] }
 0x488   :  { %v2692_v53 = vpack.c.bf16 %v2628_v30, %v2628_v30  ;;  %v4508_v31 = vadd.f32 %v6511_v45, %v4440_v9  ;;  %v2429_v25 = vadd.f32 %v2317_v43, %v6105_v34  ;;  %v3855_v24 = vadd.f32 %v6618_v19, %v3597_v11  ;;  %5263 = vmatmul.msk.bf16.gmra.mxu2 %vm3466_vm8, %v4026_v56 }
 0x489   :  { %v3280_v34 = vsel %vm1237_vm7, %v3275_v3, %v3279_v40  ;;  %v1961_v18 = vadd.f32 %v7507_v62, %v6118_v15 }
 0x48a   :  { %v2820_v49 = vunpack.c.l.b16 %v2692_v53  ;;  %v4572_v5 = vmax.f32 %v4508_v31, 0.0  ;;  %v2497_v29 = vmul.f32 %v6643_v21, %v2429_v25  ;;  %v6696_v12 = vpop.f32.mrf.mxu1  ;;  %5159 = vmatmul.msk.bf16.gmra.mxu0 %vm3466_vm8, %v3280_v34 }
 0x48b   :  { %v4228_v19 = vpop.f32.mrf.mxu2 }
 0x48c   :  { %v2868_v33 = vpack.c.b16 %v2820_v49, %v2819_v2  ;;  %v4635_v30 = vadd.f32 %v4634_v7, %v4572_v5  ;;  %v4373_v16 = vadd.f32 %v4228_v19, %v3855_v24  ;;  %v2565_v48 = vadd.f32 %v6659_v47, %v2497_v29 }
 0x48d   :  { %v2101_v7 = vrot.slane %v6067_v22, 1 }
 0x48e   :  { %v4441_v9 = vmul.f32 %v6502_v55, %v4373_v16  ;;  %v3004_v61 = vshrl.u32 %v2868_v33, 16  ;;  %v3007_v56 = vshll.u32 %v2868_v33, 16  ;;  %v2629_v24 = vmax.f32 %v2565_v48, 0.0 }
 0x48f   :  { %v2319_v59 = vpop.f32.mrf.mxu3  ;;  %v3599_v43 = vpop.f32.mrf.mxu0  ;;  %v2102_v5 = vsel %vm2046_vm6, %v2099_v63, %v2101_v7  ;;  %v3281_v16 = vshrl.u32 %v6678_v39, 16 }
 0x490   :  { %v4509_v11 = vadd.f32 %v6511_v45, %v4441_v9  ;;  %v2430_v53 = vadd.f32 %v2319_v59, %v1961_v18  ;;  %v3857_v31 = vadd.f32 %v6647_v0, %v3599_v43  ;;  %v3006_v25 = vrot.slane %v3004_v61, 7 }
 0x491   :  { %v2693_v18 = vpack.c.bf16 %v2629_v24, %v2629_v24  ;;  %v3283_v43 = vor.u32 %v3281_v16, %v3279_v40 }
 0x492   :  { %v4573_v3 = vmax.f32 %v4509_v11, 0.0  ;;  %v2498_v15 = vmul.f32 %v6643_v21, %v2430_v53  ;;  %v6708_v2 = vpop.f32.mrf.mxu1  ;;  %v3009_v29 = vor.u32 %v3007_v56, %v3006_v25  ;;  %v3150_v33 = vsel %vm5565_vm4, %v3006_v25, 0 }
 0x493   :  { %v4230_v49 = vpop.f32.mrf.mxu2  ;;  %v4029_v11 = vrot.slane %v3150_v33, 1  ;;  %v3293_v53 = vshll.u32 %v3150_v33, 16 }
 0x494   :  { %v4636_v34 = vadd.f32 %v4635_v30, %v4573_v3  ;;  %v2566_v19 = vadd.f32 %v6659_v47, %v2498_v15  ;;  %v4374_v0 = vadd.f32 %v4230_v49, %v3857_v31  ;;  %5115 = vmatmul.msk.bf16.gmra.mxu3 %vm1527_vm5, %v2102_v5  ;;  %v3010_v62 = vsel %vm962_vm2, %v6667_v27, %v3009_v29 }
 0x495   :  { %v3285_v63 = vshll.u32 %v3010_v62, 16  ;;  %5209 = vmatmul.msk.bf16.gmra.mxu1 %vm3466_vm8, %v3010_v62  ;;  %v4027_v30 = vrot.slane %v3010_v62, 1  ;;  %v3289_v24 = vshrl.u32 %v3010_v62, 16  ;;  %v2821_v5 = vunpack.c.l.b16 %v2693_v18 }
 0x496   :  { %v2630_v48 = vmax.f32 %v2566_v19, 0.0  ;;  %v4442_v9 = vmul.f32 %v6502_v55, %v4374_v0  ;;  %v3295_v16 = vrot.slane %v3293_v53, 1 }
 0x497   :  { %v2322_v61 = vpop.f32.mrf.mxu3  ;;  %v3602_v59 = vpop.f32.mrf.mxu0  ;;  %v4028_v3 = vsel %vm2046_vm6, %v4025_v46, %v4027_v30  ;;  %v3287_v15 = vrot.slane %v3285_v63, 1  ;;  %v4030_v49 = vsel %vm2046_vm6, %v4027_v30, %v4029_v11  ;;  %v2103_v11 = vrot.slane %v6096_v36, 1 }
 0x498   :  { %v2694_v31 = vpack.c.bf16 %v2630_v48, %v2630_v48  ;;  %v4510_v25 = vadd.f32 %v6511_v45, %v4442_v9  ;;  %v2431_v56 = vadd.f32 %v2322_v61, %v6124_v13  ;;  %v3860_v27 = vadd.f32 %v6670_v4, %v3602_v59  ;;  %5264 = vmatmul.msk.bf16.gmra.mxu2 %vm3466_vm8, %v4028_v3  ;;  %v7508_v48 = vld [vmem:[#allocation38_spill] sm:$0xff] }
 0x499   :  { %v3288_v13 = vsel %vm1237_vm7, %v3283_v43, %v3287_v15  ;;  %v3291_v33 = vor.u32 %v3289_v24, %v3287_v15  ;;  %v1966_v9 = vadd.f32 %v7508_v48, %v6135_v51 }
 0x49a   :  { %v2822_v29 = vunpack.c.l.b16 %v2694_v31  ;;  %v4574_v40 = vmax.f32 %v4510_v25, 0.0  ;;  %v2499_v19 = vmul.f32 %v6643_v21, %v2431_v56  ;;  %v6731_v0 = vpop.f32.mrf.mxu1  ;;  %5160 = vmatmul.msk.bf16.gmra.mxu0 %vm3466_vm8, %v3288_v13 }
 0x49b   :  { %v4233_v4 = vpop.f32.mrf.mxu2  ;;  %v3296_v18 = vsel %vm1237_vm7, %v3291_v33, %v3295_v16 }
 0x49c   :  { %v2869_v39 = vpack.c.b16 %v2822_v29, %v2821_v5  ;;  %v4637_v62 = vadd.f32 %v4636_v34, %v4574_v40  ;;  %v4375_v46 = vadd.f32 %v4233_v4, %v3860_v27  ;;  %v2567_v63 = vadd.f32 %v6659_v47, %v2499_v19 }
 0x49d   :  { %v2104_v5 = vsel %vm2046_vm6, %v2101_v7, %v2103_v11 }
 0x49e   :  { %v4443_v30 = vmul.f32 %v6502_v55, %v4375_v46  ;;  %v3012_v61 = vshrl.u32 %v2869_v39, 16  ;;  %v3015_v56 = vshll.u32 %v2869_v39, 16  ;;  %v2631_v27 = vmax.f32 %v2567_v63, 0.0 }
 0x49f   :  { %v2324_v59 = vpop.f32.mrf.mxu3  ;;  %v3604_v43 = vpop.f32.mrf.mxu0 }
 0x4a0   :  { %v4511_v53 = vadd.f32 %v6511_v45, %v4443_v30  ;;  %v2432_v34 = vadd.f32 %v2324_v59, %v1966_v9  ;;  %v3862_v31 = vadd.f32 %v6696_v12, %v3604_v43  ;;  %v3014_v25 = vrot.slane %v3012_v61, 7 }
 0x4a1   :  { %v2695_v13 = vpack.c.bf16 %v2631_v27, %v2631_v27 }
 0x4a2   :  { %v4575_v24 = vmax.f32 %v4511_v53, 0.0  ;;  %v2500_v51 = vmul.f32 %v6643_v21, %v2432_v34  ;;  %v6744_v3 = vpop.f32.mrf.mxu1  ;;  %v3017_v29 = vor.u32 %v3015_v56, %v3014_v25 }
 0x4a3   :  { %v4235_v15 = vpop.f32.mrf.mxu2  ;;  %v2823_v48 = vunpack.c.l.b16 %v2695_v13 }
 0x4a4   :  { %v4638_v36 = vadd.f32 %v4637_v62, %v4575_v24  ;;  %v2568_v40 = vadd.f32 %v6659_v47, %v2500_v51  ;;  %v4376_v19 = vadd.f32 %v4235_v15, %v3862_v31  ;;  %5116 = vmatmul.msk.bf16.gmra.mxu3 %vm1527_vm5, %v2104_v5  ;;  %v6753_v12 = vsel %vm5565_vm4, 0, %v3017_v29 }
 0x4a5   :  { %5210 = vmatmul.msk.bf16.gmra.mxu1 %vm3466_vm8, %v6753_v12 }
 0x4a6   :  { %v2632_v4 = vmax.f32 %v2568_v40, 0.0  ;;  %v4444_v33 = vmul.f32 %v6502_v55, %v4376_v19 }
 0x4a7   :  { %v2327_v22 = vpop.f32.mrf.mxu3  ;;  %v3607_v7 = vpop.f32.mrf.mxu0 }
 0x4a8   :  { %v2696_v16 = vpack.c.bf16 %v2632_v4, %v2632_v4  ;;  %v4512_v39 = vadd.f32 %v6511_v45, %v4444_v33  ;;  %v2433_v62 = vadd.f32 %v2327_v22, %v6141_v14  ;;  %v3865_v46 = vadd.f32 %v6708_v2, %v3607_v7  ;;  %5265 = vmatmul.msk.bf16.gmra.mxu2 %vm3466_vm8, %v4030_v49 }
 0x4a9   :  { %v1971_v14 = vadd.f32 %v6137_v57, %v6148_v42  ;;  %v2105_v49 = vrot.slane %v6116_v32, 1 }
 0x4aa   :  { %v2824_v9 = vunpack.c.l.b16 %v2696_v16  ;;  %v4576_v63 = vmax.f32 %v4512_v39, 0.0  ;;  %v2501_v30 = vmul.f32 %v6643_v21, %v2433_v62  ;;  %v6763_v61 = vpop.f32.mrf.mxu1  ;;  %5161 = vmatmul.msk.bf16.gmra.mxu0 %vm3466_vm8, %v3296_v18  ;;  %v3300_v18 = vshll.u32 %v6753_v12, 16 }
 0x4ab   :  { %v4238_v59 = vpop.f32.mrf.mxu2  ;;  %v2106_v4 = vsel %vm2046_vm6, %v2103_v11, %v2105_v49  ;;  %v3298_v11 = vshrl.u32 %v6753_v12, 16 }
 0x4ac   :  { %v2870_v43 = vpack.c.b16 %v2824_v9, %v2823_v48  ;;  %v4639_v53 = vadd.f32 %v4638_v36, %v4576_v63  ;;  %v4377_v34 = vadd.f32 %v4238_v59, %v3865_v46  ;;  %v2569_v2 = vadd.f32 %v6659_v47, %v2501_v30 }
 0x4ad   :  { %v3302_v16 = vrot.slane %v3300_v18, 1  ;;  %v4031_v63 = vrot.slane %v6753_v12, 1 }
 0x4ae   :  { %v4445_v31 = vmul.f32 %v6502_v55, %v4377_v34  ;;  %v3019_v56 = vshrl.u32 %v2870_v43, 16  ;;  %v3022_v36 = vshll.u32 %v2870_v43, 16  ;;  %v2633_v57 = vmax.f32 %v2569_v2, 0.0 }
 0x4af   :  { %v2329_v27 = vpop.f32.mrf.mxu3  ;;  %v3609_v24 = vpop.f32.mrf.mxu0 }
 0x4b0   :  { %v4513_v51 = vadd.f32 %v6511_v45, %v4445_v31  ;;  %v2434_v15 = vadd.f32 %v2329_v27, %v1971_v14  ;;  %v3867_v5 = vadd.f32 %v6731_v0, %v3609_v24  ;;  %v6774_v29 = vrot.slane %v3019_v56, 7 }
 0x4b1   :  { %v2697_v62 = vpack.c.bf16 %v2633_v57, %v2633_v57  ;;  %v3303_v31 = vor.u32 %v3302_v16, %v3298_v11 }
 0x4b2   :  { %v4577_v42 = vmax.f32 %v4513_v51, 0.0  ;;  %v2502_v40 = vmul.f32 %v6643_v21, %v2434_v15  ;;  %v6777_v19 = vpop.f32.mrf.mxu1  ;;  %v3024_v33 = vor.u32 %v3022_v36, %v6774_v29 }
 0x4b3   :  { %v4240_v13 = vpop.f32.mrf.mxu2  ;;  %v2825_v27 = vunpack.c.l.b16 %v2697_v62 }
 0x4b4   :  { %v4640_v22 = vadd.f32 %v4639_v53, %v4577_v42  ;;  %v2570_v0 = vadd.f32 %v6659_v47, %v2502_v40  ;;  %v4378_v7 = vadd.f32 %v4240_v13, %v3867_v5  ;;  %5117 = vmatmul.msk.bf16.gmra.mxu3 %vm1527_vm5, %v2106_v4  ;;  %v6786_v39 = vsel %vm962_vm2, %v3014_v25, %v3024_v33  ;;  %v5369_v13 = vld [vmem:[%s7400_s10 + $0x28] sm:$0xff] }
 0x4b5   :  { %v3305_v9 = vshll.u32 %v6786_v39, 16  ;;  %5211 = vmatmul.msk.bf16.gmra.mxu1 %vm3466_vm8, %v6786_v39  ;;  %v4032_v30 = vrot.slane %v6786_v39, 1  ;;  %v1976_v42 = vadd.f32 %v6150_v23, %v6161_v28  ;;  %4805 = vmatpush.bf16.msra.mxu3 %v5369_v13 }
 0x4b6   :  { %v2634_v46 = vmax.f32 %v2570_v0, 0.0  ;;  %v4446_v48 = vmul.f32 %v6502_v55, %v4378_v7  ;;  %v2107_v0 = vrot.slane %v6133_v20, 1 }
 0x4b7   :  { %v2332_v59 = vpop.f32.mrf.mxu3  ;;  %v3612_v43 = vpop.f32.mrf.mxu0  ;;  %v4033_v2 = vsel %vm2046_vm6, %v4031_v63, %v4032_v30  ;;  %v3307_v56 = vrot.slane %v3305_v9, 1 }
 0x4b8   :  { %v2698_v53 = vpack.c.bf16 %v2634_v46, %v2634_v46  ;;  %v4514_v25 = vadd.f32 %v6511_v45, %v4446_v48  ;;  %v2435_v34 = vadd.f32 %v2332_v59, %v6154_v6  ;;  %v3870_v14 = vadd.f32 %v6744_v3, %v3612_v43  ;;  %5266 = vmatmul.msk.bf16.gmra.mxu2 %vm3466_vm8, %v4033_v2 }
 0x4b9   :  { %v3308_v5 = vsel %vm1237_vm7, %v3303_v31, %v3307_v56  ;;  %v2108_v11 = vsel %vm2046_vm6, %v2105_v49, %v2107_v0  ;;  %v3309_v49 = vshrl.u32 %v6786_v39, 16 }
 0x4ba   :  { %v2826_v24 = vunpack.c.l.b16 %v2698_v53  ;;  %v4578_v51 = vmax.f32 %v4514_v25, 0.0  ;;  %v2503_v12 = vmul.f32 %v6643_v21, %v2435_v34  ;;  %v6801_v15 = vpop.f32.mrf.mxu1  ;;  %5162 = vmatmul.msk.bf16.gmra.mxu0 %vm3466_vm8, %v3308_v5 }
 0x4bb   :  { %v4243_v18 = vpop.f32.mrf.mxu2 }
 0x4bc   :  { %v2871_v36 = vpack.c.b16 %v2826_v24, %v2825_v27  ;;  %v6804_v6 = vadd.f32 %v4640_v22, %v4578_v51  ;;  %v4379_v3 = vadd.f32 %v4243_v18, %v3870_v14  ;;  %v2571_v57 = vadd.f32 %v6659_v47, %v2503_v12 }
 0x4bd   :  { %v3311_v18 = vor.u32 %v3309_v49, %v3307_v56 }
 0x4be   :  { %v3027_v40 = vshrl.u32 %v2871_v36, 16  ;;  %v2635_v22 = vmax.f32 %v2571_v57, 0.0  ;;  %v3030_v46 = vshll.u32 %v2871_v36, 16  ;;  %v4447_v48 = vmul.f32 %v6502_v55, %v4379_v3 }
 0x4bf   :  { %v2334_v4 = vpop.f32.mrf.mxu3  ;;  %v3614_v33 = vpop.f32.mrf.mxu0 }
 0x4c0   :  { %v2436_v7 = vadd.f32 %v2334_v4, %v1976_v42  ;;  %v3872_v16 = vadd.f32 %v6763_v61, %v3614_v33  ;;  %v6815_v62 = vrot.slane %v3027_v40, 7  ;;  %v2699_v43 = vpack.c.bf16 %v2635_v22, %v2635_v22 }
 0x4c1   :  { %v4515_v25 = vadd.f32 %v6511_v45, %v4447_v48 }
 0x4c2   :  { %v2504_v23 = vmul.f32 %v6643_v21, %v2436_v7  ;;  %v6819_v28 = vpop.f32.mrf.mxu1  ;;  %v3032_v63 = vor.u32 %v3030_v46, %v6815_v62  ;;  %v2827_v51 = vunpack.c.l.b16 %v2699_v43  ;;  %v7509_v7 = vld [vmem:[#allocation39_spill] sm:$0xff] }
 0x4c3   :  { %v4245_v9 = vpop.f32.mrf.mxu2  ;;  %v4579_v3 = vmax.f32 %v4515_v25, 0.0  ;;  %v1981_v22 = vadd.f32 %v7509_v7, %v6187_v58 }
 0x4c4   :  { %v2572_v61 = vadd.f32 %v6659_v47, %v2504_v23  ;;  %v4380_v59 = vadd.f32 %v4245_v9, %v3872_v16  ;;  %5118 = vmatmul.msk.bf16.gmra.mxu3 %vm1527_vm5, %v2108_v11  ;;  %v6831_v53 = vsel %vm962_vm2, %v6774_v29, %v3032_v63  ;;  %v2109_v23 = vrot.slane %v6146_v41, 1 }
 0x4c5   :  { %v3313_v32 = vshll.u32 %v6831_v53, 16  ;;  %5212 = vmatmul.msk.bf16.gmra.mxu1 %vm3466_vm8, %v6831_v53  ;;  %v4034_v2 = vrot.slane %v6831_v53, 1 }
 0x4c6   :  { %v2636_v34 = vmax.f32 %v2572_v61, 0.0  ;;  %v4448_v14 = vmul.f32 %v6502_v55, %v4380_v59 }
 0x4c7   :  { %v2337_v31 = vpop.f32.mrf.mxu3  ;;  %v3617_v12 = vpop.f32.mrf.mxu0  ;;  %v4035_v5 = vsel %vm2046_vm6, %v4032_v30, %v4034_v2  ;;  %v3315_v36 = vrot.slane %v3313_v32, 1 }
 0x4c8   :  { %v2700_v27 = vpack.c.bf16 %v2636_v34, %v2636_v34  ;;  %v4516_v24 = vadd.f32 %v6511_v45, %v4448_v14  ;;  %v2437_v29 = vadd.f32 %v2337_v31, %v6176_v8  ;;  %5267 = vmatmul.msk.bf16.gmra.mxu2 %vm3466_vm8, %v4035_v5  ;;  %v3875_v39 = vadd.f32 %v6777_v19, %v3617_v12 }
 0x4c9   :  { %v3316_v13 = vsel %vm1237_vm7, %v3311_v18, %v3315_v36  ;;  %v2110_v14 = vsel %vm2046_vm6, %v2107_v0, %v2109_v23  ;;  %v3317_v0 = vshrl.u32 %v6831_v53, 16 }
 0x4ca   :  { %v2828_v57 = vunpack.c.l.b16 %v2700_v27  ;;  %v4580_v42 = vmax.f32 %v4516_v24, 0.0  ;;  %v2505_v40 = vmul.f32 %v6643_v21, %v2437_v29  ;;  %v6847_v4 = vpop.f32.mrf.mxu1  ;;  %5163 = vmatmul.msk.bf16.gmra.mxu0 %vm3466_vm8, %v3316_v13 }
 0x4cb   :  { %v4248_v56 = vpop.f32.mrf.mxu2 }
 0x4cc   :  { %v2872_v8 = vpack.c.b16 %v2828_v57, %v2827_v51  ;;  %v4648_v33 = vadd.f32 %v4580_v42, %v4579_v3  ;;  %v2573_v30 = vadd.f32 %v6659_v47, %v2505_v40  ;;  %v4381_v16 = vadd.f32 %v4248_v56, %v3875_v39 }
 0x4ce   :  { %v3035_v46 = vshrl.u32 %v2872_v8, 16  ;;  %v4449_v19 = vmul.f32 %v6502_v55, %v4381_v16  ;;  %v2637_v63 = vmax.f32 %v2573_v30, 0.0  ;;  %v3038_v59 = vshll.u32 %v2872_v8, 16 }
 0x4cf   :  { %v2339_v48 = vpop.f32.mrf.mxu3  ;;  %v3619_v61 = vpop.f32.mrf.mxu0  ;;  %v3319_v8 = vor.u32 %v3317_v0, %v3315_v36 }
 0x4d0   :  { %v2438_v9 = vadd.f32 %v2339_v48, %v1981_v22  ;;  %v6855_v11 = vrot.slane %v3035_v46, 7  ;;  %v4517_v43 = vadd.f32 %v6511_v45, %v4449_v19  ;;  %v3877_v34 = vadd.f32 %v6801_v15, %v3619_v61 }
 0x4d1   :  { %v2701_v27 = vpack.c.bf16 %v2637_v63, %v2637_v63  ;;  %v2111_v19 = vrot.slane %v6159_v10, 1 }
 0x4d2   :  { %v2506_v25 = vmul.f32 %v6643_v21, %v2438_v9  ;;  %v6860_v58 = vpop.f32.mrf.mxu1  ;;  %v3040_v32 = vor.u32 %v3038_v59, %v6855_v11  ;;  %v4581_v49 = vmax.f32 %v4517_v43, 0.0  ;;  %v6899_v9 = vld [vmem:[%s7398_s8] ss:$0 sm:$0xff] }
 0x4d3   :  { %v4250_v24 = vpop.f32.mrf.mxu2  ;;  %v2829_v40 = vunpack.c.l.b16 %v2701_v27 }
 0x4d4   :  { %v2574_v31 = vadd.f32 %v6659_v47, %v2506_v25  ;;  %5119 = vmatmul.msk.bf16.gmra.mxu3 %vm1527_vm5, %v2110_v14  ;;  %v6872_v15 = vsel %vm962_vm2, %v6815_v62, %v3040_v32  ;;  %v4649_v29 = vadd.f32 %v4648_v33, %v4581_v49  ;;  %v4382_v12 = vadd.f32 %v4250_v24, %v3877_v34 }
 0x4d5   :  { %v3321_v20 = vshll.u32 %v6872_v15, 16  ;;  %5213 = vmatmul.msk.bf16.gmra.mxu1 %vm3466_vm8, %v6872_v15  ;;  %v4036_v5 = vrot.slane %v6872_v15, 1 }
 0x4d6   :  { %v2638_v51 = vmax.f32 %v2574_v31, 0.0  ;;  %v4450_v57 = vmul.f32 %v6502_v55, %v4382_v12  ;;  %v2112_v31 = vsel %vm2046_vm6, %v2109_v23, %v2111_v19  ;;  %v3325_v23 = vshrl.u32 %v6872_v15, 16 }
 0x4d7   :  { %v2342_v18 = vpop.f32.mrf.mxu3  ;;  %v3323_v62 = vrot.slane %v3321_v20, 1  ;;  %v3622_v39 = vpop.f32.mrf.mxu0  ;;  %v4037_v13 = vsel %vm2046_vm6, %v4034_v2, %v4036_v5 }
 0x4d8   :  { %v2702_v3 = vpack.c.bf16 %v2638_v51, %v2638_v51  ;;  %v2439_v42 = vadd.f32 %v2342_v18, %v6193_v35  ;;  %v4518_v30 = vadd.f32 %v6511_v45, %v4450_v57  ;;  %v3880_v56 = vadd.f32 %v6819_v28, %v3622_v39  ;;  %5268 = vmatmul.msk.bf16.gmra.mxu2 %vm3466_vm8, %v4037_v13 }
 0x4d9   :  { %v3324_v55 = vsel %vm1237_vm7, %v3319_v8, %v3323_v62  ;;  %v1986_v45 = vadd.f32 %v6191_v1, %v6197_v52  ;;  %v6907_v1 = vld [vmem:[%s7399_s9] ss:$0 sm:$0xff] }
 0x4da   :  { %v2830_v33 = vunpack.c.l.b16 %v2702_v3  ;;  %v2507_v53 = vmul.f32 %v6643_v21, %v2439_v42  ;;  %v6889_v35 = vpop.f32.mrf.mxu1  ;;  %v4582_v22 = vmax.f32 %v4518_v30, 0.0  ;;  %5164 = vmatmul.msk.bf16.gmra.mxu0 %vm3466_vm8, %v3324_v55  ;;  %v3327_v30 = vor.u32 %v3325_v23, %v3323_v62 }
 0x4db   :  { %v4253_v36 = vpop.f32.mrf.mxu2  ;;  %v1991_v62 = vadd.f32 %v6201_v50, %v6205_v44 }
 0x4dc   :  { %v2873_v7 = vpack.c.b16 %v2830_v33, %v2829_v40  ;;  %v2575_v2 = vadd.f32 %v6659_v47, %v2507_v53  ;;  %v4650_v16 = vadd.f32 %v4649_v29, %v4582_v22  ;;  %v4383_v46 = vadd.f32 %v4253_v36, %v3880_v56 }
 0x4de   :  { %v3043_v48 = vshrl.u32 %v2873_v7, 16  ;;  %v4451_v63 = vmul.f32 %v6899_v9, %v4383_v46  ;;  %v2639_v43 = vmax.f32 %v2575_v2, 0.0  ;;  %v3046_v34 = vshll.u32 %v2873_v7, 16 }
 0x4df   :  { %v2344_v28 = vpop.f32.mrf.mxu3  ;;  %v3624_v25 = vpop.f32.mrf.mxu0 }
 0x4e0   :  { %v2440_v61 = vadd.f32 %v2344_v28, %v1986_v45  ;;  %v6902_v59 = vrot.slane %v3043_v48, 7  ;;  %v4519_v52 = vadd.f32 %v6907_v1, %v4451_v63  ;;  %v3882_v32 = vadd.f32 %v6847_v4, %v3624_v25  ;;  %v7510_v48 = vld [vmem:[#allocation40_spill] sm:$0xff] }
 0x4e1   :  { %v2703_v51 = vpack.c.bf16 %v2639_v43, %v2639_v43  ;;  %v2113_v28 = vrot.slane %v7510_v48, 1 }
 0x4e2   :  { %v2508_v14 = vmul.f32 %v6643_v21, %v2440_v61  ;;  %v6912_v49 = vpop.f32.mrf.mxu1  ;;  %v3048_v27 = vor.u32 %v3046_v34, %v6902_v59  ;;  %v4583_v24 = vmax.f32 %v4519_v52, 0.0 }
 0x4e3   :  { %v4255_v12 = vpop.f32.mrf.mxu2  ;;  %v2831_v13 = vunpack.c.l.b16 %v2703_v51 }
 0x4e4   :  { %v2576_v29 = vadd.f32 %v6659_v47, %v2508_v14  ;;  %5120 = vmatmul.msk.bf16.gmra.mxu3 %vm1527_vm5, %v2112_v31  ;;  %v6924_v4 = vsel %vm962_vm2, %v6855_v11, %v3048_v27  ;;  %v4651_v20 = vadd.f32 %v4650_v16, %v4583_v24  ;;  %v4384_v18 = vadd.f32 %v4255_v12, %v3882_v32 }
 0x4e5   :  { %v3329_v41 = vshll.u32 %v6924_v4, 16  ;;  %5214 = vmatmul.msk.bf16.gmra.mxu1 %vm3466_vm8, %v6924_v4  ;;  %v4038_v3 = vrot.slane %v6924_v4, 1  ;;  %v2114_v31 = vsel %vm2046_vm6, %v2111_v19, %v2113_v28  ;;  %v3333_v19 = vshrl.u32 %v6924_v4, 16 }
 0x4e6   :  { %v2640_v0 = vmax.f32 %v2576_v29, 0.0  ;;  %v4452_v40 = vmul.f32 %v6899_v9, %v4384_v18 }
 0x4e7   :  { %v2347_v57 = vpop.f32.mrf.mxu3  ;;  %v3331_v11 = vrot.slane %v3329_v41, 1  ;;  %v3627_v8 = vpop.f32.mrf.mxu0  ;;  %v4039_v33 = vsel %vm2046_vm6, %v4036_v5, %v4038_v3 }
 0x4e8   :  { %v2704_v42 = vpack.c.bf16 %v2640_v0, %v2640_v0  ;;  %v2441_v39 = vadd.f32 %v2347_v57, %v6199_v54  ;;  %v4520_v56 = vadd.f32 %v6907_v1, %v4452_v40  ;;  %v3885_v7 = vadd.f32 %v6860_v58, %v3627_v8  ;;  %5269 = vmatmul.msk.bf16.gmra.mxu2 %vm3466_vm8, %v4039_v33 }
 0x4e9   :  { %v3332_v22 = vsel %vm1237_vm7, %v3327_v30, %v3331_v11  ;;  %v3335_v33 = vor.u32 %v3333_v19, %v3331_v11 }
 0x4ea   :  { %v2832_v53 = vunpack.c.l.b16 %v2704_v42  ;;  %v2509_v55 = vmul.f32 %v6643_v21, %v2441_v39  ;;  %v6941_v54 = vpop.f32.mrf.mxu1  ;;  %v4584_v36 = vmax.f32 %v4520_v56, 0.0  ;;  %5165 = vmatmul.msk.bf16.gmra.mxu0 %vm3466_vm8, %v3332_v22 }
 0x4eb   :  { %v4258_v5 = vpop.f32.mrf.mxu2 }
 0x4ec   :  { %v2874_v2 = vpack.c.b16 %v2832_v53, %v2831_v13  ;;  %v2577_v15 = vadd.f32 %v6659_v47, %v2509_v55  ;;  %v4652_v16 = vadd.f32 %v4651_v20, %v4584_v36  ;;  %v4385_v46 = vadd.f32 %v4258_v5, %v3885_v7  ;;  %v7512_v36 = vld [vmem:[#allocation41_spill] sm:$0xff] }
 0x4ee   :  { %v3051_v45 = vshrl.u32 %v2874_v2, 16  ;;  %v4453_v63 = vmul.f32 %v6899_v9, %v4385_v46  ;;  %v2641_v25 = vmax.f32 %v2577_v15, 0.0  ;;  %v3054_v52 = vshll.u32 %v2874_v2, 16  ;;  %v7511_v2 = vld [vmem:[#allocation43_spill] sm:$0xff] }
 0x4ef   :  { %v2349_v58 = vpop.f32.mrf.mxu3  ;;  %v3629_v34 = vpop.f32.mrf.mxu0  ;;  %v1996_v15 = vadd.f32 %v7512_v36, %v7511_v2 }
 0x4f0   :  { %v2442_v61 = vadd.f32 %v2349_v58, %v1991_v62  ;;  %v6949_v43 = vrot.slane %v3051_v45, 7  ;;  %v4521_v14 = vadd.f32 %v6907_v1, %v4453_v63  ;;  %v3887_v50 = vadd.f32 %v6889_v35, %v3629_v34 }
 0x4f1   :  { %v2705_v51 = vpack.c.bf16 %v2641_v25, %v2641_v25 }
 0x4f2   :  { %v2510_v32 = vmul.f32 %v6643_v21, %v2442_v61  ;;  %v6954_v44 = vpop.f32.mrf.mxu1  ;;  %v3056_v27 = vor.u32 %v3054_v52, %v6949_v43  ;;  %v4585_v24 = vmax.f32 %v4521_v14, 0.0 }
 0x4f3   :  { %v4260_v12 = vpop.f32.mrf.mxu2  ;;  %v2833_v39 = vunpack.c.l.b16 %v2705_v51 }
 0x4f4   :  { %v2578_v29 = vadd.f32 %v6659_v47, %v2510_v32  ;;  %5121 = vmatmul.msk.bf16.gmra.mxu3 %vm1527_vm5, %v2114_v31  ;;  %v6964_v20 = vsel %vm962_vm2, %v6902_v59, %v3056_v27  ;;  %v4653_v35 = vadd.f32 %v4652_v16, %v4585_v24  ;;  %v4386_v18 = vadd.f32 %v4260_v12, %v3887_v50 }
 0x4f5   :  { %v3337_v10 = vshll.u32 %v6964_v20, 16  ;;  %5215 = vmatmul.msk.bf16.gmra.mxu1 %vm3466_vm8, %v6964_v20  ;;  %v4040_v41 = vrot.slane %v6964_v20, 1 }
 0x4f6   :  { %v2642_v0 = vmax.f32 %v2578_v29, 0.0  ;;  %v4454_v42 = vmul.f32 %v6899_v9, %v4386_v18 }
 0x4f7   :  { %v2352_v23 = vpop.f32.mrf.mxu3  ;;  %v3339_v59 = vrot.slane %v3337_v10, 1  ;;  %v3632_v13 = vpop.f32.mrf.mxu0  ;;  %v4041_v8 = vsel %vm2046_vm6, %v4038_v3, %v4040_v41 }
 0x4f8   :  { %v2706_v57 = vpack.c.bf16 %v2642_v0, %v2642_v0  ;;  %v2443_v40 = vadd.f32 %v2352_v23, %v6207_v37  ;;  %v4522_v53 = vadd.f32 %v6907_v1, %v4454_v42  ;;  %v3890_v4 = vadd.f32 %v6912_v49, %v3632_v13  ;;  %5270 = vmatmul.msk.bf16.gmra.mxu2 %vm3466_vm8, %v4041_v8  ;;  %v5368_v49 = vld [vmem:[%s7400_s10 + $0x20] sm:$0xff] }
 0x4f9   :  { %v3340_v55 = vsel %vm1237_vm7, %v3335_v33, %v3339_v59  ;;  %4806 = vmatpush.bf16.msra.mxu3 %v5368_v49 }
 0x4fa   :  { %v2834_v30 = vunpack.c.l.b16 %v2706_v57  ;;  %v2511_v56 = vmul.f32 %v6643_v21, %v2443_v40  ;;  %v6979_v7 = vpop.f32.mrf.mxu1  ;;  %v4586_v22 = vmax.f32 %v4522_v53, 0.0  ;;  %5166 = vmatmul.msk.bf16.gmra.mxu0 %vm3466_vm8, %v3340_v55  ;;  %v2001_v55 = vadd.f32 %v6475_v17, %v6452_v60 }
 0x4fb   :  { %v4263_v11 = vpop.f32.mrf.mxu2 }
 0x4fc   :  { %v2875_v37 = vpack.c.b16 %v2834_v30, %v2833_v39  ;;  %v2579_v3 = vadd.f32 %v6659_v47, %v2511_v56  ;;  %v4654_v62 = vadd.f32 %v4653_v35, %v4586_v22  ;;  %v4387_v45 = vadd.f32 %v4263_v11, %v3890_v4 }
 0x4fe   :  { %v3059_v5 = vshrl.u32 %v2875_v37, 16  ;;  %v4455_v46 = vmul.f32 %v6899_v9, %v4387_v45  ;;  %v2643_v28 = vmax.f32 %v2579_v3, 0.0  ;;  %v3062_v61 = vshll.u32 %v2875_v37, 16 }
 0x4ff   :  { %v2354_v16 = vpop.f32.mrf.mxu3  ;;  %v3634_v63 = vpop.f32.mrf.mxu0 }
 0x500   :  { %v2444_v58 = vadd.f32 %v2354_v16, %v1996_v15  ;;  %v6989_v48 = vrot.slane %v3059_v5, 7  ;;  %v4523_v25 = vadd.f32 %v6907_v1, %v4455_v46  ;;  %v3892_v52 = vadd.f32 %v6941_v54, %v3634_v63  ;;  %v7513_v63 = vld [vmem:[#allocation42_spill] sm:$0xff] }
 0x501   :  { %v2707_v27 = vpack.c.bf16 %v2643_v28, %v2643_v28  ;;  %v3341_v54 = vshrl.u32 %v6964_v20, 16 }
 0x502   :  { %v2512_v34 = vmul.f32 %v6643_v21, %v2444_v58  ;;  %v6994_v14 = vpop.f32.mrf.mxu1  ;;  %v3064_v32 = vor.u32 %v3062_v61, %v6989_v48  ;;  %v4587_v50 = vmax.f32 %v4523_v25, 0.0  ;;  %v7514_v61 = vld [vmem:[#allocation57_spill] sm:$0xff] }
 0x503   :  { %v4265_v24 = vpop.f32.mrf.mxu2  ;;  %v2835_v42 = vunpack.c.l.b16 %v2707_v27  ;;  %v3343_v13 = vor.u32 %v3341_v54, %v3339_v59  ;;  %v2004_v25 = vadd.f32 %v7514_v61, %v7513_v63 }
 0x504   :  { %v2580_v31 = vadd.f32 %v6659_v47, %v2512_v34  ;;  %v7000_v29 = vsel %vm962_vm2, %v6949_v43, %v3064_v32  ;;  %v4655_v51 = vadd.f32 %v4654_v62, %v4587_v50  ;;  %v4388_v35 = vadd.f32 %v4265_v24, %v3892_v52 }
 0x505   :  { %v3345_v0 = vshll.u32 %v7000_v29, 16  ;;  %5216 = vmatmul.msk.bf16.gmra.mxu1 %vm3466_vm8, %v7000_v29  ;;  %v4042_v18 = vrot.slane %v7000_v29, 1  ;;  %v3349_v34 = vshrl.u32 %v7000_v29, 16 }
 0x506   :  { %v2644_v12 = vmax.f32 %v2580_v31, 0.0  ;;  %v4456_v23 = vmul.f32 %v6899_v9, %v4388_v35 }
 0x507   :  { %v2357_v10 = vpop.f32.mrf.mxu3  ;;  %v3347_v43 = vrot.slane %v3345_v0, 1  ;;  %v3637_v40 = vpop.f32.mrf.mxu0  ;;  %v4043_v39 = vsel %vm2046_vm6, %v4040_v41, %v4042_v18 }
 0x508   :  { %v2708_v19 = vpack.c.bf16 %v2644_v12, %v2644_v12  ;;  %v2445_v57 = vadd.f32 %v2357_v10, %v6222_v26  ;;  %v4524_v33 = vadd.f32 %v6907_v1, %v4456_v23  ;;  %v3895_v30 = vadd.f32 %v6954_v44, %v3637_v40  ;;  %5271 = vmatmul.msk.bf16.gmra.mxu2 %vm3466_vm8, %v4043_v39 }
 0x509   :  { %v3348_v53 = vsel %vm1237_vm7, %v3343_v13, %v3347_v43 }
 0x50a   :  { %v2836_v8 = vunpack.c.l.b16 %v2708_v19  ;;  %v2513_v20 = vmul.f32 %v6643_v21, %v2445_v57  ;;  %v7017_v26 = vpop.f32.mrf.mxu1  ;;  %v4588_v4 = vmax.f32 %v4524_v33, 0.0  ;;  %5167 = vmatmul.msk.bf16.gmra.mxu0 %vm3466_vm8, %v3348_v53 }
 0x50b   :  { %v4268_v59 = vpop.f32.mrf.mxu2 }
 0x50c   :  { %v2876_v56 = vpack.c.b16 %v2836_v8, %v2835_v42  ;;  %v2581_v41 = vadd.f32 %v6659_v47, %v2513_v20  ;;  %v4656_v22 = vadd.f32 %v4655_v51, %v4588_v4  ;;  %v4389_v3 = vadd.f32 %v4268_v59, %v3895_v30  ;;  %v7059_v4 = vld [vmem:[%s7396_s6] ss:$0 sm:$0xff] }
 0x50d   :  { %v3351_v51 = vor.u32 %v3349_v34, %v3347_v43  ;;  %v7047_v43 = vld [vmem:[%s7395_s5] ss:$0 sm:$0xff] }
 0x50e   :  { %v3067_v37 = vshrl.u32 %v2876_v56, 16  ;;  %v4457_v11 = vmul.f32 %v6899_v9, %v4389_v3  ;;  %v2645_v15 = vmax.f32 %v2581_v41, 0.0  ;;  %v3070_v62 = vshll.u32 %v2876_v56, 16 }
 0x50f   :  { %v2359_v44 = vpop.f32.mrf.mxu3  ;;  %v3639_v5 = vpop.f32.mrf.mxu0 }
 0x510   :  { %v2446_v2 = vadd.f32 %v2359_v44, %v2001_v55  ;;  %v3069_v36 = vrot.slane %v3067_v37, 7  ;;  %v4525_v45 = vadd.f32 %v6907_v1, %v4457_v11  ;;  %v3897_v16 = vadd.f32 %v6979_v7, %v3639_v5  ;;  %v7515_v55 = vld [vmem:[#allocation44_spill] sm:$0xff]  ;;  %v7516_v37 = vld [vmem:[#allocation58_spill] sm:$0xff] }
 0x511   :  { %v2709_v52 = vpack.c.bf16 %v2645_v15, %v2645_v15 }
 0x512   :  { %v2514_v49 = vmul.f32 %v6643_v21, %v2446_v2  ;;  %v7027_v46 = vpop.f32.mrf.mxu1  ;;  %v3072_v60 = vor.u32 %v3070_v62, %v3069_v36  ;;  %v4589_v17 = vmax.f32 %v4525_v45, 0.0  ;;  %v3151_v28 = vsel %vm5565_vm4, %v3069_v36, 0 }
 0x513   :  { %v4270_v32 = vpop.f32.mrf.mxu2  ;;  %v4046_v12 = vrot.slane %v3151_v28, 1  ;;  %v3361_v35 = vshll.u32 %v3151_v28, 16  ;;  %v2837_v23 = vunpack.c.l.b16 %v2709_v52 }
 0x514   :  { %v2582_v58 = vadd.f32 %v6659_v47, %v2514_v49  ;;  %v3073_v21 = vsel %vm962_vm2, %v6989_v48, %v3072_v60  ;;  %v4657_v7 = vadd.f32 %v4656_v22, %v4589_v17  ;;  %v4390_v31 = vadd.f32 %v4270_v32, %v3897_v16  ;;  %v7517_v32 = vld [vmem:[#allocation45_spill] sm:$0xff] }
 0x515   :  { %v3353_v27 = vshll.u32 %v3073_v21, 16  ;;  %5217 = vmatmul.msk.bf16.gmra.mxu1 %vm3466_vm8, %v3073_v21  ;;  %v4044_v47 = vrot.slane %v3073_v21, 1  ;;  %v3357_v57 = vshrl.u32 %v3073_v21, 16  ;;  %v3363_v30 = vrot.slane %v3361_v35, 1  ;;  %v7518_v21 = vld [vmem:[#allocation59_spill] sm:$0xff] }
 0x516   :  { %v2646_v50 = vmax.f32 %v2582_v58, 0.0  ;;  %v4458_v54 = vmul.f32 %v6899_v9, %v4390_v31  ;;  %v2006_v22 = vadd.f32 %v7516_v37, %v7515_v55 }
 0x517   :  { %v2362_v24 = vpop.f32.mrf.mxu3  ;;  %v3355_v19 = vrot.slane %v3353_v27, 1  ;;  %v3642_v42 = vpop.f32.mrf.mxu0  ;;  %v4045_v48 = vsel %vm2046_vm6, %v4042_v18, %v4044_v47  ;;  %v4047_v40 = vsel %vm2046_vm6, %v4044_v47, %v4046_v12 }
 0x518   :  { %v2710_v0 = vpack.c.bf16 %v2646_v50, %v2646_v50  ;;  %v2447_v10 = vadd.f32 %v2362_v24, %v2004_v25  ;;  %v4526_v13 = vadd.f32 %v6907_v1, %v4458_v54  ;;  %v3900_v33 = vadd.f32 %v6994_v14, %v3642_v42  ;;  %5272 = vmatmul.msk.bf16.gmra.mxu2 %vm3466_vm8, %v4045_v48 }
 0x519   :  { %v3356_v29 = vsel %vm1237_vm7, %v3351_v51, %v3355_v19  ;;  %v3359_v18 = vor.u32 %v3357_v57, %v3355_v19 }
 0x51a   :  { %v2838_v39 = vunpack.c.l.b16 %v2710_v0  ;;  %v2515_v8 = vmul.f32 %v7047_v43, %v2447_v10  ;;  %v7053_v20 = vpop.f32.mrf.mxu1  ;;  %v4590_v56 = vmax.f32 %v4526_v13, 0.0  ;;  %5168 = vmatmul.msk.bf16.gmra.mxu0 %vm3466_vm8, %v3356_v29  ;;  %v7519_v13 = vld [vmem:[#allocation46_spill] sm:$0xff] }
 0x51b   :  { %v4273_v14 = vpop.f32.mrf.mxu2  ;;  %v3364_v59 = vsel %vm1237_vm7, %v3359_v18, %v3363_v30 }
 0x51c   :  { %v2877_v53 = vpack.c.b16 %v2838_v39, %v2837_v23  ;;  %v2583_v41 = vadd.f32 %v7059_v4, %v2515_v8  ;;  %v4658_v3 = vadd.f32 %v4657_v7, %v4590_v56  ;;  %v4391_v44 = vadd.f32 %v4273_v14, %v3900_v33  ;;  %v7520_v8 = vld [vmem:[#allocation60_spill] sm:$0xff] }
 0x51d   :  { %v2009_v7 = vadd.f32 %v7518_v21, %v7517_v32  ;;  %v2011_v33 = vadd.f32 %v7520_v8, %v7519_v13  ;;  %v7523_v8 = vld [vmem:[#allocation48_spill] sm:$0xff] }
 0x51e   :  { %v3075_v11 = vshrl.u32 %v2877_v53, 16  ;;  %v4459_v36 = vmul.f32 %v6899_v9, %v4391_v44  ;;  %v2647_v62 = vmax.f32 %v2583_v41, 0.0  ;;  %v3078_v49 = vshll.u32 %v2877_v53, 16 }
 0x51f   :  { %v2364_v2 = vpop.f32.mrf.mxu3  ;;  %v3644_v45 = vpop.f32.mrf.mxu0  ;;  %v4642_v53 = vrot.slane %v6804_v6, 4 }
 0x520   :  { %v2448_v15 = vadd.f32 %v2364_v2, %v2006_v22  ;;  %v3077_v5 = vrot.slane %v3075_v11, 7  ;;  %v4527_v16 = vadd.f32 %v6907_v1, %v4459_v36  ;;  %v3902_v17 = vadd.f32 %v7017_v26, %v3644_v45  ;;  %v7521_v45 = vld [vmem:[#allocation47_spill] sm:$0xff] }
 0x521   :  { %v2711_v25 = vpack.c.bf16 %v2647_v62, %v2647_v62  ;;  %v4643_v11 = vadd.f32 %v4642_v53, %v6804_v6  ;;  %v5367_v53 = vld [vmem:[%s7400_s10 + $0x18] sm:$0xff] }
 0x522   :  { %v2516_v60 = vmul.f32 %v7047_v43, %v2448_v15  ;;  %v7069_v58 = vpop.f32.mrf.mxu1  ;;  %v3080_v28 = vor.u32 %v3078_v49, %v3077_v5  ;;  %v4591_v63 = vmax.f32 %v4527_v16, 0.0  ;;  %v7522_v49 = vld [vmem:[#allocation61_spill] sm:$0xff]  ;;  %4807 = vmatpush.bf16.msra.mxu3 %v5367_v53  ;;  %v7528_v53 = vld [vmem:[#allocation64_spill] sm:$0xff] }
 0x523   :  { %v4275_v34 = vpop.f32.mrf.mxu2  ;;  %v2839_v12 = vunpack.c.l.b16 %v2711_v25  ;;  %v2014_v16 = vadd.f32 %v7522_v49, %v7521_v45 }
 0x524   :  { %v2584_v61 = vadd.f32 %v7059_v4, %v2516_v60  ;;  %v7074_v52 = vsel %vm5565_vm4, 0, %v3080_v28  ;;  %v4659_v50 = vadd.f32 %v4658_v3, %v4591_v63  ;;  %v4392_v27 = vadd.f32 %v4275_v34, %v3902_v17 }
 0x525   :  { %5218 = vmatmul.msk.bf16.gmra.mxu1 %vm3466_vm8, %v7074_v52  ;;  %v3368_v14 = vshll.u32 %v7074_v52, 16  ;;  %v4644_v34 = vrot.slane %v4643_v11, 2  ;;  %v3366_v32 = vshrl.u32 %v7074_v52, 16  ;;  %v4048_v21 = vrot.slane %v7074_v52, 1 }
 0x526   :  { %v2648_v31 = vmax.f32 %v2584_v61, 0.0  ;;  %v4460_v24 = vmul.f32 %v6899_v9, %v4392_v27 }
 0x527   :  { %v2367_v26 = vpop.f32.mrf.mxu3  ;;  %v3647_v35 = vpop.f32.mrf.mxu0  ;;  %v3370_v60 = vrot.slane %v3368_v14, 1 }
 0x528   :  { %v2712_v47 = vpack.c.bf16 %v2648_v31, %v2648_v31  ;;  %v2449_v51 = vadd.f32 %v2367_v26, %v2009_v7  ;;  %v4528_v54 = vadd.f32 %v6907_v1, %v4460_v24  ;;  %v3905_v19 = vadd.f32 %v7027_v46, %v3647_v35  ;;  %5273 = vmatmul.msk.bf16.gmra.mxu2 %vm3466_vm8, %v4047_v40 }
 0x52a   :  { %v2840_v0 = vunpack.c.l.b16 %v2712_v47  ;;  %v2517_v10 = vmul.f32 %v7047_v43, %v2449_v51  ;;  %v7085_v23 = vpop.f32.mrf.mxu1  ;;  %v4592_v42 = vmax.f32 %v4528_v54, 0.0  ;;  %5169 = vmatmul.msk.bf16.gmra.mxu0 %vm3466_vm8, %v3364_v59 }
 0x52b   :  { %v4278_v39 = vpop.f32.mrf.mxu2 }
 0x52c   :  { %v2878_v57 = vpack.c.b16 %v2840_v0, %v2839_v12  ;;  %v2585_v48 = vadd.f32 %v7059_v4, %v2517_v10  ;;  %v4660_v18 = vadd.f32 %v4659_v50, %v4592_v42  ;;  %v4393_v30 = vadd.f32 %v4278_v39, %v3905_v19 }
 0x52d   :  { %v3371_v12 = vor.u32 %v3370_v60, %v3366_v32  ;;  %v4645_v10 = vadd.f32 %v4644_v34, %v4643_v11  ;;  %v7525_v60 = vld [vmem:[#allocation49_spill] sm:$0xff] }
 0x52e   :  { %v3082_v29 = vshrl.u32 %v2878_v57, 16  ;;  %v4461_v40 = vmul.f32 %v6899_v9, %v4393_v30  ;;  %v2649_v59 = vmax.f32 %v2585_v48, 0.0  ;;  %v3085_v37 = vshll.u32 %v2878_v57, 16 }
 0x52f   :  { %v2369_v46 = vpop.f32.mrf.mxu3  ;;  %v3649_v55 = vpop.f32.mrf.mxu0 }
 0x530   :  { %v2450_v56 = vadd.f32 %v2369_v46, %v2011_v33  ;;  %v7093_v41 = vrot.slane %v3082_v29, 7  ;;  %v4529_v22 = vadd.f32 %v6907_v1, %v4461_v40  ;;  %v3907_v44 = vadd.f32 %v7053_v20, %v3649_v55  ;;  %v7524_v33 = vld [vmem:[#allocation62_spill] sm:$0xff] }
 0x531   :  { %v2713_v17 = vpack.c.bf16 %v2649_v59, %v2649_v59  ;;  %v2016_v29 = vadd.f32 %v7524_v33, %v7523_v8  ;;  %v4646_v46 = vrot.slane %v4645_v10, 1 }
 0x532   :  { %v2518_v3 = vmul.f32 %v7047_v43, %v2450_v56  ;;  %v7100_v2 = vpop.f32.mrf.mxu1  ;;  %v3087_v36 = vor.u32 %v3085_v37, %v7093_v41  ;;  %v4593_v15 = vmax.f32 %v4529_v22, 0.0 }
 0x533   :  { %v4280_v28 = vpop.f32.mrf.mxu2  ;;  %v2841_v47 = vunpack.c.l.b16 %v2713_v17  ;;  %v4647_v11 = vadd.f32 %v4646_v46, %v4645_v10  ;;  %v7526_v17 = vld [vmem:[#allocation63_spill] sm:$0xff] }
 0x534   :  { %v2586_v62 = vadd.f32 %v7059_v4, %v2518_v3  ;;  %v7107_v63 = vsel %vm962_vm2, %v3077_v5, %v3087_v36  ;;  %v4661_v61 = vadd.f32 %v4660_v18, %v4593_v15  ;;  %v4394_v25 = vadd.f32 %v4280_v28, %v3907_v44 }
 0x535   :  { %v3373_v6 = vshll.u32 %v7107_v63, 16  ;;  %5219 = vmatmul.msk.bf16.gmra.mxu1 %vm3466_vm8, %v7107_v63  ;;  %v4049_v7 = vrot.slane %v7107_v63, 1  ;;  %v2019_v28 = vadd.f32 %v7526_v17, %v7525_v60 }
 0x536   :  { %v2650_v20 = vmax.f32 %v2586_v62, 0.0  ;;  %v4462_v5 = vmul.f32 %v6899_v9, %v4394_v25 }
 0x537   :  { %v2372_v50 = vpop.f32.mrf.mxu3  ;;  %v7116_v26 = vrot.slane %v3373_v6, 1  ;;  %v3652_v24 = vpop.f32.mrf.mxu0  ;;  %v4050_v51 = vsel %vm2046_vm6, %v4048_v21, %v4049_v7  ;;  %v4711_v21 = vmul.f32 0.0078125, %v4647_v11 }
 0x538   :  { %v2714_v31 = vpack.c.bf16 %v2650_v20, %v2650_v20  ;;  %v2451_v27 = vadd.f32 %v2372_v50, %v2014_v16  ;;  %v4530_v0 = vadd.f32 %v6907_v1, %v4462_v5  ;;  %v3910_v54 = vadd.f32 %v7069_v58, %v3652_v24  ;;  %5274 = vmatmul.msk.bf16.gmra.mxu2 %vm3466_vm8, %v4050_v51 }
 0x539   :  { %v3376_v19 = vsel %vm1237_vm7, %v3371_v12, %v7116_v26  ;;  %v3377_v50 = vshrl.u32 %v7107_v63, 16 }
 0x53a   :  { %v2842_v35 = vunpack.c.l.b16 %v2714_v31  ;;  %v2519_v52 = vmul.f32 %v7047_v43, %v2451_v27  ;;  %v7127_v57 = vpop.f32.mrf.mxu1  ;;  %v4594_v48 = vmax.f32 %v4530_v0, 0.0  ;;  %5170 = vmatmul.msk.bf16.gmra.mxu0 %vm3466_vm8, %v3376_v19 }
 0x53b   :  { %v4283_v13 = vpop.f32.mrf.mxu2 }
 0x53c   :  { %v2879_v42 = vpack.c.b16 %v2842_v35, %v2841_v47  ;;  %v2587_v39 = vadd.f32 %v7059_v4, %v2519_v52  ;;  %v4662_v58 = vadd.f32 %v4661_v61, %v4594_v48  ;;  %v4395_v30 = vadd.f32 %v4283_v13, %v3910_v54 }
 0x53d   :  { %v3379_v52 = vor.u32 %v3377_v50, %v7116_v26  ;;  %v4715_v26 = vpack.c.bf16 %v4711_v21, %v4711_v21 }
 0x53e   :  { %v3090_v18 = vshrl.u32 %v2879_v42, 16  ;;  %v4663_v56 = vrot.slane %v4662_v58, 4  ;;  %v2651_v59 = vmax.f32 %v2587_v39, 0.0  ;;  %v3093_v22 = vshll.u32 %v2879_v42, 16 }
 0x53f   :  { %v2374_v40 = vpop.f32.mrf.mxu3  ;;  %v3654_v55 = vpop.f32.mrf.mxu0  ;;  %v4463_v36 = vmul.f32 %v6899_v9, %v4395_v30  ;;  %v7527_v30 = vld [vmem:[#allocation50_spill] sm:$0xff]  ;;  %v4743_v11 = vunpack.c.l.b16 %v4715_v26 }
 0x540   :  { %v2452_v14 = vadd.f32 %v2374_v40, %v2016_v29  ;;  %v7136_v37 = vrot.slane %v3090_v18, 7  ;;  %v4664_v3 = vadd.f32 %v4663_v56, %v4662_v58  ;;  %v3912_v15 = vadd.f32 %v7085_v23, %v3654_v55 }
 0x541   :  { %v2715_v61 = vpack.c.bf16 %v2651_v59, %v2651_v59  ;;  %v4531_v31 = vadd.f32 %v6907_v1, %v4463_v36  ;;  %v2021_v46 = vadd.f32 %v7528_v53, %v7527_v30 }
 0x542   :  { %v2520_v44 = vmul.f32 %v7047_v43, %v2452_v14  ;;  %v7141_v62 = vpop.f32.mrf.mxu1  ;;  %v3095_v45 = vor.u32 %v3093_v22, %v7136_v37  ;;  %v4665_v49 = vrot.slane %v4664_v3, 2 }
 0x543   :  { %v4285_v20 = vpop.f32.mrf.mxu2  ;;  %v2843_v12 = vunpack.c.l.b16 %v2715_v61  ;;  %v4595_v33 = vmax.f32 %v4531_v31, 0.0  ;;  %v7529_v31 = vld [vmem:[#allocation51_spill] sm:$0xff] }
 0x544   :  { %v2588_v16 = vadd.f32 %v7059_v4, %v2520_v44  ;;  %v7149_v25 = vsel %vm962_vm2, %v7093_v41, %v3095_v45  ;;  %v4666_v6 = vadd.f32 %v4665_v49, %v4664_v3  ;;  %v4396_v32 = vadd.f32 %v4285_v20, %v3912_v15 }
 0x545   :  { %v3381_v23 = vshll.u32 %v7149_v25, 16  ;;  %5220 = vmatmul.msk.bf16.gmra.mxu1 %vm3466_vm8, %v7149_v25  ;;  %v4051_v5 = vrot.slane %v7149_v25, 1  ;;  %v3385_v20 = vshrl.u32 %v7149_v25, 16 }
 0x546   :  { %v2652_v34 = vmax.f32 %v2588_v16, 0.0  ;;  %v4667_v47 = vrot.slane %v4666_v6, 1  ;;  %v4464_v41 = vmul.f32 %v6899_v9, %v4396_v32 }
 0x547   :  { %v2377_v27 = vpop.f32.mrf.mxu3  ;;  %v3657_v35 = vpop.f32.mrf.mxu0  ;;  %v4052_v0 = vsel %vm2046_vm6, %v4049_v7, %v4051_v5  ;;  %v3383_v54 = vrot.slane %v3381_v23, 1 }
 0x548   :  { %v2716_v24 = vpack.c.bf16 %v2652_v34, %v2652_v34  ;;  %v2453_v51 = vadd.f32 %v2377_v27, %v2019_v28  ;;  %v4668_v10 = vadd.f32 %v4667_v47, %v4666_v6  ;;  %v4532_v42 = vadd.f32 %v6907_v1, %v4464_v41  ;;  %5275 = vmatmul.msk.bf16.gmra.mxu2 %vm3466_vm8, %v4052_v0  ;;  %v7530_v27 = vld [vmem:[#allocation65_spill] sm:$0xff] }
 0x549   :  { %v3915_v39 = vadd.f32 %v7100_v2, %v3657_v35  ;;  %v3384_v13 = vsel %vm1237_vm7, %v3379_v52, %v3383_v54  ;;  %v2024_v47 = vadd.f32 %v7530_v27, %v7529_v31  ;;  %v3387_v35 = vor.u32 %v3385_v20, %v3383_v54 }
 0x54a   :  { %v2844_v19 = vunpack.c.l.b16 %v2716_v24  ;;  %v2521_v48 = vmul.f32 %v7047_v43, %v2453_v51  ;;  %v7169_v8 = vpop.f32.mrf.mxu1  ;;  %v4712_v63 = vmul.f32 0.0078125, %v4668_v10  ;;  %v4596_v29 = vmax.f32 %v4532_v42, 0.0  ;;  %5171 = vmatmul.msk.bf16.gmra.mxu0 %vm3466_vm8, %v3384_v13 }
 0x54b   :  { %v4288_v58 = vpop.f32.mrf.mxu2 }
 0x54c   :  { %v2880_v7 = vpack.c.b16 %v2844_v19, %v2843_v12  ;;  %v2589_v18 = vadd.f32 %v7059_v4, %v2521_v48  ;;  %v4716_v40 = vpack.c.bf16 %v4712_v63, %v4712_v63  ;;  %v4669_v2 = vadd.f32 %v4596_v29, %v4595_v33 }
 0x54d   :  { %v4397_v14 = vadd.f32 %v4288_v58, %v3915_v39  ;;  %v7532_v58 = vld [vmem:[#allocation66_spill] sm:$0xff] }
 0x54e   :  { %v3098_v56 = vshrl.u32 %v2880_v7, 16  ;;  %v4744_v55 = vunpack.c.l.b16 %v4716_v40  ;;  %v3101_v44 = vshll.u32 %v2880_v7, 16  ;;  %v2653_v36 = vmax.f32 %v2589_v18, 0.0  ;;  %v7531_v18 = vld [vmem:[#allocation52_spill] sm:$0xff] }
 0x54f   :  { %v2379_v59 = vpop.f32.mrf.mxu3  ;;  %v4465_v15 = vmul.f32 %v6899_v9, %v4397_v14  ;;  %v3659_v45 = vpop.f32.mrf.mxu0  ;;  %v2026_v30 = vadd.f32 %v7532_v58, %v7531_v18 }
 0x550   :  { %v2454_v22 = vadd.f32 %v2379_v59, %v2021_v46  ;;  %v7175_v3 = vrot.slane %v3098_v56, 7  ;;  %v3917_v16 = vadd.f32 %v7127_v57, %v3659_v45  ;;  %v7184_v61 = vsel %vm4747_vm9, %v4744_v55, %v4743_v11 }
 0x551   :  { %v4533_v17 = vadd.f32 %v6907_v1, %v4465_v15  ;;  %v2717_v32 = vpack.c.bf16 %v2653_v36, %v2653_v36 }
 0x552   :  { %v2522_v49 = vmul.f32 %v7047_v43, %v2454_v22  ;;  %v3103_v60 = vor.u32 %v3101_v44, %v7175_v3  ;;  %v7182_v28 = vpop.f32.mrf.mxu1 }
 0x553   :  { %v4597_v23 = vmax.f32 %v4533_v17, 0.0  ;;  %v4290_v21 = vpop.f32.mrf.mxu2  ;;  %v2845_v42 = vunpack.c.l.b16 %v2717_v32  ;;  %v7534_v17 = vld [vmem:[#allocation67_spill] sm:$0xff] }
 0x554   :  { %v2590_v6 = vadd.f32 %v7059_v4, %v2522_v49  ;;  %v7190_v34 = vsel %vm962_vm2, %v7136_v37, %v3103_v60  ;;  %v4398_v41 = vadd.f32 %v4290_v21, %v3917_v16  ;;  %v7533_v60 = vld [vmem:[#allocation53_spill] sm:$0xff] }
 0x555   :  { %v3389_v57 = vshll.u32 %v7190_v34, 16  ;;  %v4053_v50 = vrot.slane %v7190_v34, 1  ;;  %5221 = vmatmul.msk.bf16.gmra.mxu1 %vm3466_vm8, %v7190_v34  ;;  %v4670_v51 = vadd.f32 %v4669_v2, %v4597_v23  ;;  %v2029_v20 = vadd.f32 %v7534_v17, %v7533_v60 }
 0x556   :  { %v2654_v24 = vmax.f32 %v2590_v6, 0.0  ;;  %v4466_v10 = vmul.f32 %v6899_v9, %v4398_v41  ;;  %v3393_v27 = vshrl.u32 %v7190_v34, 16 }
 0x557   :  { %v2382_v12 = vpop.f32.mrf.mxu3  ;;  %v4054_v37 = vsel %vm2046_vm6, %v4051_v5, %v4053_v50  ;;  %v3391_v0 = vrot.slane %v3389_v57, 1  ;;  %v3662_v48 = vpop.f32.mrf.mxu0 }
 0x558   :  { %v2718_v52 = vpack.c.bf16 %v2654_v24, %v2654_v24  ;;  %v2455_v19 = vadd.f32 %v2382_v12, %v2024_v47  ;;  %v4534_v63 = vadd.f32 %v6907_v1, %v4466_v10  ;;  %v3920_v7 = vadd.f32 %v7141_v62, %v3662_v48  ;;  %5276 = vmatmul.msk.bf16.gmra.mxu2 %vm3466_vm8, %v4054_v37 }
 0x559   :  { %v3392_v39 = vsel %vm1237_vm7, %v3387_v35, %v3391_v0  ;;  %v3395_v10 = vor.u32 %v3393_v27, %v3391_v0  ;;  %v7535_v0 = vld [vmem:[#allocation54_spill] sm:$0xff] }
 0x55a   :  { %v2846_v13 = vunpack.c.l.b16 %v2718_v52  ;;  %v2523_v33 = vmul.f32 %v7047_v43, %v2455_v19  ;;  %v7209_v25 = vpop.f32.mrf.mxu1  ;;  %v4598_v54 = vmax.f32 %v4534_v63, 0.0  ;;  %5172 = vmatmul.msk.bf16.gmra.mxu0 %vm3466_vm8, %v3392_v39 }
 0x55b   :  { %v4293_v26 = vpop.f32.mrf.mxu2 }
 0x55c   :  { %v2881_v5 = vpack.c.b16 %v2846_v13, %v2845_v42  ;;  %v2591_v29 = vadd.f32 %v7059_v4, %v2523_v33  ;;  %v4671_v46 = vadd.f32 %v4670_v51, %v4598_v54  ;;  %v4399_v40 = vadd.f32 %v4293_v26, %v3920_v7 }
 0x55e   :  { %v3106_v53 = vshrl.u32 %v2881_v5, 16  ;;  %v4467_v62 = vmul.f32 %v6899_v9, %v4399_v40  ;;  %v2655_v59 = vmax.f32 %v2591_v29, 0.0  ;;  %v3109_v22 = vshll.u32 %v2881_v5, 16  ;;  %v7536_v5 = vld [vmem:[#allocation68_spill] sm:$0xff] }
 0x55f   :  { %v2384_v56 = vpop.f32.mrf.mxu3  ;;  %v3664_v55 = vpop.f32.mrf.mxu0  ;;  %v2031_v54 = vadd.f32 %v7536_v5, %v7535_v0  ;;  %v7291_v0 = vld [vmem:[%s7398_s8] ss:$0 sm:$0xff] }
 0x560   :  { %v2456_v2 = vadd.f32 %v2384_v56, %v2026_v30  ;;  %v7216_v14 = vrot.slane %v3106_v53, 7  ;;  %v4535_v44 = vadd.f32 %v6907_v1, %v4467_v62  ;;  %v3922_v36 = vadd.f32 %v7169_v8, %v3664_v55 }
 0x561   :  { %v2719_v6 = vpack.c.bf16 %v2655_v59, %v2655_v59 }
 0x562   :  { %v2524_v11 = vmul.f32 %v7047_v43, %v2456_v2  ;;  %v7221_v15 = vpop.f32.mrf.mxu1  ;;  %v3111_v45 = vor.u32 %v3109_v22, %v7216_v14  ;;  %v4599_v49 = vmax.f32 %v4535_v44, 0.0 }
 0x563   :  { %v4295_v32 = vpop.f32.mrf.mxu2 }
 0x564   :  { %v2592_v16 = vadd.f32 %v7059_v4, %v2524_v11  ;;  %v7229_v23 = vsel %vm962_vm2, %v7175_v3, %v3111_v45  ;;  %v4672_v21 = vadd.f32 %v4671_v46, %v4599_v49  ;;  %v4400_v31 = vadd.f32 %v4295_v32, %v3922_v36  ;;  %v7537_v36 = vld [vmem:[#allocation55_spill] sm:$0xff]  ;;  %v7538_v45 = vld [vmem:[#allocation69_spill] sm:$0xff] }
 0x565   :  { %v3397_v8 = vshll.u32 %v7229_v23, 16  ;;  %5222 = vmatmul.msk.bf16.gmra.mxu1 %vm3466_vm8, %v7229_v23  ;;  %v4055_v47 = vrot.slane %v7229_v23, 1  ;;  %v2847_v3 = vunpack.c.l.b16 %v2719_v6  ;;  %v2034_v49 = vadd.f32 %v7538_v45, %v7537_v36 }
 0x566   :  { %v2656_v57 = vmax.f32 %v2592_v16, 0.0  ;;  %v4468_v51 = vmul.f32 %v6899_v9, %v4400_v31 }
 0x567   :  { %v2387_v24 = vpop.f32.mrf.mxu3  ;;  %v3399_v37 = vrot.slane %v3397_v8, 1  ;;  %v3667_v35 = vpop.f32.mrf.mxu0  ;;  %v4056_v52 = vsel %vm2046_vm6, %v4053_v50, %v4055_v47 }
 0x568   :  { %v2720_v41 = vpack.c.bf16 %v2656_v57, %v2656_v57  ;;  %v2457_v12 = vadd.f32 %v2387_v24, %v2029_v20  ;;  %v4536_v42 = vadd.f32 %v6907_v1, %v4468_v51  ;;  %v3925_v39 = vadd.f32 %v7182_v28, %v3667_v35  ;;  %5277 = vmatmul.msk.bf16.gmra.mxu2 %vm3466_vm8, %v4056_v52 }
 0x569   :  { %v3400_v13 = vsel %vm1237_vm7, %v3395_v10, %v3399_v37 }
 0x56a   :  { %v2848_v19 = vunpack.c.l.b16 %v2720_v41  ;;  %v2525_v48 = vmul.f32 %v7047_v43, %v2457_v12  ;;  %v7245_v63 = vpop.f32.mrf.mxu1  ;;  %v4600_v7 = vmax.f32 %v4536_v42, 0.0  ;;  %5173 = vmatmul.msk.bf16.gmra.mxu0 %vm3466_vm8, %v3400_v13  ;;  %v7540_v13 = vld [vmem:[#allocation70_spill] sm:$0xff] }
 0x56b   :  { %v4298_v50 = vpop.f32.mrf.mxu2 }
 0x56c   :  { %v2882_v33 = vpack.c.b16 %v2848_v19, %v2847_v3  ;;  %v2593_v34 = vadd.f32 %v7059_v4, %v2525_v48  ;;  %v4673_v26 = vadd.f32 %v4672_v21, %v4600_v7  ;;  %v4401_v18 = vadd.f32 %v4298_v50, %v3925_v39  ;;  %v7539_v39 = vld [vmem:[#allocation56_spill] sm:$0xff] }
 0x56d   :  { %v3401_v21 = vshrl.u32 %v7229_v23, 16 }
 0x56e   :  { %v3114_v29 = vshrl.u32 %v2882_v33, 16  ;;  %v4469_v58 = vmul.f32 %v6899_v9, %v4401_v18  ;;  %v2657_v46 = vmax.f32 %v2593_v34, 0.0  ;;  %v3117_v56 = vshll.u32 %v2882_v33, 16 }
 0x56f   :  { %v2389_v28 = vpop.f32.mrf.mxu3  ;;  %v3669_v40 = vpop.f32.mrf.mxu0  ;;  %v3403_v3 = vor.u32 %v3401_v21, %v3399_v37 }
 0x570   :  { %v2458_v30 = vadd.f32 %v2389_v28, %v2031_v54  ;;  %v7252_v53 = vrot.slane %v3114_v29, 7  ;;  %v4537_v62 = vadd.f32 %v6907_v1, %v4469_v58  ;;  %v3927_v59 = vadd.f32 %v7209_v25, %v3669_v40  ;;  %v7297_v58 = vld [vmem:[%s7399_s9] ss:$0 sm:$0xff] }
 0x571   :  { %v2721_v16 = vpack.c.bf16 %v2657_v46, %v2657_v46 }
 0x572   :  { %v2526_v2 = vmul.f32 %v7047_v43, %v2458_v30  ;;  %v7257_v55 = vpop.f32.mrf.mxu1  ;;  %v3119_v22 = vor.u32 %v3117_v56, %v7252_v53  ;;  %v4601_v44 = vmax.f32 %v4537_v62, 0.0 }
 0x573   :  { %v4300_v60 = vpop.f32.mrf.mxu2 }
 0x574   :  { %v2594_v11 = vadd.f32 %v7059_v4, %v2526_v2  ;;  %v7265_v17 = vsel %vm962_vm2, %v7216_v14, %v3119_v22  ;;  %v4674_v20 = vadd.f32 %v4673_v26, %v4601_v44  ;;  %v4402_v32 = vadd.f32 %v4300_v60, %v3927_v59 }
 0x575   :  { %v3405_v25 = vshll.u32 %v7265_v17, 16  ;;  %5223 = vmatmul.msk.bf16.gmra.mxu1 %vm3466_vm8, %v7265_v17  ;;  %v4057_v57 = vrot.slane %v7265_v17, 1  ;;  %v2849_v14 = vunpack.c.l.b16 %v2721_v16  ;;  %v3409_v22 = vshrl.u32 %v7265_v17, 16 }
 0x576   :  { %v2658_v6 = vmax.f32 %v2594_v11, 0.0  ;;  %v4470_v27 = vmul.f32 %v6899_v9, %v4402_v32 }
 0x577   :  { %v2392_v31 = vpop.f32.mrf.mxu3  ;;  %v3407_v41 = vrot.slane %v3405_v25, 1  ;;  %v3672_v51 = vpop.f32.mrf.mxu0  ;;  %v4058_v12 = vsel %vm2046_vm6, %v4055_v47, %v4057_v57 }
 0x578   :  { %v2722_v8 = vpack.c.bf16 %v2658_v6, %v2658_v6  ;;  %v2459_v24 = vadd.f32 %v2392_v31, %v2034_v49  ;;  %v4538_v52 = vadd.f32 %v6907_v1, %v4470_v27  ;;  %v3930_v23 = vadd.f32 %v7221_v15, %v3672_v51  ;;  %5278 = vmatmul.msk.bf16.gmra.mxu2 %vm3466_vm8, %v4058_v12  ;;  %v5366_v15 = vld [vmem:[%s7400_s10 + $0x10] sm:$0xff] }
 0x579   :  { %v3408_v19 = vsel %vm1237_vm7, %v3403_v3, %v3407_v41  ;;  %v2036_v1 = vadd.f32 %v7540_v13, %v7539_v39  ;;  %4808 = vmatpush.bf16.msra.mxu3 %v5366_v15  ;;  %v3411_v6 = vor.u32 %v3409_v22, %v3407_v41 }
 0x57a   :  { %v2850_v35 = vunpack.c.l.b16 %v2722_v8  ;;  %v2527_v10 = vmul.f32 %v7047_v43, %v2459_v24  ;;  %v7279_v42 = vpop.f32.mrf.mxu1  ;;  %v4602_v48 = vmax.f32 %v4538_v52, 0.0  ;;  %5174 = vmatmul.msk.bf16.gmra.mxu0 %vm3466_vm8, %v3408_v19 }
 0x57b   :  { %v4303_v37 = vpop.f32.mrf.mxu2 }
 0x57c   :  { %v2883_v9 = vpack.c.b16 %v2850_v35, %v2849_v14  ;;  %v2595_v47 = vadd.f32 %v7059_v4, %v2527_v10  ;;  %v4675_v7 = vadd.f32 %v4674_v20, %v4602_v48  ;;  %v4403_v34 = vadd.f32 %v4303_v37, %v3930_v23 }
 0x57e   :  { %v3122_v33 = vshrl.u32 %v2883_v9, 16  ;;  %v4471_v5 = vmul.f32 %v7291_v0, %v4403_v34  ;;  %v2659_v26 = vmax.f32 %v2595_v47, 0.0  ;;  %v3125_v28 = vshll.u32 %v2883_v9, 16 }
 0x57f   :  { %v2394_v50 = vpop.f32.mrf.mxu3  ;;  %v3674_v18 = vpop.f32.mrf.mxu0 }
 0x580   :  { %v2460_v54 = vadd.f32 %v2394_v50, %v2036_v1  ;;  %v3124_v29 = vrot.slane %v3122_v33, 7  ;;  %v4539_v30 = vadd.f32 %v7297_v58, %v4471_v5  ;;  %v3932_v40 = vadd.f32 %v7245_v63, %v3674_v18 }
 0x581   :  { %v2723_v44 = vpack.c.bf16 %v2659_v26, %v2659_v26 }
 0x582   :  { %v2528_v46 = vmul.f32 %v7047_v43, %v2460_v54  ;;  %v7302_v56 = vpop.f32.mrf.mxu1  ;;  %v3127_v62 = vor.u32 %v3125_v28, %v3124_v29  ;;  %v4603_v2 = vmax.f32 %v4539_v30, 0.0 }
 0x583   :  { %v4305_v11 = vpop.f32.mrf.mxu2 }
 0x584   :  { %v2596_v59 = vadd.f32 %v7059_v4, %v2528_v46  ;;  %v3128_v36 = vsel %vm962_vm2, %v7252_v53, %v3127_v62  ;;  %v4676_v45 = vadd.f32 %v4675_v7, %v4603_v2  ;;  %v4404_v16 = vadd.f32 %v4305_v11, %v3932_v40 }
 0x585   :  { %v3413_v60 = vshll.u32 %v3128_v36, 16  ;;  %5224 = vmatmul.msk.bf16.gmra.mxu1 %vm3466_vm8, %v3128_v36  ;;  %v4059_v43 = vrot.slane %v3128_v36, 1  ;;  %v2851_v4 = vunpack.c.l.b16 %v2723_v44  ;;  %v3417_v47 = vshrl.u32 %v3128_v36, 16 }
 0x586   :  { %v2660_v49 = vmax.f32 %v2596_v59, 0.0  ;;  %v4472_v20 = vmul.f32 %v7291_v0, %v4404_v16 }
 0x587   :  { %v3415_v32 = vrot.slane %v3413_v60, 1  ;;  %v3677_v25 = vpop.f32.mrf.mxu0  ;;  %v4060_v17 = vsel %vm2046_vm6, %v4057_v57, %v4059_v43 }
 0x588   :  { %v2724_v63 = vpack.c.bf16 %v2660_v49, %v2660_v49  ;;  %v4540_v31 = vadd.f32 %v7297_v58, %v4472_v20  ;;  %v3935_v53 = vadd.f32 %v7257_v55, %v3677_v25  ;;  %5279 = vmatmul.msk.bf16.gmra.mxu2 %vm3466_vm8, %v4060_v17 }
 0x589   :  { %v3416_v8 = vsel %vm1237_vm7, %v3411_v6, %v3415_v32  ;;  %v3419_v5 = vor.u32 %v3417_v47, %v3415_v32 }
 0x58a   :  { %v2852_v21 = vunpack.c.l.b16 %v2724_v63  ;;  %v3941_v27 = vpop.f32.mrf.mxu1  ;;  %v4604_v14 = vmax.f32 %v4540_v31, 0.0  ;;  %5175 = vmatmul.msk.bf16.gmra.mxu0 %vm3466_vm8, %v3416_v8 }
 0x58b   :  { %v4308_v41 = vpop.f32.mrf.mxu2 }
 0x58c   :  { %v2884_v24 = vpack.c.b16 %v2852_v21, %v2851_v4  ;;  %v4677_v12 = vadd.f32 %v4676_v45, %v4604_v14  ;;  %v4405_v3 = vadd.f32 %v4308_v41, %v3935_v53 }
 0x58e   :  { %v3130_v51 = vshrl.u32 %v2884_v24, 16  ;;  %v4473_v57 = vmul.f32 %v7291_v0, %v4405_v3  ;;  %v3133_v52 = vshll.u32 %v2884_v24, 16 }
 0x58f   :  { %v3679_v10 = vpop.f32.mrf.mxu0 }
 0x590   :  { %v3132_v35 = vrot.slane %v3130_v51, 7  ;;  %v4541_v55 = vadd.f32 %v7297_v58, %v4473_v57  ;;  %v3937_v23 = vadd.f32 %v7279_v42, %v3679_v10 }
 0x592   :  { %v3135_v19 = vor.u32 %v3133_v52, %v3132_v35  ;;  %v3152_v9 = vsel %vm5565_vm4, %v3132_v35, 0  ;;  %v3944_v48 = vpop.f32.mrf.mxu1  ;;  %v4605_v37 = vmax.f32 %v4541_v55, 0.0 }
 0x593   :  { %v4310_v13 = vpop.f32.mrf.mxu2  ;;  %v4063_v7 = vrot.slane %v3152_v9, 1  ;;  %v3429_v34 = vshll.u32 %v3152_v9, 16 }
 0x594   :  { %v3136_v39 = vsel %vm962_vm2, %v3124_v29, %v3135_v19  ;;  %v4678_v15 = vadd.f32 %v4677_v12, %v4605_v37  ;;  %v4406_v50 = vadd.f32 %v4310_v13, %v3937_v23  ;;  %v5365_v13 = vld [vmem:[%s7400_s10 + $0x8] sm:$0xff] }
 0x595   :  { %v3421_v1 = vshll.u32 %v3136_v39, 16  ;;  %v4061_v33 = vrot.slane %v3136_v39, 1  ;;  %5225 = vmatmul.msk.bf16.gmra.mxu1 %vm3466_vm8, %v3136_v39  ;;  %v3425_v42 = vshrl.u32 %v3136_v39, 16  ;;  %v3431_v46 = vrot.slane %v3429_v34, 1  ;;  %4809 = vmatpush.bf16.msra.mxu3 %v5365_v13 }
 0x596   :  { %v4474_v18 = vmul.f32 %v7291_v0, %v4406_v50 }
 0x597   :  { %v4062_v54 = vsel %vm2046_vm6, %v4059_v43, %v4061_v33  ;;  %v3423_v38 = vrot.slane %v3421_v1, 1  ;;  %v4064_v26 = vsel %vm2046_vm6, %v4061_v33, %v4063_v7  ;;  %v3682_v28 = vpop.f32.mrf.mxu0 }
 0x598   :  { %v4542_v40 = vadd.f32 %v7297_v58, %v4474_v18  ;;  %v3940_v62 = vadd.f32 %v7302_v56, %v3682_v28  ;;  %5280 = vmatmul.msk.bf16.gmra.mxu2 %vm3466_vm8, %v4062_v54 }
 0x599   :  { %v3424_v29 = vsel %vm1237_vm7, %v3419_v5, %v3423_v38  ;;  %v3427_v30 = vor.u32 %v3425_v42, %v3423_v38 }
 0x59a   :  { %v3946_v2 = vpop.f32.mrf.mxu1  ;;  %v4606_v22 = vmax.f32 %v4542_v40, 0.0  ;;  %5176 = vmatmul.msk.bf16.gmra.mxu0 %vm3466_vm8, %v3424_v29 }
 0x59b   :  { %v3432_v59 = vsel %vm1237_vm7, %v3427_v30, %v3431_v46  ;;  %v4313_v44 = vpop.f32.mrf.mxu2 }
 0x59c   :  { %v4679_v11 = vadd.f32 %v4678_v15, %v4606_v22  ;;  %v4407_v36 = vadd.f32 %v4313_v44, %v3940_v62 }
 0x59e   :  { %v4475_v45 = vmul.f32 %v7291_v0, %v4407_v36 }
 0x59f   :  { %v3684_v49 = vpop.f32.mrf.mxu0 }
 0x5a0   :  { %v4543_v16 = vadd.f32 %v7297_v58, %v4475_v45  ;;  %v3942_v60 = vadd.f32 %v3941_v27, %v3684_v49 }
 0x5a2   :  { %v3949_v43 = vpop.f32.mrf.mxu1  ;;  %v4607_v63 = vmax.f32 %v4543_v16, 0.0 }
 0x5a3   :  { %v4315_v56 = vpop.f32.mrf.mxu2 }
 0x5a4   :  { %v4680_v20 = vadd.f32 %v4679_v11, %v4607_v63  ;;  %v4408_v6 = vadd.f32 %v4315_v56, %v3942_v60 }
 0x5a6   :  { %v4476_v32 = vmul.f32 %v7291_v0, %v4408_v6 }
 0x5a7   :  { %v3687_v4 = vpop.f32.mrf.mxu0 }
 0x5a8   :  { %v4544_v25 = vadd.f32 %v7297_v58, %v4476_v32  ;;  %v3945_v17 = vadd.f32 %v3944_v48, %v3687_v4  ;;  %5281 = vmatmul.msk.bf16.gmra.mxu2 %vm3466_vm8, %v4064_v26 }
 0x5aa   :  { %v3951_v21 = vpop.f32.mrf.mxu1  ;;  %v4608_v31 = vmax.f32 %v4544_v25, 0.0  ;;  %5177 = vmatmul.msk.bf16.gmra.mxu0 %vm3466_vm8, %v3432_v59 }
 0x5ab   :  { %v4318_v53 = vpop.f32.mrf.mxu2 }
 0x5ac   :  { %v4681_v8 = vadd.f32 %v4680_v20, %v4608_v31  ;;  %v4409_v27 = vadd.f32 %v4318_v53, %v3945_v17 }
 0x5ae   :  { %v4477_v24 = vmul.f32 %v7291_v0, %v4409_v27 }
 0x5af   :  { %v3689_v14 = vpop.f32.mrf.mxu0 }
 0x5b0   :  { %v4545_v41 = vadd.f32 %v7297_v58, %v4477_v24  ;;  %v3947_v51 = vadd.f32 %v3946_v2, %v3689_v14 }
 0x5b2   :  { %v3954_v12 = vpop.f32.mrf.mxu1  ;;  %v4609_v3 = vmax.f32 %v4545_v41, 0.0 }
 0x5b3   :  { %v4320_v57 = vpop.f32.mrf.mxu2 }
 0x5b4   :  { %v4682_v35 = vadd.f32 %v4681_v8, %v4609_v3  ;;  %v4410_v52 = vadd.f32 %v4320_v57, %v3947_v51 }
 0x5b6   :  { %v4478_v10 = vmul.f32 %v7291_v0, %v4410_v52 }
 0x5b7   :  { %v3692_v55 = vpop.f32.mrf.mxu0 }
 0x5b8   :  { %v4546_v23 = vadd.f32 %v7297_v58, %v4478_v10  ;;  %v3950_v19 = vadd.f32 %v3949_v43, %v3692_v55 }
 0x5ba   :  { %v3956_v9 = vpop.f32.mrf.mxu1  ;;  %v4610_v48 = vmax.f32 %v4546_v23, 0.0 }
 0x5bb   :  { %v4323_v47 = vpop.f32.mrf.mxu2 }
 0x5bc   :  { %v4683_v37 = vadd.f32 %v4682_v35, %v4610_v48  ;;  %v4411_v39 = vadd.f32 %v4323_v47, %v3950_v19 }
 0x5be   :  { %v4684_v1 = vrot.slane %v4683_v37, 4  ;;  %v4479_v50 = vmul.f32 %v7291_v0, %v4411_v39 }
 0x5bf   :  { %v3694_v33 = vpop.f32.mrf.mxu0 }
 0x5c0   :  { %v4685_v7 = vadd.f32 %v4684_v1, %v4683_v37  ;;  %v3952_v34 = vadd.f32 %v3951_v21, %v3694_v33  ;;  %v4547_v18 = vadd.f32 %v7297_v58, %v4479_v50  ;;  %v5364_v37 = vld [vmem:[%s7400_s10] sm:$0xff] }
 0x5c1   :  { %4810 = vmatpush.bf16.msra.mxu3 %v5364_v37 }
 0x5c2   :  { %v4686_v15 = vrot.slane %v4685_v7, 2  ;;  %v3959_v5 = vpop.f32.mrf.mxu1  ;;  %v4611_v2 = vmax.f32 %v4547_v18, 0.0 }
 0x5c3   :  { %v4325_v42 = vpop.f32.mrf.mxu2 }
 0x5c4   :  { %v4687_v54 = vadd.f32 %v4686_v15, %v4685_v7  ;;  %v4412_v38 = vadd.f32 %v4325_v42, %v3952_v34 }
 0x5c6   :  { %v4688_v26 = vrot.slane %v4687_v54, 1  ;;  %v4480_v28 = vmul.f32 %v7291_v0, %v4412_v38 }
 0x5c7   :  { %v3697_v29 = vpop.f32.mrf.mxu0 }
 0x5c8   :  { %v4689_v30 = vadd.f32 %v4688_v26, %v4687_v54  ;;  %v4548_v46 = vadd.f32 %v7297_v58, %v4480_v28  ;;  %v3955_v40 = vadd.f32 %v3954_v12, %v3697_v29 }
 0x5ca   :  { %v4713_v62 = vmul.f32 0.0078125, %v4689_v30  ;;  %v4612_v59 = vmax.f32 %v4548_v46, 0.0  ;;  %v3961_v45 = vpop.f32.mrf.mxu1 }
 0x5cb   :  { %v4328_v22 = vpop.f32.mrf.mxu2 }
 0x5cc   :  { %v4717_v44 = vpack.c.bf16 %v4713_v62, %v4713_v62  ;;  %v4690_v11 = vadd.f32 %v4612_v59, %v4611_v2  ;;  %v4413_v36 = vadd.f32 %v4328_v22, %v3955_v40 }
 0x5ce   :  { %v4745_v49 = vunpack.c.l.b16 %v4717_v44  ;;  %v4481_v16 = vmul.f32 %v7291_v0, %v4413_v36 }
 0x5cf   :  { %v3699_v60 = vpop.f32.mrf.mxu0 }
 0x5d0   :  { %v4549_v43 = vadd.f32 %v7297_v58, %v4481_v16  ;;  %v3957_v63 = vadd.f32 %v3956_v9, %v3699_v60  ;;  %v7352_v56 = vsel %vm4749_vm10, %v4745_v49, %v7184_v61 }
 0x5d2   :  { %v4613_v20 = vmax.f32 %v4549_v43, 0.0  ;;  %v3964_v17 = vpop.f32.mrf.mxu1 }
 0x5d3   :  { %v4330_v6 = vpop.f32.mrf.mxu2 }
 0x5d4   :  { %v4691_v32 = vadd.f32 %v4690_v11, %v4613_v20  ;;  %v4414_v4 = vadd.f32 %v4330_v6, %v3957_v63 }
 0x5d6   :  { %v4482_v25 = vmul.f32 %v7291_v0, %v4414_v4 }
 0x5d7   :  { %v3702_v21 = vpop.f32.mrf.mxu0 }
 0x5d8   :  { %v4550_v31 = vadd.f32 %v7297_v58, %v4482_v25  ;;  %v3960_v53 = vadd.f32 %v3959_v5, %v3702_v21 }
 0x5da   :  { %v4614_v8 = vmax.f32 %v4550_v31, 0.0  ;;  %v3966_v12 = vpop.f32.mrf.mxu1 }
 0x5db   :  { %v4333_v27 = vpop.f32.mrf.mxu2 }
 0x5dc   :  { %v4692_v24 = vadd.f32 %v4691_v32, %v4614_v8  ;;  %v4415_v14 = vadd.f32 %v4333_v27, %v3960_v53 }
 0x5de   :  { %v4483_v41 = vmul.f32 %v7291_v0, %v4415_v14 }
 0x5df   :  { %v3704_v51 = vpop.f32.mrf.mxu0 }
 0x5e0   :  { %v4551_v61 = vadd.f32 %v7297_v58, %v4483_v41  ;;  %v3962_v42 = vadd.f32 %v3961_v45, %v3704_v51 }
 0x5e2   :  { %v4615_v3 = vmax.f32 %v4551_v61, 0.0  ;;  %v3969_v10 = vpop.f32.mrf.mxu1 }
 0x5e3   :  { %v4335_v57 = vpop.f32.mrf.mxu2 }
 0x5e4   :  { %v4693_v35 = vadd.f32 %v4692_v24, %v4615_v3  ;;  %v4416_v54 = vadd.f32 %v4335_v57, %v3962_v42 }
 0x5e6   :  { %v4484_v29 = vmul.f32 %v7291_v0, %v4416_v54 }
 0x5e7   :  { %v3707_v52 = vpop.f32.mrf.mxu0 }
 0x5e8   :  { %v3965_v38 = vadd.f32 %v3964_v17, %v3707_v52  ;;  %v4552_v44 = vadd.f32 %v7297_v58, %v4484_v29 }
 0x5ea   :  { %v3971_v9 = vpop.f32.mrf.mxu1  ;;  %v4616_v20 = vmax.f32 %v4552_v44, 0.0 }
 0x5eb   :  { %v4338_v55 = vpop.f32.mrf.mxu2 }
 0x5ec   :  { %v4417_v18 = vadd.f32 %v4338_v55, %v3965_v38  ;;  %v4694_v24 = vadd.f32 %v4693_v35, %v4616_v20 }
 0x5ee   :  { %v4485_v62 = vmul.f32 %v7291_v0, %v4417_v18 }
 0x5ef   :  { %v3709_v23 = vpop.f32.mrf.mxu0 }
 0x5f0   :  { %v3967_v28 = vadd.f32 %v3966_v12, %v3709_v23  ;;  %v4553_v16 = vadd.f32 %v7297_v58, %v4485_v62 }
 0x5f2   :  { %v3974_v39 = vpop.f32.mrf.mxu1  ;;  %v4617_v21 = vmax.f32 %v4553_v16, 0.0 }
 0x5f3   :  { %v4340_v19 = vpop.f32.mrf.mxu2 }
 0x5f4   :  { %v4418_v30 = vadd.f32 %v4340_v19, %v3967_v28  ;;  %v4695_v57 = vadd.f32 %v4694_v24, %v4617_v21 }
 0x5f6   :  { %v4486_v11 = vmul.f32 %v7291_v0, %v4418_v30 }
 0x5f7   :  { %v3712_v48 = vpop.f32.mrf.mxu0 }
 0x5f8   :  { %v3970_v40 = vadd.f32 %v3969_v10, %v3712_v48  ;;  %v4554_v6 = vadd.f32 %v7297_v58, %v4486_v11 }
 0x5fa   :  { %v3976_v7 = vpop.f32.mrf.mxu1  ;;  %v4618_v14 = vmax.f32 %v4554_v6, 0.0 }
 0x5fb   :  { %v4343_v47 = vpop.f32.mrf.mxu2 }
 0x5fc   :  { %v4419_v59 = vadd.f32 %v4343_v47, %v3970_v40  ;;  %v4696_v19 = vadd.f32 %v4695_v57, %v4618_v14 }
 0x5fe   :  { %v4487_v60 = vmul.f32 %v7291_v0, %v4419_v59 }
 0x5ff   :  { %v3714_v13 = vpop.f32.mrf.mxu0 }
 0x600   :  { %v3972_v22 = vadd.f32 %v3971_v9, %v3714_v13  ;;  %v4555_v31 = vadd.f32 %v7297_v58, %v4487_v60 }
 0x602   :  { %v3979_v50 = vpop.f32.mrf.mxu1  ;;  %v4619_v52 = vmax.f32 %v4555_v31, 0.0 }
 0x603   :  { %v4345_v1 = vpop.f32.mrf.mxu2 }
 0x604   :  { %v4420_v45 = vadd.f32 %v4345_v1, %v3972_v22 }
 0x606   :  { %v4488_v4 = vmul.f32 %v7291_v0, %v4420_v45 }
 0x607   :  { %v3717_v33 = vpop.f32.mrf.mxu0 }
 0x608   :  { %v3975_v49 = vadd.f32 %v3974_v39, %v3717_v33  ;;  %v4556_v61 = vadd.f32 %v7297_v58, %v4488_v4  ;;  %v4697_v39 = vadd.f32 %v4696_v19, %v4619_v52 }
 0x60a   :  { %v3981_v2 = vpop.f32.mrf.mxu1  ;;  %v4620_v48 = vmax.f32 %v4556_v61, 0.0 }
 0x60b   :  { %v4348_v34 = vpop.f32.mrf.mxu2 }
 0x60c   :  { %v4421_v43 = vadd.f32 %v4348_v34, %v3975_v49  ;;  %v4698_v34 = vadd.f32 %v4697_v39, %v4620_v48 }
 0x60e   :  { %v4489_v53 = vmul.f32 %v7291_v0, %v4421_v43 }
 0x60f   :  { %v3719_v15 = vpop.f32.mrf.mxu0 }
 0x610   :  { %v3977_v63 = vadd.f32 %v3976_v7, %v3719_v15  ;;  %v4557_v10 = vadd.f32 %v7297_v58, %v4489_v53 }
 0x612   :  { %v3984_v41 = vpop.f32.mrf.mxu1  ;;  %v4621_v13 = vmax.f32 %v4557_v10, 0.0 }
 0x613   :  { %v4350_v5 = vpop.f32.mrf.mxu2 }
 0x614   :  { %v4422_v25 = vadd.f32 %v4350_v5, %v3977_v63  ;;  %v4699_v42 = vadd.f32 %v4698_v34, %v4621_v13 }
 0x616   :  { %v4490_v12 = vmul.f32 %v7291_v0, %v4422_v25 }
 0x617   :  { %v3722_v26 = vpop.f32.mrf.mxu0 }
 0x618   :  { %v3980_v17 = vadd.f32 %v3979_v50, %v3722_v26  ;;  %v4558_v35 = vadd.f32 %v7297_v58, %v4490_v12 }
 0x61a   :  { %v4622_v15 = vmax.f32 %v4558_v35, 0.0  ;;  %v3986_v5 = vpop.f32.mrf.mxu1 }
 0x61b   :  { %v4353_v46 = vpop.f32.mrf.mxu2 }
 0x61c   :  { %v4423_v8 = vadd.f32 %v4353_v46, %v3980_v17  ;;  %v4700_v28 = vadd.f32 %v4699_v42, %v4622_v15 }
 0x61e   :  { %v4491_v55 = vmul.f32 %v7291_v0, %v4423_v8 }
 0x61f   :  { %v3724_v36 = vpop.f32.mrf.mxu0 }
 0x620   :  { %v3982_v27 = vadd.f32 %v3981_v2, %v3724_v36  ;;  %v4559_v1 = vadd.f32 %v7297_v58, %v4491_v55 }
 0x622   :  { %v4623_v54 = vmax.f32 %v4559_v1, 0.0 }
 0x623   :  { %v4355_v32 = vpop.f32.mrf.mxu2 }
 0x624   :  { %v4424_v3 = vadd.f32 %v4355_v32, %v3982_v27  ;;  %v4701_v46 = vadd.f32 %v4700_v28, %v4623_v54 }
 0x626   :  { %v4492_v47 = vmul.f32 %v7291_v0, %v4424_v3 }
 0x627   :  { %v3727_v51 = vpop.f32.mrf.mxu0 }
 0x628   :  { %v3985_v23 = vadd.f32 %v3984_v41, %v3727_v51  ;;  %v4560_v50 = vadd.f32 %v7297_v58, %v4492_v47 }
 0x62a   :  { %v4624_v29 = vmax.f32 %v4560_v50, 0.0 }
 0x62b   :  { %v4358_v9 = vpop.f32.mrf.mxu2 }
 0x62c   :  { %v4425_v37 = vadd.f32 %v4358_v9, %v3985_v23  ;;  %v4702_v2 = vadd.f32 %v4701_v46, %v4624_v29 }
 0x62e   :  { %v4493_v33 = vmul.f32 %v7291_v0, %v4425_v37 }
 0x62f   :  { %v3729_v7 = vpop.f32.mrf.mxu0 }
 0x630   :  { %v4561_v38 = vadd.f32 %v7297_v58, %v4493_v33  ;;  %v3987_v26 = vadd.f32 %v3986_v5, %v3729_v7 }
 0x632   :  { %v4625_v40 = vmax.f32 %v4561_v38, 0.0 }
 0x633   :  { %v4360_v18 = vpop.f32.mrf.mxu2 }
 0x634   :  { %v4426_v30 = vadd.f32 %v4360_v18, %v3987_v26  ;;  %v4703_v22 = vadd.f32 %v4702_v2, %v4625_v40 }
 0x636   :  { %v4494_v62 = vmul.f32 %v7291_v0, %v4426_v30  ;;  %v5384_v0 = vld [vmem:[%s7401_s11] ss:$0 sm:$0xff] }
 0x638   :  { %v4562_v59 = vadd.f32 %v7297_v58, %v4494_v62 }
 0x63a   :  { %v4626_v44 = vmax.f32 %v4562_v59, 0.0 }
 0x63c   :  { %v4704_v11 = vadd.f32 %v4703_v22, %v4626_v44 }
 0x63e   :  { %v4705_v36 = vrot.slane %v4704_v11, 4 }
 0x640   :  { %v4706_v45 = vadd.f32 %v4705_v36, %v4704_v11 }
 0x642   :  { %v4707_v49 = vrot.slane %v4706_v45, 2 }
 0x644   :  { %v4708_v16 = vadd.f32 %v4707_v49, %v4706_v45 }
 0x646   :  { %v4709_v60 = vrot.slane %v4708_v16, 1 }
 0x648   :  { %v4710_v43 = vadd.f32 %v4709_v60, %v4708_v16 }
 0x64a   :  { %v4714_v63 = vmul.f32 0.0078125, %v4710_v43 }
 0x64c   :  { %v4718_v20 = vpack.c.bf16 %v4714_v63, %v4714_v63 }
 0x64e   :  { %v4746_v6 = vunpack.c.l.b16 %v4718_v20 }
 0x650   :  { %v4752_v32 = vsel %vm4751_vm11, %v4746_v6, %v7352_v56 }
 0x651   :  { %v4753_v4 = vpack.c.b16 %v4752_v32, %v4752_v32 }
 0x653   :  { %4811 = vmatmul.bf16.vlgmr.msra.gmra.mxu3 %v4753_v4 }
 0x6d6   :  { %v4812_v58 = vpop.f32.mrf.mxu3 }
 0x6d7   :  { %v4813_v25 = vadd.f32 %v5384_v0, %v4812_v58 }
 0x6d9   :  { %4817 = vst.msk [vmem:[#allocation2] sm:$0xf] %vm4816_vm12, %v4813_v25 }
 0x6da   :  { %4828 = dma.vmem_to_hbm [thread:$0]  %s4824_s22, 64, %s4826_s25, [#allocation3]  }
 0x6de   :  { %v4814_v56 = vpop.f32.mrf.mxu3 }
 0x6df   :  { %5419 = dma.done.wait [#allocation3], 64  }
 0x6e0   :  { %5420 = vsyncadd [#allocation3], 4294967232 }
 0x6e1   :  { %4833 = vsyncpa [#allocation3], 1 }

</bundles_post_ra>
